<compile_context>
chip_gen: v5e
topology: v5e:2x2
jax: 0.10.0
libtpu: 0.0.40
codegen_flags: <defaults>
</compile_context>

<pallas_src>
import numpy as np

import jax
import jax.numpy as jnp
from jax.experimental import pallas as pl
from jax.experimental.pallas import tpu as pltpu

C1, C2, C3 = 24, 32, 48          # conv output channels (real, un-padded)
K1 = 16                          # conv1 contraction dim: 9 taps padded to 16
P1, P2, P3 = 14 * 14, 7 * 7, 5 * 5   # conv output spatial positions
HIDDEN = 512
NUM_CLASSES = 10
LOGIT_LANES = 128                # logits padded to one full lane tile

FLOPS_PER_IMAGE = 2 * (P1 * K1 * C1
                       + 9 * (P2 * P1 * C1 + P2 * C1 * C2)
                       + 9 * (P3 * P2 * C2 + P3 * C2 * C3)
                       + P3 * C3 * HIDDEN
                       + HIDDEN * LOGIT_LANES)
WEIGHT_BYTES = 2 * (K1 * C1 + 9 * C1 * C2 + 9 * C2 * C3
                    + 9 * P2 * P1 + 9 * P3 * P2
                    + P3 * C3 * HIDDEN + HIDDEN * LOGIT_LANES) \
               + 4 * (C1 + C2 + C3 + HIDDEN + LOGIT_LANES)


# ----------------------------------------------------------------------------
# Constant conv geometry: 0/1 gather matrices (one per kernel tap)
# ----------------------------------------------------------------------------
def _conv_gather_mats(hin, win, ksize, stride, pad, hout, wout):
    """g[t] is (hout*wout, hin*win); row p has a single 1 at the input position
    read by tap t=(ki,kj) for output position p, or all zeros if that tap
    falls into the zero-padding region."""
    g = np.zeros((ksize * ksize, hout * wout, hin * win), np.float32)
    for ki in range(ksize):
        for kj in range(ksize):
            t = ki * ksize + kj
            for ho in range(hout):
                hi = ho * stride + ki - pad
                if hi < 0 or hi >= hin:
                    continue
                for wo in range(wout):
                    wi = wo * stride + kj - pad
                    if 0 <= wi < win:
                        g[t, ho * wout + wo, hi * win + wi] = 1.0
    return g


# ----------------------------------------------------------------------------
# The single fused Pallas kernel: one image per grid step
# ----------------------------------------------------------------------------
def _fused_cnn_kernel(cols1_ref, w1_ref, b1_ref,
                      g2_ref, w2_ref, b2_ref,
                      g3_ref, w3_ref, b3_ref,
                      wf1_ref, bf1_ref, wf2_ref, bf2_ref,
                      o_ref):
    f32 = jnp.float32
    bf16 = jnp.bfloat16

    # conv1 + ReLU: one matmul on glue-built im2col of this image.
    a1 = jnp.dot(cols1_ref[0], w1_ref[...], preferred_element_type=f32)
    a1 = jnp.maximum(a1 + b1_ref[...], 0.0).astype(bf16)                # (196, 24)

    # conv2 + ReLU: 9 taps; row-gather with a constant 0/1 matrix (MXU, exact),
    # then multiply by the (cin, cout) tap weights.  Everything stays on chip.
    acc2 = jnp.zeros((P2, C2), f32)
    for t in range(9):
        gath = jnp.dot(g2_ref[t], a1, preferred_element_type=f32)       # (49, 24)
        acc2 = acc2 + jnp.dot(gath.astype(bf16), w2_ref[t],
                              preferred_element_type=f32)               # (49, 32)
    a2 = jnp.maximum(acc2 + b2_ref[...], 0.0).astype(bf16)

    # conv3 + ReLU: same scheme (stride 1, no padding).
    acc3 = jnp.zeros((P3, C3), f32)
    for t in range(9):
        gath = jnp.dot(g3_ref[t], a2, preferred_element_type=f32)       # (25, 32)
        acc3 = acc3 + jnp.dot(gath.astype(bf16), w3_ref[t],
                              preferred_element_type=f32)               # (25, 48)
    a3 = jnp.maximum(acc3 + b3_ref[...], 0.0).astype(bf16)              # (25, 48)

    # Flatten + fc1 + ReLU: the PyTorch flatten (c,h,w) is folded into fc1 by
    # summing per-spatial-position (48, 512) weight slices -- no reshape.
    h = jnp.zeros((1, HIDDEN), f32)
    for p in range(P3):
        h = h + jnp.dot(a3[p:p + 1, :], wf1_ref[p], preferred_element_type=f32)
    h = jnp.maximum(h + bf1_ref[...], 0.0).astype(bf16)                 # (1, 512)

    # TODO(synk): Dropout(0.2) is eval-mode identity here.

    # fc2 + softmax over the 10 real classes (lanes 10..127 are padding).
    logits = jnp.dot(h, wf2_ref[...], preferred_element_type=f32) + bf2_ref[...]
    lane = jax.lax.broadcasted_iota(jnp.int32, logits.shape, 1)
    logits = jnp.where(lane < NUM_CLASSES, logits, f32(-1e30))
    m = jnp.max(logits, axis=-1, keepdims=True)
    e = jnp.exp(logits - m)
    denom = jnp.sum(e, axis=-1, keepdims=True)
    r = pl.reciprocal(denom, approx=True)      # EUP slot
    r = r * (2.0 - denom * r)                  # one Newton step -> ~f32 accuracy
    o_ref[0] = e * r


def _fused_forward(params, cols1, n):
    kernel = pl.pallas_call(
        _fused_cnn_kernel,
        out_shape=jax.ShapeDtypeStruct((n, 1, LOGIT_LANES), jnp.float32),
        grid_spec=pltpu.PrefetchScalarGridSpec(
            num_scalar_prefetch=0,
            grid=(n,),
            in_specs=[
                pl.BlockSpec((1, P1, K1), lambda i: (i, 0, 0)),          # cols1
                pl.BlockSpec((K1, C1), lambda i: (0, 0)),                # w1
                pl.BlockSpec((1, C1), lambda i: (0, 0)),                 # b1
                pl.BlockSpec((9, P2, P1), lambda i: (0, 0, 0)),          # g2
                pl.BlockSpec((9, C1, C2), lambda i: (0, 0, 0)),          # w2
                pl.BlockSpec((1, C2), lambda i: (0, 0)),                 # b2
                pl.BlockSpec((9, P3, P2), lambda i: (0, 0, 0)),          # g3
                pl.BlockSpec((9, C2, C3), lambda i: (0, 0, 0)),          # w3
                pl.BlockSpec((1, C3), lambda i: (0, 0)),                 # b3
                pl.BlockSpec((P3, C3, HIDDEN), lambda i: (0, 0, 0)),     # wf1
                pl.BlockSpec((1, HIDDEN), lambda i: (0, 0)),             # bf1
                pl.BlockSpec((HIDDEN, LOGIT_LANES), lambda i: (0, 0)),   # wf2
                pl.BlockSpec((1, LOGIT_LANES), lambda i: (0, 0)),        # bf2
            ],
            out_specs=pl.BlockSpec((1, 1, LOGIT_LANES), lambda i: (i, 0, 0)),
        ),
        compiler_params=pltpu.CompilerParams(
            dimension_semantics=("parallel",)),
        cost_estimate=pl.CostEstimate(
            flops=n * FLOPS_PER_IMAGE,
            transcendentals=n * LOGIT_LANES,
            bytes_accessed=WEIGHT_BYTES + n * (P1 * K1 * 2 + LOGIT_LANES * 4)),
    )
    return kernel(cols1, params["w1"], params["b1"],
                  params["g2"], params["w2"], params["b2"],
                  params["g3"], params["w3"], params["b3"],
                  params["wf1"], params["bf1"], params["wf2"], params["bf2"])


# ----------------------------------------------------------------------------
# Glue: conv1 im2col of the raw input only (tiny; everything else is fused)
# ----------------------------------------------------------------------------
def _conv1_cols(x_nchw):
    n = x_nchw.shape[0]
    img = x_nchw.reshape(n, 28, 28)
    xp = jnp.pad(img, ((0, 0), (1, 1), (1, 1)))                # 30 x 30
    taps = [xp[:, ki:ki + 28:2, kj:kj + 28:2]
            for ki in range(3) for kj in range(3)]             # each (n,14,14)
    cols = jnp.stack(taps, axis=-1).reshape(n, P1, 9)
    cols = jnp.pad(cols, ((0, 0), (0, 0), (0, K1 - 9)))
    return cols.astype(jnp.bfloat16)


# ----------------------------------------------------------------------------
# Parameters (deterministic, in-script); all layout transforms pre-baked.
# ----------------------------------------------------------------------------
def init_params(key):
    def conv_p(k, cout, cin, ks):
        kw, kb = jax.random.split(k)
        scale = 1.0 / np.sqrt(cin * ks * ks)
        w = jax.random.normal(kw, (cout, cin, ks, ks), jnp.float32) * scale
        b = jax.random.normal(kb, (cout,), jnp.float32) * scale
        return w, b

    def lin_p(k, din, dout):
        kw, kb = jax.random.split(k)
        scale = 1.0 / np.sqrt(din)
        w = jax.random.normal(kw, (din, dout), jnp.float32) * scale
        b = jax.random.normal(kb, (dout,), jnp.float32) * scale
        return w, b

    k1, k2, k3, k4, k5 = jax.random.split(key, 5)
    c1w, c1b = conv_p(k1, C1, 1, 3)
    c2w, c2b = conv_p(k2, C2, C1, 3)
    c3w, c3b = conv_p(k3, C3, C2, 3)
    f1w, f1b = lin_p(k4, C3 * P3, HIDDEN)    # rows in PyTorch flatten (c,h,w) order
    f2w, f2b = lin_p(k5, HIDDEN, NUM_CLASSES)

    raw = dict(c1w=c1w, c1b=c1b, c2w=c2w, c2b=c2b, c3w=c3w, c3b=c3b,
               f1w=f1w, f1b=f1b, f2w=f2w, f2b=f2b)

    p = {}
    # conv weights: OIHW -> (tap, cin, cout); conv1 K padded 9 -> 16.
    w1 = jnp.transpose(c1w, (2, 3, 1, 0)).reshape(9, C1)
    p["w1"] = jnp.pad(w1, ((0, K1 - 9), (0, 0))).astype(jnp.bfloat16)
    p["b1"] = c1b.reshape(1, C1)
    p["w2"] = jnp.transpose(c2w, (2, 3, 1, 0)).reshape(9, C1, C2).astype(jnp.bfloat16)
    p["b2"] = c2b.reshape(1, C2)
    p["w3"] = jnp.transpose(c3w, (2, 3, 1, 0)).reshape(9, C2, C3).astype(jnp.bfloat16)
    p["b3"] = c3b.reshape(1, C3)
    # constant 0/1 gather matrices encoding the conv stride/padding geometry.
    p["g2"] = jnp.asarray(_conv_gather_mats(14, 14, 3, 2, 1, 7, 7), jnp.bfloat16)
    p["g3"] = jnp.asarray(_conv_gather_mats(7, 7, 3, 1, 0, 5, 5), jnp.bfloat16)
    # fc1: regroup rows (c*25 + p) -> [p][c] so the in-kernel per-position sum
    # reproduces the PyTorch flatten order with no activation reshape.
    p["wf1"] = jnp.transpose(f1w.reshape(C3, P3, HIDDEN), (1, 0, 2)).astype(jnp.bfloat16)
    p["bf1"] = f1b.reshape(1, HIDDEN)
    # fc2: pad logits to one full 128-lane tile (kernel masks the pad lanes).
    p["wf2"] = jnp.pad(f2w, ((0, 0), (0, LOGIT_LANES - NUM_CLASSES))).astype(jnp.bfloat16)
    p["bf2"] = jnp.pad(f2b, (0, LOGIT_LANES - NUM_CLASSES)).reshape(1, LOGIT_LANES)
    return p, raw


# ----------------------------------------------------------------------------
# Forward pass (matches PyTorch module semantics, eval mode)
# ----------------------------------------------------------------------------
@jax.jit
def forward(params, x_nchw):
    n = x_nchw.shape[0]
    cols1 = _conv1_cols(x_nchw)                            # (n, 196, 16) bf16
    probs = _fused_forward(params, cols1, n)               # (n, 1, 128) f32
    return probs.reshape(n, LOGIT_LANES)[:, :NUM_CLASSES]  # (n, 10)


# Pure-JAX / XLA reference (f32 end-to-end) for a tolerance check.
def reference_forward(raw, x):
    dn = ("NCHW", "OIHW", "NCHW")
    y = jax.lax.conv_general_dilated(x, raw["c1w"], (2, 2), ((1, 1), (1, 1)),
                                     dimension_numbers=dn)
    y = jax.nn.relu(y + raw["c1b"].reshape(1, -1, 1, 1))
    y = jax.lax.conv_general_dilated(y, raw["c2w"], (2, 2), ((1, 1), (1, 1)),
                                     dimension_numbers=dn)
    y = jax.nn.relu(y + raw["c2b"].reshape(1, -1, 1, 1))
    y = jax.lax.conv_general_dilated(y, raw["c3w"], (1, 1), ((0, 0), (0, 0)),
                                     dimension_numbers=dn)
    y = jax.nn.relu(y + raw["c3b"].reshape(1, -1, 1, 1))
    y = y.reshape(y.shape[0], -1)                          # PyTorch Flatten (c,h,w)
    y = jax.nn.relu(y @ raw["f1w"] + raw["f1b"])
    return jax.nn.softmax(y @ raw["f2w"] + raw["f2b"], axis=-1)


if __name__ == "__main__":
    key = jax.random.PRNGKey(0)
    k_param, k_input = jax.random.split(key)

    params, raw = init_params(k_param)
    # MNIST-like input: batch=2, 1 channel, 28x28 (required by Linear(1200, .)).
    x = jax.random.normal(k_input, (2, 1, 28, 28), jnp.float32)

    out = jax.block_until_ready(forward(params, x))

    assert out.shape == (2, NUM_CLASSES)
    assert bool(jnp.all(out >= 0.0))
    assert bool(jnp.all(jnp.abs(jnp.sum(out, axis=1) - 1.0) < 1e-4))

    # bf16 kernel vs f32 XLA reference: loose tolerance on probabilities.
    ref = jax.block_until_ready(reference_forward(raw, x))
    assert float(jnp.max(jnp.abs(out - ref))) < 5e-2

    print("KERNEL_OK")
</pallas_src>

<mosaic_0001>
module attributes {stable_mosaic.version = 11 : i64} {
  func.func @_fused_cnn_kernel(%arg0: i32, %arg1: memref<1x196x16xbf16, #tpu.memory_space<vmem>>, %arg2: memref<16x24xbf16, #tpu.memory_space<vmem>>, %arg3: memref<1x24xf32, #tpu.memory_space<vmem>>, %arg4: memref<9x49x196xbf16, #tpu.memory_space<vmem>>, %arg5: memref<9x24x32xbf16, #tpu.memory_space<vmem>>, %arg6: memref<1x32xf32, #tpu.memory_space<vmem>>, %arg7: memref<9x25x49xbf16, #tpu.memory_space<vmem>>, %arg8: memref<9x32x48xbf16, #tpu.memory_space<vmem>>, %arg9: memref<1x48xf32, #tpu.memory_space<vmem>>, %arg10: memref<25x48x512xbf16, #tpu.memory_space<vmem>>, %arg11: memref<1x512xf32, #tpu.memory_space<vmem>>, %arg12: memref<512x128xbf16, #tpu.memory_space<vmem>>, %arg13: memref<1x128xf32, #tpu.memory_space<vmem>>, %arg14: memref<1x1x128xf32, #tpu.memory_space<vmem>>) attributes {dimension_semantics = [#tpu.dimension_semantics<parallel>], iteration_bounds = array<i64: 2>, scalar_prefetch = 0 : i64, scratch_operands = 0 : i64, tpu.core_type = #tpu.core_type<tc>, window_params = [{transform_indices = @transform_0, window_bounds = array<i64: 1, 196, 16>}, {pipeline_mode = #tpu.pipeline_mode<synchronous>, transform_indices = @transform_1, window_bounds = array<i64: 16, 24>}, {pipeline_mode = #tpu.pipeline_mode<synchronous>, transform_indices = @transform_2, window_bounds = array<i64: 1, 24>}, {pipeline_mode = #tpu.pipeline_mode<synchronous>, transform_indices = @transform_3, window_bounds = array<i64: 9, 49, 196>}, {pipeline_mode = #tpu.pipeline_mode<synchronous>, transform_indices = @transform_4, window_bounds = array<i64: 9, 24, 32>}, {pipeline_mode = #tpu.pipeline_mode<synchronous>, transform_indices = @transform_5, window_bounds = array<i64: 1, 32>}, {pipeline_mode = #tpu.pipeline_mode<synchronous>, transform_indices = @transform_6, window_bounds = array<i64: 9, 25, 49>}, {pipeline_mode = #tpu.pipeline_mode<synchronous>, transform_indices = @transform_7, window_bounds = array<i64: 9, 32, 48>}, {pipeline_mode = #tpu.pipeline_mode<synchronous>, transform_indices = @transform_8, window_bounds = array<i64: 1, 48>}, {pipeline_mode = #tpu.pipeline_mode<synchronous>, transform_indices = @transform_9, window_bounds = array<i64: 25, 48, 512>}, {pipeline_mode = #tpu.pipeline_mode<synchronous>, transform_indices = @transform_10, window_bounds = array<i64: 1, 512>}, {pipeline_mode = #tpu.pipeline_mode<synchronous>, transform_indices = @transform_11, window_bounds = array<i64: 512, 128>}, {pipeline_mode = #tpu.pipeline_mode<synchronous>, transform_indices = @transform_12, window_bounds = array<i64: 1, 128>}, {transform_indices = @transform_13, window_bounds = array<i64: 1, 1, 128>}]} {
    %c0 = arith.constant 0 : index
    %c0_0 = arith.constant 0 : index
    %c0_1 = arith.constant 0 : index
    %0 = vector.load %arg1[%c0, %c0_0, %c0_1] : memref<1x196x16xbf16, #tpu.memory_space<vmem>>, vector<1x196x16xbf16>
    %1 = vector.shape_cast %0 : vector<1x196x16xbf16> to vector<196x16xbf16>
    %c0_2 = arith.constant 0 : index
    %c0_3 = arith.constant 0 : index
    %2 = vector.load %arg2[%c0_2, %c0_3] : memref<16x24xbf16, #tpu.memory_space<vmem>>, vector<16x24xbf16>
    %cst = arith.constant dense<0.000000e+00> : vector<196x24xf32>
    %3 = tpu.matmul %1, %2, %cst {dimension_numbers = #tpu.dot_dimension_numbers<[1], [0], [0], [1], [0, 0, 1, 1], [], []>} : vector<196x16xbf16>, vector<16x24xbf16>, vector<196x24xf32> -> vector<196x24xf32>
    %c0_4 = arith.constant 0 : index
    %c0_5 = arith.constant 0 : index
    %4 = vector.load %arg3[%c0_4, %c0_5] : memref<1x24xf32, #tpu.memory_space<vmem>>, vector<1x24xf32>
    %5 = vector.broadcast %4 : vector<1x24xf32> to vector<196x24xf32>
    %6 = arith.addf %3, %5 : vector<196x24xf32>
    %cst_6 = arith.constant 0.000000e+00 : f32
    %7 = vector.broadcast %cst_6 : f32 to vector<196x24xf32>
    %8 = arith.maximumf %6, %7 : vector<196x24xf32>
    %9 = arith.truncf %8 : vector<196x24xf32> to vector<196x24xbf16>
    %cst_7 = arith.constant 0.000000e+00 : f32
    %10 = vector.broadcast %cst_7 : f32 to vector<49x32xf32>
    %c0_8 = arith.constant 0 : index
    %c0_9 = arith.constant 0 : index
    %c0_10 = arith.constant 0 : index
    %11 = vector.load %arg4[%c0_8, %c0_9, %c0_10] : memref<9x49x196xbf16, #tpu.memory_space<vmem>>, vector<1x49x196xbf16>
    %12 = vector.shape_cast %11 : vector<1x49x196xbf16> to vector<49x196xbf16>
    %cst_11 = arith.constant dense<0.000000e+00> : vector<49x24xf32>
    %13 = tpu.matmul %12, %9, %cst_11 {dimension_numbers = #tpu.dot_dimension_numbers<[1], [0], [0], [1], [0, 0, 1, 1], [], []>} : vector<49x196xbf16>, vector<196x24xbf16>, vector<49x24xf32> -> vector<49x24xf32>
    %14 = arith.truncf %13 : vector<49x24xf32> to vector<49x24xbf16>
    %c0_12 = arith.constant 0 : index
    %c0_13 = arith.constant 0 : index
    %c0_14 = arith.constant 0 : index
    %15 = vector.load %arg5[%c0_12, %c0_13, %c0_14] : memref<9x24x32xbf16, #tpu.memory_space<vmem>>, vector<1x24x32xbf16>
    %16 = vector.shape_cast %15 : vector<1x24x32xbf16> to vector<24x32xbf16>
    %cst_15 = arith.constant dense<0.000000e+00> : vector<49x32xf32>
    %17 = tpu.matmul %14, %16, %cst_15 {dimension_numbers = #tpu.dot_dimension_numbers<[1], [0], [0], [1], [0, 0, 1, 1], [], []>} : vector<49x24xbf16>, vector<24x32xbf16>, vector<49x32xf32> -> vector<49x32xf32>
    %18 = arith.addf %10, %17 : vector<49x32xf32>
    %c1 = arith.constant 1 : index
    %c0_16 = arith.constant 0 : index
    %c0_17 = arith.constant 0 : index
    %19 = vector.load %arg4[%c1, %c0_16, %c0_17] : memref<9x49x196xbf16, #tpu.memory_space<vmem>>, vector<1x49x196xbf16>
    %20 = vector.shape_cast %19 : vector<1x49x196xbf16> to vector<49x196xbf16>
    %cst_18 = arith.constant dense<0.000000e+00> : vector<49x24xf32>
    %21 = tpu.matmul %20, %9, %cst_18 {dimension_numbers = #tpu.dot_dimension_numbers<[1], [0], [0], [1], [0, 0, 1, 1], [], []>} : vector<49x196xbf16>, vector<196x24xbf16>, vector<49x24xf32> -> vector<49x24xf32>
    %22 = arith.truncf %21 : vector<49x24xf32> to vector<49x24xbf16>
    %c1_19 = arith.constant 1 : index
    %c0_20 = arith.constant 0 : index
    %c0_21 = arith.constant 0 : index
    %23 = vector.load %arg5[%c1_19, %c0_20, %c0_21] : memref<9x24x32xbf16, #tpu.memory_space<vmem>>, vector<1x24x32xbf16>
    %24 = vector.shape_cast %23 : vector<1x24x32xbf16> to vector<24x32xbf16>
    %cst_22 = arith.constant dense<0.000000e+00> : vector<49x32xf32>
    %25 = tpu.matmul %22, %24, %cst_22 {dimension_numbers = #tpu.dot_dimension_numbers<[1], [0], [0], [1], [0, 0, 1, 1], [], []>} : vector<49x24xbf16>, vector<24x32xbf16>, vector<49x32xf32> -> vector<49x32xf32>
    %26 = arith.addf %18, %25 : vector<49x32xf32>
    %c2 = arith.constant 2 : index
    %c0_23 = arith.constant 0 : index
    %c0_24 = arith.constant 0 : index
    %27 = vector.load %arg4[%c2, %c0_23, %c0_24] : memref<9x49x196xbf16, #tpu.memory_space<vmem>>, vector<1x49x196xbf16>
    %28 = vector.shape_cast %27 : vector<1x49x196xbf16> to vector<49x196xbf16>
    %cst_25 = arith.constant dense<0.000000e+00> : vector<49x24xf32>
    %29 = tpu.matmul %28, %9, %cst_25 {dimension_numbers = #tpu.dot_dimension_numbers<[1], [0], [0], [1], [0, 0, 1, 1], [], []>} : vector<49x196xbf16>, vector<196x24xbf16>, vector<49x24xf32> -> vector<49x24xf32>
    %30 = arith.truncf %29 : vector<49x24xf32> to vector<49x24xbf16>
    %c2_26 = arith.constant 2 : index
    %c0_27 = arith.constant 0 : index
    %c0_28 = arith.constant 0 : index
    %31 = vector.load %arg5[%c2_26, %c0_27, %c0_28] : memref<9x24x32xbf16, #tpu.memory_space<vmem>>, vector<1x24x32xbf16>
    %32 = vector.shape_cast %31 : vector<1x24x32xbf16> to vector<24x32xbf16>
    %cst_29 = arith.constant dense<0.000000e+00> : vector<49x32xf32>
    %33 = tpu.matmul %30, %32, %cst_29 {dimension_numbers = #tpu.dot_dimension_numbers<[1], [0], [0], [1], [0, 0, 1, 1], [], []>} : vector<49x24xbf16>, vector<24x32xbf16>, vector<49x32xf32> -> vector<49x32xf32>
    %34 = arith.addf %26, %33 : vector<49x32xf32>
    %c3 = arith.constant 3 : index
    %c0_30 = arith.constant 0 : index
    %c0_31 = arith.constant 0 : index
    %35 = vector.load %arg4[%c3, %c0_30, %c0_31] : memref<9x49x196xbf16, #tpu.memory_space<vmem>>, vector<1x49x196xbf16>
    %36 = vector.shape_cast %35 : vector<1x49x196xbf16> to vector<49x196xbf16>
    %cst_32 = arith.constant dense<0.000000e+00> : vector<49x24xf32>
    %37 = tpu.matmul %36, %9, %cst_32 {dimension_numbers = #tpu.dot_dimension_numbers<[1], [0], [0], [1], [0, 0, 1, 1], [], []>} : vector<49x196xbf16>, vector<196x24xbf16>, vector<49x24xf32> -> vector<49x24xf32>
    %38 = arith.truncf %37 : vector<49x24xf32> to vector<49x24xbf16>
    %c3_33 = arith.constant 3 : index
    %c0_34 = arith.constant 0 : index
    %c0_35 = arith.constant 0 : index
    %39 = vector.load %arg5[%c3_33, %c0_34, %c0_35] : memref<9x24x32xbf16, #tpu.memory_space<vmem>>, vector<1x24x32xbf16>
    %40 = vector.shape_cast %39 : vector<1x24x32xbf16> to vector<24x32xbf16>
    %cst_36 = arith.constant dense<0.000000e+00> : vector<49x32xf32>
    %41 = tpu.matmul %38, %40, %cst_36 {dimension_numbers = #tpu.dot_dimension_numbers<[1], [0], [0], [1], [0, 0, 1, 1], [], []>} : vector<49x24xbf16>, vector<24x32xbf16>, vector<49x32xf32> -> vector<49x32xf32>
    %42 = arith.addf %34, %41 : vector<49x32xf32>
    %c4 = arith.constant 4 : index
    %c0_37 = arith.constant 0 : index
    %c0_38 = arith.constant 0 : index
    %43 = vector.load %arg4[%c4, %c0_37, %c0_38] : memref<9x49x196xbf16, #tpu.memory_space<vmem>>, vector<1x49x196xbf16>
    %44 = vector.shape_cast %43 : vector<1x49x196xbf16> to vector<49x196xbf16>
    %cst_39 = arith.constant dense<0.000000e+00> : vector<49x24xf32>
    %45 = tpu.matmul %44, %9, %cst_39 {dimension_numbers = #tpu.dot_dimension_numbers<[1], [0], [0], [1], [0, 0, 1, 1], [], []>} : vector<49x196xbf16>, vector<196x24xbf16>, vector<49x24xf32> -> vector<49x24xf32>
    %46 = arith.truncf %45 : vector<49x24xf32> to vector<49x24xbf16>
    %c4_40 = arith.constant 4 : index
    %c0_41 = arith.constant 0 : index
    %c0_42 = arith.constant 0 : index
    %47 = vector.load %arg5[%c4_40, %c0_41, %c0_42] : memref<9x24x32xbf16, #tpu.memory_space<vmem>>, vector<1x24x32xbf16>
    %48 = vector.shape_cast %47 : vector<1x24x32xbf16> to vector<24x32xbf16>
    %cst_43 = arith.constant dense<0.000000e+00> : vector<49x32xf32>
    %49 = tpu.matmul %46, %48, %cst_43 {dimension_numbers = #tpu.dot_dimension_numbers<[1], [0], [0], [1], [0, 0, 1, 1], [], []>} : vector<49x24xbf16>, vector<24x32xbf16>, vector<49x32xf32> -> vector<49x32xf32>
    %50 = arith.addf %42, %49 : vector<49x32xf32>
    %c5 = arith.constant 5 : index
    %c0_44 = arith.constant 0 : index
    %c0_45 = arith.constant 0 : index
    %51 = vector.load %arg4[%c5, %c0_44, %c0_45] : memref<9x49x196xbf16, #tpu.memory_space<vmem>>, vector<1x49x196xbf16>
    %52 = vector.shape_cast %51 : vector<1x49x196xbf16> to vector<49x196xbf16>
    %cst_46 = arith.constant dense<0.000000e+00> : vector<49x24xf32>
    %53 = tpu.matmul %52, %9, %cst_46 {dimension_numbers = #tpu.dot_dimension_numbers<[1], [0], [0], [1], [0, 0, 1, 1], [], []>} : vector<49x196xbf16>, vector<196x24xbf16>, vector<49x24xf32> -> vector<49x24xf32>
    %54 = arith.truncf %53 : vector<49x24xf32> to vector<49x24xbf16>
    %c5_47 = arith.constant 5 : index
    %c0_48 = arith.constant 0 : index
    %c0_49 = arith.constant 0 : index
    %55 = vector.load %arg5[%c5_47, %c0_48, %c0_49] : memref<9x24x32xbf16, #tpu.memory_space<vmem>>, vector<1x24x32xbf16>
    %56 = vector.shape_cast %55 : vector<1x24x32xbf16> to vector<24x32xbf16>
    %cst_50 = arith.constant dense<0.000000e+00> : vector<49x32xf32>
    %57 = tpu.matmul %54, %56, %cst_50 {dimension_numbers = #tpu.dot_dimension_numbers<[1], [0], [0], [1], [0, 0, 1, 1], [], []>} : vector<49x24xbf16>, vector<24x32xbf16>, vector<49x32xf32> -> vector<49x32xf32>
    %58 = arith.addf %50, %57 : vector<49x32xf32>
    %c6 = arith.constant 6 : index
    %c0_51 = arith.constant 0 : index
    %c0_52 = arith.constant 0 : index
    %59 = vector.load %arg4[%c6, %c0_51, %c0_52] : memref<9x49x196xbf16, #tpu.memory_space<vmem>>, vector<1x49x196xbf16>
    %60 = vector.shape_cast %59 : vector<1x49x196xbf16> to vector<49x196xbf16>
    %cst_53 = arith.constant dense<0.000000e+00> : vector<49x24xf32>
    %61 = tpu.matmul %60, %9, %cst_53 {dimension_numbers = #tpu.dot_dimension_numbers<[1], [0], [0], [1], [0, 0, 1, 1], [], []>} : vector<49x196xbf16>, vector<196x24xbf16>, vector<49x24xf32> -> vector<49x24xf32>
    %62 = arith.truncf %61 : vector<49x24xf32> to vector<49x24xbf16>
    %c6_54 = arith.constant 6 : index
    %c0_55 = arith.constant 0 : index
    %c0_56 = arith.constant 0 : index
    %63 = vector.load %arg5[%c6_54, %c0_55, %c0_56] : memref<9x24x32xbf16, #tpu.memory_space<vmem>>, vector<1x24x32xbf16>
    %64 = vector.shape_cast %63 : vector<1x24x32xbf16> to vector<24x32xbf16>
    %cst_57 = arith.constant dense<0.000000e+00> : vector<49x32xf32>
    %65 = tpu.matmul %62, %64, %cst_57 {dimension_numbers = #tpu.dot_dimension_numbers<[1], [0], [0], [1], [0, 0, 1, 1], [], []>} : vector<49x24xbf16>, vector<24x32xbf16>, vector<49x32xf32> -> vector<49x32xf32>
    %66 = arith.addf %58, %65 : vector<49x32xf32>
    %c7 = arith.constant 7 : index
    %c0_58 = arith.constant 0 : index
    %c0_59 = arith.constant 0 : index
    %67 = vector.load %arg4[%c7, %c0_58, %c0_59] : memref<9x49x196xbf16, #tpu.memory_space<vmem>>, vector<1x49x196xbf16>
    %68 = vector.shape_cast %67 : vector<1x49x196xbf16> to vector<49x196xbf16>
    %cst_60 = arith.constant dense<0.000000e+00> : vector<49x24xf32>
    %69 = tpu.matmul %68, %9, %cst_60 {dimension_numbers = #tpu.dot_dimension_numbers<[1], [0], [0], [1], [0, 0, 1, 1], [], []>} : vector<49x196xbf16>, vector<196x24xbf16>, vector<49x24xf32> -> vector<49x24xf32>
    %70 = arith.truncf %69 : vector<49x24xf32> to vector<49x24xbf16>
    %c7_61 = arith.constant 7 : index
    %c0_62 = arith.constant 0 : index
    %c0_63 = arith.constant 0 : index
    %71 = vector.load %arg5[%c7_61, %c0_62, %c0_63] : memref<9x24x32xbf16, #tpu.memory_space<vmem>>, vector<1x24x32xbf16>
    %72 = vector.shape_cast %71 : vector<1x24x32xbf16> to vector<24x32xbf16>
    %cst_64 = arith.constant dense<0.000000e+00> : vector<49x32xf32>
    %73 = tpu.matmul %70, %72, %cst_64 {dimension_numbers = #tpu.dot_dimension_numbers<[1], [0], [0], [1], [0, 0, 1, 1], [], []>} : vector<49x24xbf16>, vector<24x32xbf16>, vector<49x32xf32> -> vector<49x32xf32>
    %74 = arith.addf %66, %73 : vector<49x32xf32>
    %c8 = arith.constant 8 : index
    %c0_65 = arith.constant 0 : index
    %c0_66 = arith.constant 0 : index
    %75 = vector.load %arg4[%c8, %c0_65, %c0_66] : memref<9x49x196xbf16, #tpu.memory_space<vmem>>, vector<1x49x196xbf16>
    %76 = vector.shape_cast %75 : vector<1x49x196xbf16> to vector<49x196xbf16>
    %cst_67 = arith.constant dense<0.000000e+00> : vector<49x24xf32>
    %77 = tpu.matmul %76, %9, %cst_67 {dimension_numbers = #tpu.dot_dimension_numbers<[1], [0], [0], [1], [0, 0, 1, 1], [], []>} : vector<49x196xbf16>, vector<196x24xbf16>, vector<49x24xf32> -> vector<49x24xf32>
    %78 = arith.truncf %77 : vector<49x24xf32> to vector<49x24xbf16>
    %c8_68 = arith.constant 8 : index
    %c0_69 = arith.constant 0 : index
    %c0_70 = arith.constant 0 : index
    %79 = vector.load %arg5[%c8_68, %c0_69, %c0_70] : memref<9x24x32xbf16, #tpu.memory_space<vmem>>, vector<1x24x32xbf16>
    %80 = vector.shape_cast %79 : vector<1x24x32xbf16> to vector<24x32xbf16>
    %cst_71 = arith.constant dense<0.000000e+00> : vector<49x32xf32>
    %81 = tpu.matmul %78, %80, %cst_71 {dimension_numbers = #tpu.dot_dimension_numbers<[1], [0], [0], [1], [0, 0, 1, 1], [], []>} : vector<49x24xbf16>, vector<24x32xbf16>, vector<49x32xf32> -> vector<49x32xf32>
    %82 = arith.addf %74, %81 : vector<49x32xf32>
    %c0_72 = arith.constant 0 : index
    %c0_73 = arith.constant 0 : index
    %83 = vector.load %arg6[%c0_72, %c0_73] : memref<1x32xf32, #tpu.memory_space<vmem>>, vector<1x32xf32>
    %84 = vector.broadcast %83 : vector<1x32xf32> to vector<49x32xf32>
    %85 = arith.addf %82, %84 : vector<49x32xf32>
    %cst_74 = arith.constant 0.000000e+00 : f32
    %86 = vector.broadcast %cst_74 : f32 to vector<49x32xf32>
    %87 = arith.maximumf %85, %86 : vector<49x32xf32>
    %88 = arith.truncf %87 : vector<49x32xf32> to vector<49x32xbf16>
    %cst_75 = arith.constant 0.000000e+00 : f32
    %89 = vector.broadcast %cst_75 : f32 to vector<25x48xf32>
    %c0_76 = arith.constant 0 : index
    %c0_77 = arith.constant 0 : index
    %c0_78 = arith.constant 0 : index
    %90 = vector.load %arg7[%c0_76, %c0_77, %c0_78] : memref<9x25x49xbf16, #tpu.memory_space<vmem>>, vector<1x25x49xbf16>
    %91 = vector.shape_cast %90 : vector<1x25x49xbf16> to vector<25x49xbf16>
    %cst_79 = arith.constant dense<0.000000e+00> : vector<25x32xf32>
    %92 = tpu.matmul %91, %88, %cst_79 {dimension_numbers = #tpu.dot_dimension_numbers<[1], [0], [0], [1], [0, 0, 1, 1], [], []>} : vector<25x49xbf16>, vector<49x32xbf16>, vector<25x32xf32> -> vector<25x32xf32>
    %93 = arith.truncf %92 : vector<25x32xf32> to vector<25x32xbf16>
    %c0_80 = arith.constant 0 : index
    %c0_81 = arith.constant 0 : index
    %c0_82 = arith.constant 0 : index
    %94 = vector.load %arg8[%c0_80, %c0_81, %c0_82] : memref<9x32x48xbf16, #tpu.memory_space<vmem>>, vector<1x32x48xbf16>
    %95 = vector.shape_cast %94 : vector<1x32x48xbf16> to vector<32x48xbf16>
    %cst_83 = arith.constant dense<0.000000e+00> : vector<25x48xf32>
    %96 = tpu.matmul %93, %95, %cst_83 {dimension_numbers = #tpu.dot_dimension_numbers<[1], [0], [0], [1], [0, 0, 1, 1], [], []>} : vector<25x32xbf16>, vector<32x48xbf16>, vector<25x48xf32> -> vector<25x48xf32>
    %97 = arith.addf %89, %96 : vector<25x48xf32>
    %c1_84 = arith.constant 1 : index
    %c0_85 = arith.constant 0 : index
    %c0_86 = arith.constant 0 : index
    %98 = vector.load %arg7[%c1_84, %c0_85, %c0_86] : memref<9x25x49xbf16, #tpu.memory_space<vmem>>, vector<1x25x49xbf16>
    %99 = vector.shape_cast %98 : vector<1x25x49xbf16> to vector<25x49xbf16>
    %cst_87 = arith.constant dense<0.000000e+00> : vector<25x32xf32>
    %100 = tpu.matmul %99, %88, %cst_87 {dimension_numbers = #tpu.dot_dimension_numbers<[1], [0], [0], [1], [0, 0, 1, 1], [], []>} : vector<25x49xbf16>, vector<49x32xbf16>, vector<25x32xf32> -> vector<25x32xf32>
    %101 = arith.truncf %100 : vector<25x32xf32> to vector<25x32xbf16>
    %c1_88 = arith.constant 1 : index
    %c0_89 = arith.constant 0 : index
    %c0_90 = arith.constant 0 : index
    %102 = vector.load %arg8[%c1_88, %c0_89, %c0_90] : memref<9x32x48xbf16, #tpu.memory_space<vmem>>, vector<1x32x48xbf16>
    %103 = vector.shape_cast %102 : vector<1x32x48xbf16> to vector<32x48xbf16>
    %cst_91 = arith.constant dense<0.000000e+00> : vector<25x48xf32>
    %104 = tpu.matmul %101, %103, %cst_91 {dimension_numbers = #tpu.dot_dimension_numbers<[1], [0], [0], [1], [0, 0, 1, 1], [], []>} : vector<25x32xbf16>, vector<32x48xbf16>, vector<25x48xf32> -> vector<25x48xf32>
    %105 = arith.addf %97, %104 : vector<25x48xf32>
    %c2_92 = arith.constant 2 : index
    %c0_93 = arith.constant 0 : index
    %c0_94 = arith.constant 0 : index
    %106 = vector.load %arg7[%c2_92, %c0_93, %c0_94] : memref<9x25x49xbf16, #tpu.memory_space<vmem>>, vector<1x25x49xbf16>
    %107 = vector.shape_cast %106 : vector<1x25x49xbf16> to vector<25x49xbf16>
    %cst_95 = arith.constant dense<0.000000e+00> : vector<25x32xf32>
    %108 = tpu.matmul %107, %88, %cst_95 {dimension_numbers = #tpu.dot_dimension_numbers<[1], [0], [0], [1], [0, 0, 1, 1], [], []>} : vector<25x49xbf16>, vector<49x32xbf16>, vector<25x32xf32> -> vector<25x32xf32>
    %109 = arith.truncf %108 : vector<25x32xf32> to vector<25x32xbf16>
    %c2_96 = arith.constant 2 : index
    %c0_97 = arith.constant 0 : index
    %c0_98 = arith.constant 0 : index
    %110 = vector.load %arg8[%c2_96, %c0_97, %c0_98] : memref<9x32x48xbf16, #tpu.memory_space<vmem>>, vector<1x32x48xbf16>
    %111 = vector.shape_cast %110 : vector<1x32x48xbf16> to vector<32x48xbf16>
    %cst_99 = arith.constant dense<0.000000e+00> : vector<25x48xf32>
    %112 = tpu.matmul %109, %111, %cst_99 {dimension_numbers = #tpu.dot_dimension_numbers<[1], [0], [0], [1], [0, 0, 1, 1], [], []>} : vector<25x32xbf16>, vector<32x48xbf16>, vector<25x48xf32> -> vector<25x48xf32>
    %113 = arith.addf %105, %112 : vector<25x48xf32>
    %c3_100 = arith.constant 3 : index
    %c0_101 = arith.constant 0 : index
    %c0_102 = arith.constant 0 : index
    %114 = vector.load %arg7[%c3_100, %c0_101, %c0_102] : memref<9x25x49xbf16, #tpu.memory_space<vmem>>, vector<1x25x49xbf16>
    %115 = vector.shape_cast %114 : vector<1x25x49xbf16> to vector<25x49xbf16>
    %cst_103 = arith.constant dense<0.000000e+00> : vector<25x32xf32>
    %116 = tpu.matmul %115, %88, %cst_103 {dimension_numbers = #tpu.dot_dimension_numbers<[1], [0], [0], [1], [0, 0, 1, 1], [], []>} : vector<25x49xbf16>, vector<49x32xbf16>, vector<25x32xf32> -> vector<25x32xf32>
    %117 = arith.truncf %116 : vector<25x32xf32> to vector<25x32xbf16>
    %c3_104 = arith.constant 3 : index
    %c0_105 = arith.constant 0 : index
    %c0_106 = arith.constant 0 : index
    %118 = vector.load %arg8[%c3_104, %c0_105, %c0_106] : memref<9x32x48xbf16, #tpu.memory_space<vmem>>, vector<1x32x48xbf16>
    %119 = vector.shape_cast %118 : vector<1x32x48xbf16> to vector<32x48xbf16>
    %cst_107 = arith.constant dense<0.000000e+00> : vector<25x48xf32>
    %120 = tpu.matmul %117, %119, %cst_107 {dimension_numbers = #tpu.dot_dimension_numbers<[1], [0], [0], [1], [0, 0, 1, 1], [], []>} : vector<25x32xbf16>, vector<32x48xbf16>, vector<25x48xf32> -> vector<25x48xf32>
    %121 = arith.addf %113, %120 : vector<25x48xf32>
    %c4_108 = arith.constant 4 : index
    %c0_109 = arith.constant 0 : index
    %c0_110 = arith.constant 0 : index
    %122 = vector.load %arg7[%c4_108, %c0_109, %c0_110] : memref<9x25x49xbf16, #tpu.memory_space<vmem>>, vector<1x25x49xbf16>
    %123 = vector.shape_cast %122 : vector<1x25x49xbf16> to vector<25x49xbf16>
    %cst_111 = arith.constant dense<0.000000e+00> : vector<25x32xf32>
    %124 = tpu.matmul %123, %88, %cst_111 {dimension_numbers = #tpu.dot_dimension_numbers<[1], [0], [0], [1], [0, 0, 1, 1], [], []>} : vector<25x49xbf16>, vector<49x32xbf16>, vector<25x32xf32> -> vector<25x32xf32>
    %125 = arith.truncf %124 : vector<25x32xf32> to vector<25x32xbf16>
    %c4_112 = arith.constant 4 : index
    %c0_113 = arith.constant 0 : index
    %c0_114 = arith.constant 0 : index
    %126 = vector.load %arg8[%c4_112, %c0_113, %c0_114] : memref<9x32x48xbf16, #tpu.memory_space<vmem>>, vector<1x32x48xbf16>
    %127 = vector.shape_cast %126 : vector<1x32x48xbf16> to vector<32x48xbf16>
    %cst_115 = arith.constant dense<0.000000e+00> : vector<25x48xf32>
    %128 = tpu.matmul %125, %127, %cst_115 {dimension_numbers = #tpu.dot_dimension_numbers<[1], [0], [0], [1], [0, 0, 1, 1], [], []>} : vector<25x32xbf16>, vector<32x48xbf16>, vector<25x48xf32> -> vector<25x48xf32>
    %129 = arith.addf %121, %128 : vector<25x48xf32>
    %c5_116 = arith.constant 5 : index
    %c0_117 = arith.constant 0 : index
    %c0_118 = arith.constant 0 : index
    %130 = vector.load %arg7[%c5_116, %c0_117, %c0_118] : memref<9x25x49xbf16, #tpu.memory_space<vmem>>, vector<1x25x49xbf16>
    %131 = vector.shape_cast %130 : vector<1x25x49xbf16> to vector<25x49xbf16>
    %cst_119 = arith.constant dense<0.000000e+00> : vector<25x32xf32>
    %132 = tpu.matmul %131, %88, %cst_119 {dimension_numbers = #tpu.dot_dimension_numbers<[1], [0], [0], [1], [0, 0, 1, 1], [], []>} : vector<25x49xbf16>, vector<49x32xbf16>, vector<25x32xf32> -> vector<25x32xf32>
    %133 = arith.truncf %132 : vector<25x32xf32> to vector<25x32xbf16>
    %c5_120 = arith.constant 5 : index
    %c0_121 = arith.constant 0 : index
    %c0_122 = arith.constant 0 : index
    %134 = vector.load %arg8[%c5_120, %c0_121, %c0_122] : memref<9x32x48xbf16, #tpu.memory_space<vmem>>, vector<1x32x48xbf16>
    %135 = vector.shape_cast %134 : vector<1x32x48xbf16> to vector<32x48xbf16>
    %cst_123 = arith.constant dense<0.000000e+00> : vector<25x48xf32>
    %136 = tpu.matmul %133, %135, %cst_123 {dimension_numbers = #tpu.dot_dimension_numbers<[1], [0], [0], [1], [0, 0, 1, 1], [], []>} : vector<25x32xbf16>, vector<32x48xbf16>, vector<25x48xf32> -> vector<25x48xf32>
    %137 = arith.addf %129, %136 : vector<25x48xf32>
    %c6_124 = arith.constant 6 : index
    %c0_125 = arith.constant 0 : index
    %c0_126 = arith.constant 0 : index
    %138 = vector.load %arg7[%c6_124, %c0_125, %c0_126] : memref<9x25x49xbf16, #tpu.memory_space<vmem>>, vector<1x25x49xbf16>
    %139 = vector.shape_cast %138 : vector<1x25x49xbf16> to vector<25x49xbf16>
    %cst_127 = arith.constant dense<0.000000e+00> : vector<25x32xf32>
    %140 = tpu.matmul %139, %88, %cst_127 {dimension_numbers = #tpu.dot_dimension_numbers<[1], [0], [0], [1], [0, 0, 1, 1], [], []>} : vector<25x49xbf16>, vector<49x32xbf16>, vector<25x32xf32> -> vector<25x32xf32>
    %141 = arith.truncf %140 : vector<25x32xf32> to vector<25x32xbf16>
    %c6_128 = arith.constant 6 : index
    %c0_129 = arith.constant 0 : index
    %c0_130 = arith.constant 0 : index
    %142 = vector.load %arg8[%c6_128, %c0_129, %c0_130] : memref<9x32x48xbf16, #tpu.memory_space<vmem>>, vector<1x32x48xbf16>
    %143 = vector.shape_cast %142 : vector<1x32x48xbf16> to vector<32x48xbf16>
    %cst_131 = arith.constant dense<0.000000e+00> : vector<25x48xf32>
    %144 = tpu.matmul %141, %143, %cst_131 {dimension_numbers = #tpu.dot_dimension_numbers<[1], [0], [0], [1], [0, 0, 1, 1], [], []>} : vector<25x32xbf16>, vector<32x48xbf16>, vector<25x48xf32> -> vector<25x48xf32>
    %145 = arith.addf %137, %144 : vector<25x48xf32>
    %c7_132 = arith.constant 7 : index
    %c0_133 = arith.constant 0 : index
    %c0_134 = arith.constant 0 : index
    %146 = vector.load %arg7[%c7_132, %c0_133, %c0_134] : memref<9x25x49xbf16, #tpu.memory_space<vmem>>, vector<1x25x49xbf16>
    %147 = vector.shape_cast %146 : vector<1x25x49xbf16> to vector<25x49xbf16>
    %cst_135 = arith.constant dense<0.000000e+00> : vector<25x32xf32>
    %148 = tpu.matmul %147, %88, %cst_135 {dimension_numbers = #tpu.dot_dimension_numbers<[1], [0], [0], [1], [0, 0, 1, 1], [], []>} : vector<25x49xbf16>, vector<49x32xbf16>, vector<25x32xf32> -> vector<25x32xf32>
    %149 = arith.truncf %148 : vector<25x32xf32> to vector<25x32xbf16>
    %c7_136 = arith.constant 7 : index
    %c0_137 = arith.constant 0 : index
    %c0_138 = arith.constant 0 : index
    %150 = vector.load %arg8[%c7_136, %c0_137, %c0_138] : memref<9x32x48xbf16, #tpu.memory_space<vmem>>, vector<1x32x48xbf16>
    %151 = vector.shape_cast %150 : vector<1x32x48xbf16> to vector<32x48xbf16>
    %cst_139 = arith.constant dense<0.000000e+00> : vector<25x48xf32>
    %152 = tpu.matmul %149, %151, %cst_139 {dimension_numbers = #tpu.dot_dimension_numbers<[1], [0], [0], [1], [0, 0, 1, 1], [], []>} : vector<25x32xbf16>, vector<32x48xbf16>, vector<25x48xf32> -> vector<25x48xf32>
    %153 = arith.addf %145, %152 : vector<25x48xf32>
    %c8_140 = arith.constant 8 : index
    %c0_141 = arith.constant 0 : index
    %c0_142 = arith.constant 0 : index
    %154 = vector.load %arg7[%c8_140, %c0_141, %c0_142] : memref<9x25x49xbf16, #tpu.memory_space<vmem>>, vector<1x25x49xbf16>
    %155 = vector.shape_cast %154 : vector<1x25x49xbf16> to vector<25x49xbf16>
    %cst_143 = arith.constant dense<0.000000e+00> : vector<25x32xf32>
    %156 = tpu.matmul %155, %88, %cst_143 {dimension_numbers = #tpu.dot_dimension_numbers<[1], [0], [0], [1], [0, 0, 1, 1], [], []>} : vector<25x49xbf16>, vector<49x32xbf16>, vector<25x32xf32> -> vector<25x32xf32>
    %157 = arith.truncf %156 : vector<25x32xf32> to vector<25x32xbf16>
    %c8_144 = arith.constant 8 : index
    %c0_145 = arith.constant 0 : index
    %c0_146 = arith.constant 0 : index
    %158 = vector.load %arg8[%c8_144, %c0_145, %c0_146] : memref<9x32x48xbf16, #tpu.memory_space<vmem>>, vector<1x32x48xbf16>
    %159 = vector.shape_cast %158 : vector<1x32x48xbf16> to vector<32x48xbf16>
    %cst_147 = arith.constant dense<0.000000e+00> : vector<25x48xf32>
    %160 = tpu.matmul %157, %159, %cst_147 {dimension_numbers = #tpu.dot_dimension_numbers<[1], [0], [0], [1], [0, 0, 1, 1], [], []>} : vector<25x32xbf16>, vector<32x48xbf16>, vector<25x48xf32> -> vector<25x48xf32>
    %161 = arith.addf %153, %160 : vector<25x48xf32>
    %c0_148 = arith.constant 0 : index
    %c0_149 = arith.constant 0 : index
    %162 = vector.load %arg9[%c0_148, %c0_149] : memref<1x48xf32, #tpu.memory_space<vmem>>, vector<1x48xf32>
    %163 = vector.broadcast %162 : vector<1x48xf32> to vector<25x48xf32>
    %164 = arith.addf %161, %163 : vector<25x48xf32>
    %cst_150 = arith.constant 0.000000e+00 : f32
    %165 = vector.broadcast %cst_150 : f32 to vector<25x48xf32>
    %166 = arith.maximumf %164, %165 : vector<25x48xf32>
    %167 = arith.truncf %166 : vector<25x48xf32> to vector<25x48xbf16>
    %cst_151 = arith.constant 0.000000e+00 : f32
    %168 = vector.broadcast %cst_151 : f32 to vector<1x512xf32>
    %169 = vector.extract_strided_slice %167 {offsets = [0, 0], sizes = [1, 48], strides = [1, 1]} : vector<25x48xbf16> to vector<1x48xbf16>
    %c0_152 = arith.constant 0 : index
    %c0_153 = arith.constant 0 : index
    %c0_154 = arith.constant 0 : index
    %170 = vector.load %arg10[%c0_152, %c0_153, %c0_154] : memref<25x48x512xbf16, #tpu.memory_space<vmem>>, vector<1x48x512xbf16>
    %171 = vector.shape_cast %170 : vector<1x48x512xbf16> to vector<48x512xbf16>
    %cst_155 = arith.constant dense<0.000000e+00> : vector<1x512xf32>
    %172 = tpu.matmul %169, %171, %cst_155 {dimension_numbers = #tpu.dot_dimension_numbers<[1], [0], [0], [1], [0, 0, 1, 1], [], []>} : vector<1x48xbf16>, vector<48x512xbf16>, vector<1x512xf32> -> vector<1x512xf32>
    %173 = arith.addf %168, %172 : vector<1x512xf32>
    %174 = vector.extract_strided_slice %167 {offsets = [1, 0], sizes = [1, 48], strides = [1, 1]} : vector<25x48xbf16> to vector<1x48xbf16>
    %c1_156 = arith.constant 1 : index
    %c0_157 = arith.constant 0 : index
    %c0_158 = arith.constant 0 : index
    %175 = vector.load %arg10[%c1_156, %c0_157, %c0_158] : memref<25x48x512xbf16, #tpu.memory_space<vmem>>, vector<1x48x512xbf16>
    %176 = vector.shape_cast %175 : vector<1x48x512xbf16> to vector<48x512xbf16>
    %cst_159 = arith.constant dense<0.000000e+00> : vector<1x512xf32>
    %177 = tpu.matmul %174, %176, %cst_159 {dimension_numbers = #tpu.dot_dimension_numbers<[1], [0], [0], [1], [0, 0, 1, 1], [], []>} : vector<1x48xbf16>, vector<48x512xbf16>, vector<1x512xf32> -> vector<1x512xf32>
    %178 = arith.addf %173, %177 : vector<1x512xf32>
    %179 = vector.extract_strided_slice %167 {offsets = [2, 0], sizes = [1, 48], strides = [1, 1]} : vector<25x48xbf16> to vector<1x48xbf16>
    %c2_160 = arith.constant 2 : index
    %c0_161 = arith.constant 0 : index
    %c0_162 = arith.constant 0 : index
    %180 = vector.load %arg10[%c2_160, %c0_161, %c0_162] : memref<25x48x512xbf16, #tpu.memory_space<vmem>>, vector<1x48x512xbf16>
    %181 = vector.shape_cast %180 : vector<1x48x512xbf16> to vector<48x512xbf16>
    %cst_163 = arith.constant dense<0.000000e+00> : vector<1x512xf32>
    %182 = tpu.matmul %179, %181, %cst_163 {dimension_numbers = #tpu.dot_dimension_numbers<[1], [0], [0], [1], [0, 0, 1, 1], [], []>} : vector<1x48xbf16>, vector<48x512xbf16>, vector<1x512xf32> -> vector<1x512xf32>
    %183 = arith.addf %178, %182 : vector<1x512xf32>
    %184 = vector.extract_strided_slice %167 {offsets = [3, 0], sizes = [1, 48], strides = [1, 1]} : vector<25x48xbf16> to vector<1x48xbf16>
    %c3_164 = arith.constant 3 : index
    %c0_165 = arith.constant 0 : index
    %c0_166 = arith.constant 0 : index
    %185 = vector.load %arg10[%c3_164, %c0_165, %c0_166] : memref<25x48x512xbf16, #tpu.memory_space<vmem>>, vector<1x48x512xbf16>
    %186 = vector.shape_cast %185 : vector<1x48x512xbf16> to vector<48x512xbf16>
    %cst_167 = arith.constant dense<0.000000e+00> : vector<1x512xf32>
    %187 = tpu.matmul %184, %186, %cst_167 {dimension_numbers = #tpu.dot_dimension_numbers<[1], [0], [0], [1], [0, 0, 1, 1], [], []>} : vector<1x48xbf16>, vector<48x512xbf16>, vector<1x512xf32> -> vector<1x512xf32>
    %188 = arith.addf %183, %187 : vector<1x512xf32>
    %189 = vector.extract_strided_slice %167 {offsets = [4, 0], sizes = [1, 48], strides = [1, 1]} : vector<25x48xbf16> to vector<1x48xbf16>
    %c4_168 = arith.constant 4 : index
    %c0_169 = arith.constant 0 : index
    %c0_170 = arith.constant 0 : index
    %190 = vector.load %arg10[%c4_168, %c0_169, %c0_170] : memref<25x48x512xbf16, #tpu.memory_space<vmem>>, vector<1x48x512xbf16>
    %191 = vector.shape_cast %190 : vector<1x48x512xbf16> to vector<48x512xbf16>
    %cst_171 = arith.constant dense<0.000000e+00> : vector<1x512xf32>
    %192 = tpu.matmul %189, %191, %cst_171 {dimension_numbers = #tpu.dot_dimension_numbers<[1], [0], [0], [1], [0, 0, 1, 1], [], []>} : vector<1x48xbf16>, vector<48x512xbf16>, vector<1x512xf32> -> vector<1x512xf32>
    %193 = arith.addf %188, %192 : vector<1x512xf32>
    %194 = vector.extract_strided_slice %167 {offsets = [5, 0], sizes = [1, 48], strides = [1, 1]} : vector<25x48xbf16> to vector<1x48xbf16>
    %c5_172 = arith.constant 5 : index
    %c0_173 = arith.constant 0 : index
    %c0_174 = arith.constant 0 : index
    %195 = vector.load %arg10[%c5_172, %c0_173, %c0_174] : memref<25x48x512xbf16, #tpu.memory_space<vmem>>, vector<1x48x512xbf16>
    %196 = vector.shape_cast %195 : vector<1x48x512xbf16> to vector<48x512xbf16>
    %cst_175 = arith.constant dense<0.000000e+00> : vector<1x512xf32>
    %197 = tpu.matmul %194, %196, %cst_175 {dimension_numbers = #tpu.dot_dimension_numbers<[1], [0], [0], [1], [0, 0, 1, 1], [], []>} : vector<1x48xbf16>, vector<48x512xbf16>, vector<1x512xf32> -> vector<1x512xf32>
    %198 = arith.addf %193, %197 : vector<1x512xf32>
    %199 = vector.extract_strided_slice %167 {offsets = [6, 0], sizes = [1, 48], strides = [1, 1]} : vector<25x48xbf16> to vector<1x48xbf16>
    %c6_176 = arith.constant 6 : index
    %c0_177 = arith.constant 0 : index
    %c0_178 = arith.constant 0 : index
    %200 = vector.load %arg10[%c6_176, %c0_177, %c0_178] : memref<25x48x512xbf16, #tpu.memory_space<vmem>>, vector<1x48x512xbf16>
    %201 = vector.shape_cast %200 : vector<1x48x512xbf16> to vector<48x512xbf16>
    %cst_179 = arith.constant dense<0.000000e+00> : vector<1x512xf32>
    %202 = tpu.matmul %199, %201, %cst_179 {dimension_numbers = #tpu.dot_dimension_numbers<[1], [0], [0], [1], [0, 0, 1, 1], [], []>} : vector<1x48xbf16>, vector<48x512xbf16>, vector<1x512xf32> -> vector<1x512xf32>
    %203 = arith.addf %198, %202 : vector<1x512xf32>
    %204 = vector.extract_strided_slice %167 {offsets = [7, 0], sizes = [1, 48], strides = [1, 1]} : vector<25x48xbf16> to vector<1x48xbf16>
    %c7_180 = arith.constant 7 : index
    %c0_181 = arith.constant 0 : index
    %c0_182 = arith.constant 0 : index
    %205 = vector.load %arg10[%c7_180, %c0_181, %c0_182] : memref<25x48x512xbf16, #tpu.memory_space<vmem>>, vector<1x48x512xbf16>
    %206 = vector.shape_cast %205 : vector<1x48x512xbf16> to vector<48x512xbf16>
    %cst_183 = arith.constant dense<0.000000e+00> : vector<1x512xf32>
    %207 = tpu.matmul %204, %206, %cst_183 {dimension_numbers = #tpu.dot_dimension_numbers<[1], [0], [0], [1], [0, 0, 1, 1], [], []>} : vector<1x48xbf16>, vector<48x512xbf16>, vector<1x512xf32> -> vector<1x512xf32>
    %208 = arith.addf %203, %207 : vector<1x512xf32>
    %209 = vector.extract_strided_slice %167 {offsets = [8, 0], sizes = [1, 48], strides = [1, 1]} : vector<25x48xbf16> to vector<1x48xbf16>
    %c8_184 = arith.constant 8 : index
    %c0_185 = arith.constant 0 : index
    %c0_186 = arith.constant 0 : index
    %210 = vector.load %arg10[%c8_184, %c0_185, %c0_186] : memref<25x48x512xbf16, #tpu.memory_space<vmem>>, vector<1x48x512xbf16>
    %211 = vector.shape_cast %210 : vector<1x48x512xbf16> to vector<48x512xbf16>
    %cst_187 = arith.constant dense<0.000000e+00> : vector<1x512xf32>
    %212 = tpu.matmul %209, %211, %cst_187 {dimension_numbers = #tpu.dot_dimension_numbers<[1], [0], [0], [1], [0, 0, 1, 1], [], []>} : vector<1x48xbf16>, vector<48x512xbf16>, vector<1x512xf32> -> vector<1x512xf32>
    %213 = arith.addf %208, %212 : vector<1x512xf32>
    %214 = vector.extract_strided_slice %167 {offsets = [9, 0], sizes = [1, 48], strides = [1, 1]} : vector<25x48xbf16> to vector<1x48xbf16>
    %c9 = arith.constant 9 : index
    %c0_188 = arith.constant 0 : index
    %c0_189 = arith.constant 0 : index
    %215 = vector.load %arg10[%c9, %c0_188, %c0_189] : memref<25x48x512xbf16, #tpu.memory_space<vmem>>, vector<1x48x512xbf16>
    %216 = vector.shape_cast %215 : vector<1x48x512xbf16> to vector<48x512xbf16>
    %cst_190 = arith.constant dense<0.000000e+00> : vector<1x512xf32>
    %217 = tpu.matmul %214, %216, %cst_190 {dimension_numbers = #tpu.dot_dimension_numbers<[1], [0], [0], [1], [0, 0, 1, 1], [], []>} : vector<1x48xbf16>, vector<48x512xbf16>, vector<1x512xf32> -> vector<1x512xf32>
    %218 = arith.addf %213, %217 : vector<1x512xf32>
    %219 = vector.extract_strided_slice %167 {offsets = [10, 0], sizes = [1, 48], strides = [1, 1]} : vector<25x48xbf16> to vector<1x48xbf16>
    %c10 = arith.constant 10 : index
    %c0_191 = arith.constant 0 : index
    %c0_192 = arith.constant 0 : index
    %220 = vector.load %arg10[%c10, %c0_191, %c0_192] : memref<25x48x512xbf16, #tpu.memory_space<vmem>>, vector<1x48x512xbf16>
    %221 = vector.shape_cast %220 : vector<1x48x512xbf16> to vector<48x512xbf16>
    %cst_193 = arith.constant dense<0.000000e+00> : vector<1x512xf32>
    %222 = tpu.matmul %219, %221, %cst_193 {dimension_numbers = #tpu.dot_dimension_numbers<[1], [0], [0], [1], [0, 0, 1, 1], [], []>} : vector<1x48xbf16>, vector<48x512xbf16>, vector<1x512xf32> -> vector<1x512xf32>
    %223 = arith.addf %218, %222 : vector<1x512xf32>
    %224 = vector.extract_strided_slice %167 {offsets = [11, 0], sizes = [1, 48], strides = [1, 1]} : vector<25x48xbf16> to vector<1x48xbf16>
    %c11 = arith.constant 11 : index
    %c0_194 = arith.constant 0 : index
    %c0_195 = arith.constant 0 : index
    %225 = vector.load %arg10[%c11, %c0_194, %c0_195] : memref<25x48x512xbf16, #tpu.memory_space<vmem>>, vector<1x48x512xbf16>
    %226 = vector.shape_cast %225 : vector<1x48x512xbf16> to vector<48x512xbf16>
    %cst_196 = arith.constant dense<0.000000e+00> : vector<1x512xf32>
    %227 = tpu.matmul %224, %226, %cst_196 {dimension_numbers = #tpu.dot_dimension_numbers<[1], [0], [0], [1], [0, 0, 1, 1], [], []>} : vector<1x48xbf16>, vector<48x512xbf16>, vector<1x512xf32> -> vector<1x512xf32>
    %228 = arith.addf %223, %227 : vector<1x512xf32>
    %229 = vector.extract_strided_slice %167 {offsets = [12, 0], sizes = [1, 48], strides = [1, 1]} : vector<25x48xbf16> to vector<1x48xbf16>
    %c12 = arith.constant 12 : index
    %c0_197 = arith.constant 0 : index
    %c0_198 = arith.constant 0 : index
    %230 = vector.load %arg10[%c12, %c0_197, %c0_198] : memref<25x48x512xbf16, #tpu.memory_space<vmem>>, vector<1x48x512xbf16>
    %231 = vector.shape_cast %230 : vector<1x48x512xbf16> to vector<48x512xbf16>
    %cst_199 = arith.constant dense<0.000000e+00> : vector<1x512xf32>
    %232 = tpu.matmul %229, %231, %cst_199 {dimension_numbers = #tpu.dot_dimension_numbers<[1], [0], [0], [1], [0, 0, 1, 1], [], []>} : vector<1x48xbf16>, vector<48x512xbf16>, vector<1x512xf32> -> vector<1x512xf32>
    %233 = arith.addf %228, %232 : vector<1x512xf32>
    %234 = vector.extract_strided_slice %167 {offsets = [13, 0], sizes = [1, 48], strides = [1, 1]} : vector<25x48xbf16> to vector<1x48xbf16>
    %c13 = arith.constant 13 : index
    %c0_200 = arith.constant 0 : index
    %c0_201 = arith.constant 0 : index
    %235 = vector.load %arg10[%c13, %c0_200, %c0_201] : memref<25x48x512xbf16, #tpu.memory_space<vmem>>, vector<1x48x512xbf16>
    %236 = vector.shape_cast %235 : vector<1x48x512xbf16> to vector<48x512xbf16>
    %cst_202 = arith.constant dense<0.000000e+00> : vector<1x512xf32>
    %237 = tpu.matmul %234, %236, %cst_202 {dimension_numbers = #tpu.dot_dimension_numbers<[1], [0], [0], [1], [0, 0, 1, 1], [], []>} : vector<1x48xbf16>, vector<48x512xbf16>, vector<1x512xf32> -> vector<1x512xf32>
    %238 = arith.addf %233, %237 : vector<1x512xf32>
    %239 = vector.extract_strided_slice %167 {offsets = [14, 0], sizes = [1, 48], strides = [1, 1]} : vector<25x48xbf16> to vector<1x48xbf16>
    %c14 = arith.constant 14 : index
    %c0_203 = arith.constant 0 : index
    %c0_204 = arith.constant 0 : index
    %240 = vector.load %arg10[%c14, %c0_203, %c0_204] : memref<25x48x512xbf16, #tpu.memory_space<vmem>>, vector<1x48x512xbf16>
    %241 = vector.shape_cast %240 : vector<1x48x512xbf16> to vector<48x512xbf16>
    %cst_205 = arith.constant dense<0.000000e+00> : vector<1x512xf32>
    %242 = tpu.matmul %239, %241, %cst_205 {dimension_numbers = #tpu.dot_dimension_numbers<[1], [0], [0], [1], [0, 0, 1, 1], [], []>} : vector<1x48xbf16>, vector<48x512xbf16>, vector<1x512xf32> -> vector<1x512xf32>
    %243 = arith.addf %238, %242 : vector<1x512xf32>
    %244 = vector.extract_strided_slice %167 {offsets = [15, 0], sizes = [1, 48], strides = [1, 1]} : vector<25x48xbf16> to vector<1x48xbf16>
    %c15 = arith.constant 15 : index
    %c0_206 = arith.constant 0 : index
    %c0_207 = arith.constant 0 : index
    %245 = vector.load %arg10[%c15, %c0_206, %c0_207] : memref<25x48x512xbf16, #tpu.memory_space<vmem>>, vector<1x48x512xbf16>
    %246 = vector.shape_cast %245 : vector<1x48x512xbf16> to vector<48x512xbf16>
    %cst_208 = arith.constant dense<0.000000e+00> : vector<1x512xf32>
    %247 = tpu.matmul %244, %246, %cst_208 {dimension_numbers = #tpu.dot_dimension_numbers<[1], [0], [0], [1], [0, 0, 1, 1], [], []>} : vector<1x48xbf16>, vector<48x512xbf16>, vector<1x512xf32> -> vector<1x512xf32>
    %248 = arith.addf %243, %247 : vector<1x512xf32>
    %249 = vector.extract_strided_slice %167 {offsets = [16, 0], sizes = [1, 48], strides = [1, 1]} : vector<25x48xbf16> to vector<1x48xbf16>
    %c16 = arith.constant 16 : index
    %c0_209 = arith.constant 0 : index
    %c0_210 = arith.constant 0 : index
    %250 = vector.load %arg10[%c16, %c0_209, %c0_210] : memref<25x48x512xbf16, #tpu.memory_space<vmem>>, vector<1x48x512xbf16>
    %251 = vector.shape_cast %250 : vector<1x48x512xbf16> to vector<48x512xbf16>
    %cst_211 = arith.constant dense<0.000000e+00> : vector<1x512xf32>
    %252 = tpu.matmul %249, %251, %cst_211 {dimension_numbers = #tpu.dot_dimension_numbers<[1], [0], [0], [1], [0, 0, 1, 1], [], []>} : vector<1x48xbf16>, vector<48x512xbf16>, vector<1x512xf32> -> vector<1x512xf32>
    %253 = arith.addf %248, %252 : vector<1x512xf32>
    %254 = vector.extract_strided_slice %167 {offsets = [17, 0], sizes = [1, 48], strides = [1, 1]} : vector<25x48xbf16> to vector<1x48xbf16>
    %c17 = arith.constant 17 : index
    %c0_212 = arith.constant 0 : index
    %c0_213 = arith.constant 0 : index
    %255 = vector.load %arg10[%c17, %c0_212, %c0_213] : memref<25x48x512xbf16, #tpu.memory_space<vmem>>, vector<1x48x512xbf16>
    %256 = vector.shape_cast %255 : vector<1x48x512xbf16> to vector<48x512xbf16>
    %cst_214 = arith.constant dense<0.000000e+00> : vector<1x512xf32>
    %257 = tpu.matmul %254, %256, %cst_214 {dimension_numbers = #tpu.dot_dimension_numbers<[1], [0], [0], [1], [0, 0, 1, 1], [], []>} : vector<1x48xbf16>, vector<48x512xbf16>, vector<1x512xf32> -> vector<1x512xf32>
    %258 = arith.addf %253, %257 : vector<1x512xf32>
    %259 = vector.extract_strided_slice %167 {offsets = [18, 0], sizes = [1, 48], strides = [1, 1]} : vector<25x48xbf16> to vector<1x48xbf16>
    %c18 = arith.constant 18 : index
    %c0_215 = arith.constant 0 : index
    %c0_216 = arith.constant 0 : index
    %260 = vector.load %arg10[%c18, %c0_215, %c0_216] : memref<25x48x512xbf16, #tpu.memory_space<vmem>>, vector<1x48x512xbf16>
    %261 = vector.shape_cast %260 : vector<1x48x512xbf16> to vector<48x512xbf16>
    %cst_217 = arith.constant dense<0.000000e+00> : vector<1x512xf32>
    %262 = tpu.matmul %259, %261, %cst_217 {dimension_numbers = #tpu.dot_dimension_numbers<[1], [0], [0], [1], [0, 0, 1, 1], [], []>} : vector<1x48xbf16>, vector<48x512xbf16>, vector<1x512xf32> -> vector<1x512xf32>
    %263 = arith.addf %258, %262 : vector<1x512xf32>
    %264 = vector.extract_strided_slice %167 {offsets = [19, 0], sizes = [1, 48], strides = [1, 1]} : vector<25x48xbf16> to vector<1x48xbf16>
    %c19 = arith.constant 19 : index
    %c0_218 = arith.constant 0 : index
    %c0_219 = arith.constant 0 : index
    %265 = vector.load %arg10[%c19, %c0_218, %c0_219] : memref<25x48x512xbf16, #tpu.memory_space<vmem>>, vector<1x48x512xbf16>
    %266 = vector.shape_cast %265 : vector<1x48x512xbf16> to vector<48x512xbf16>
    %cst_220 = arith.constant dense<0.000000e+00> : vector<1x512xf32>
    %267 = tpu.matmul %264, %266, %cst_220 {dimension_numbers = #tpu.dot_dimension_numbers<[1], [0], [0], [1], [0, 0, 1, 1], [], []>} : vector<1x48xbf16>, vector<48x512xbf16>, vector<1x512xf32> -> vector<1x512xf32>
    %268 = arith.addf %263, %267 : vector<1x512xf32>
    %269 = vector.extract_strided_slice %167 {offsets = [20, 0], sizes = [1, 48], strides = [1, 1]} : vector<25x48xbf16> to vector<1x48xbf16>
    %c20 = arith.constant 20 : index
    %c0_221 = arith.constant 0 : index
    %c0_222 = arith.constant 0 : index
    %270 = vector.load %arg10[%c20, %c0_221, %c0_222] : memref<25x48x512xbf16, #tpu.memory_space<vmem>>, vector<1x48x512xbf16>
    %271 = vector.shape_cast %270 : vector<1x48x512xbf16> to vector<48x512xbf16>
    %cst_223 = arith.constant dense<0.000000e+00> : vector<1x512xf32>
    %272 = tpu.matmul %269, %271, %cst_223 {dimension_numbers = #tpu.dot_dimension_numbers<[1], [0], [0], [1], [0, 0, 1, 1], [], []>} : vector<1x48xbf16>, vector<48x512xbf16>, vector<1x512xf32> -> vector<1x512xf32>
    %273 = arith.addf %268, %272 : vector<1x512xf32>
    %274 = vector.extract_strided_slice %167 {offsets = [21, 0], sizes = [1, 48], strides = [1, 1]} : vector<25x48xbf16> to vector<1x48xbf16>
    %c21 = arith.constant 21 : index
    %c0_224 = arith.constant 0 : index
    %c0_225 = arith.constant 0 : index
    %275 = vector.load %arg10[%c21, %c0_224, %c0_225] : memref<25x48x512xbf16, #tpu.memory_space<vmem>>, vector<1x48x512xbf16>
    %276 = vector.shape_cast %275 : vector<1x48x512xbf16> to vector<48x512xbf16>
    %cst_226 = arith.constant dense<0.000000e+00> : vector<1x512xf32>
    %277 = tpu.matmul %274, %276, %cst_226 {dimension_numbers = #tpu.dot_dimension_numbers<[1], [0], [0], [1], [0, 0, 1, 1], [], []>} : vector<1x48xbf16>, vector<48x512xbf16>, vector<1x512xf32> -> vector<1x512xf32>
    %278 = arith.addf %273, %277 : vector<1x512xf32>
    %279 = vector.extract_strided_slice %167 {offsets = [22, 0], sizes = [1, 48], strides = [1, 1]} : vector<25x48xbf16> to vector<1x48xbf16>
    %c22 = arith.constant 22 : index
    %c0_227 = arith.constant 0 : index
    %c0_228 = arith.constant 0 : index
    %280 = vector.load %arg10[%c22, %c0_227, %c0_228] : memref<25x48x512xbf16, #tpu.memory_space<vmem>>, vector<1x48x512xbf16>
    %281 = vector.shape_cast %280 : vector<1x48x512xbf16> to vector<48x512xbf16>
    %cst_229 = arith.constant dense<0.000000e+00> : vector<1x512xf32>
    %282 = tpu.matmul %279, %281, %cst_229 {dimension_numbers = #tpu.dot_dimension_numbers<[1], [0], [0], [1], [0, 0, 1, 1], [], []>} : vector<1x48xbf16>, vector<48x512xbf16>, vector<1x512xf32> -> vector<1x512xf32>
    %283 = arith.addf %278, %282 : vector<1x512xf32>
    %284 = vector.extract_strided_slice %167 {offsets = [23, 0], sizes = [1, 48], strides = [1, 1]} : vector<25x48xbf16> to vector<1x48xbf16>
    %c23 = arith.constant 23 : index
    %c0_230 = arith.constant 0 : index
    %c0_231 = arith.constant 0 : index
    %285 = vector.load %arg10[%c23, %c0_230, %c0_231] : memref<25x48x512xbf16, #tpu.memory_space<vmem>>, vector<1x48x512xbf16>
    %286 = vector.shape_cast %285 : vector<1x48x512xbf16> to vector<48x512xbf16>
    %cst_232 = arith.constant dense<0.000000e+00> : vector<1x512xf32>
    %287 = tpu.matmul %284, %286, %cst_232 {dimension_numbers = #tpu.dot_dimension_numbers<[1], [0], [0], [1], [0, 0, 1, 1], [], []>} : vector<1x48xbf16>, vector<48x512xbf16>, vector<1x512xf32> -> vector<1x512xf32>
    %288 = arith.addf %283, %287 : vector<1x512xf32>
    %289 = vector.extract_strided_slice %167 {offsets = [24, 0], sizes = [1, 48], strides = [1, 1]} : vector<25x48xbf16> to vector<1x48xbf16>
    %c24 = arith.constant 24 : index
    %c0_233 = arith.constant 0 : index
    %c0_234 = arith.constant 0 : index
    %290 = vector.load %arg10[%c24, %c0_233, %c0_234] : memref<25x48x512xbf16, #tpu.memory_space<vmem>>, vector<1x48x512xbf16>
    %291 = vector.shape_cast %290 : vector<1x48x512xbf16> to vector<48x512xbf16>
    %cst_235 = arith.constant dense<0.000000e+00> : vector<1x512xf32>
    %292 = tpu.matmul %289, %291, %cst_235 {dimension_numbers = #tpu.dot_dimension_numbers<[1], [0], [0], [1], [0, 0, 1, 1], [], []>} : vector<1x48xbf16>, vector<48x512xbf16>, vector<1x512xf32> -> vector<1x512xf32>
    %293 = arith.addf %288, %292 : vector<1x512xf32>
    %c0_236 = arith.constant 0 : index
    %c0_237 = arith.constant 0 : index
    %294 = vector.load %arg11[%c0_236, %c0_237] : memref<1x512xf32, #tpu.memory_space<vmem>>, vector<1x512xf32>
    %295 = arith.addf %293, %294 : vector<1x512xf32>
    %cst_238 = arith.constant 0.000000e+00 : f32
    %296 = vector.broadcast %cst_238 : f32 to vector<1x512xf32>
    %297 = arith.maximumf %295, %296 : vector<1x512xf32>
    %298 = arith.truncf %297 : vector<1x512xf32> to vector<1x512xbf16>
    %c0_239 = arith.constant 0 : index
    %c0_240 = arith.constant 0 : index
    %299 = vector.load %arg12[%c0_239, %c0_240] : memref<512x128xbf16, #tpu.memory_space<vmem>>, vector<512x128xbf16>
    %cst_241 = arith.constant dense<0.000000e+00> : vector<1x128xf32>
    %300 = tpu.matmul %298, %299, %cst_241 {dimension_numbers = #tpu.dot_dimension_numbers<[1], [0], [0], [1], [0, 0, 1, 1], [], []>} : vector<1x512xbf16>, vector<512x128xbf16>, vector<1x128xf32> -> vector<1x128xf32>
    %c0_242 = arith.constant 0 : index
    %c0_243 = arith.constant 0 : index
    %301 = vector.load %arg13[%c0_242, %c0_243] : memref<1x128xf32, #tpu.memory_space<vmem>>, vector<1x128xf32>
    %302 = arith.addf %300, %301 : vector<1x128xf32>
    %303 = tpu.iota {dimensions = array<i32: 1>} : vector<1x128xi32>
    %c10_i32 = arith.constant 10 : i32
    %304 = vector.broadcast %c10_i32 : i32 to vector<1x128xi32>
    %305 = arith.cmpi slt, %303, %304 : vector<1x128xi32>
    %cst_244 = arith.constant -1.000000e+30 : f32
    %306 = vector.broadcast %cst_244 : f32 to vector<1x128xf32>
    %307 = arith.select %305, %302, %306 : vector<1x128xi1>, vector<1x128xf32>
    %cst_245 = arith.constant dense<0xFF800000> : vector<1xf32>
    %308 = vector.multi_reduction <maximumf>, %307, %cst_245 [1] : vector<1x128xf32> to vector<1xf32>
    %309 = vector.shape_cast %308 : vector<1xf32> to vector<1x1xf32>
    %310 = vector.broadcast %309 : vector<1x1xf32> to vector<1x128xf32>
    %311 = arith.subf %307, %310 : vector<1x128xf32>
    %312 = math.exp %311 : vector<1x128xf32>
    %cst_246 = arith.constant dense<0.000000e+00> : vector<1xf32>
    %313 = vector.multi_reduction <add>, %312, %cst_246 [1] : vector<1x128xf32> to vector<1xf32>
    %314 = vector.shape_cast %313 : vector<1xf32> to vector<1x1xf32>
    %315 = tpu.reciprocal %314 {approx = true} : vector<1x1xf32> -> vector<1x1xf32>
    %316 = arith.mulf %314, %315 : vector<1x1xf32>
    %cst_247 = arith.constant 2.000000e+00 : f32
    %317 = vector.broadcast %cst_247 : f32 to vector<1x1xf32>
    %318 = arith.subf %317, %316 : vector<1x1xf32>
    %319 = arith.mulf %315, %318 : vector<1x1xf32>
    %320 = vector.broadcast %319 : vector<1x1xf32> to vector<1x128xf32>
    %321 = arith.mulf %312, %320 : vector<1x128xf32>
    %c0_248 = arith.constant 0 : index
    %c0_249 = arith.constant 0 : index
    %c0_250 = arith.constant 0 : index
    %322 = vector.load %arg14[%c0_248, %c0_249, %c0_250] : memref<1x1x128xf32, #tpu.memory_space<vmem>>, vector<1x1x128xf32>
    %323 = vector.shape_cast %322 : vector<1x1x128xf32> to vector<1x128xf32>
    %324 = vector.shape_cast %321 : vector<1x128xf32> to vector<1x1x128xf32>
    tpu.vector_store %arg14[%c0_248, %c0_249, %c0_250], %324 {strides = array<i32>} : memref<1x1x128xf32, #tpu.memory_space<vmem>>, vector<1x1x128xf32>,
    return
  }
  func.func @transform_0(%arg0: i32) -> (i32, i32, i32) {
    %c0_i32 = arith.constant 0 : i32
    %c0_i32_0 = arith.constant 0 : i32
    %c0_i32_1 = arith.constant 0 : i32
    return %arg0, %c0_i32, %c0_i32_0 : i32, i32, i32
  }
  func.func @transform_1(%arg0: i32) -> (i32, i32) {
    %c0_i32 = arith.constant 0 : i32
    %c0_i32_0 = arith.constant 0 : i32
    %c0_i32_1 = arith.constant 0 : i32
    return %c0_i32, %c0_i32_0 : i32, i32
  }
  func.func @transform_2(%arg0: i32) -> (i32, i32) {
    %c0_i32 = arith.constant 0 : i32
    %c0_i32_0 = arith.constant 0 : i32
    %c0_i32_1 = arith.constant 0 : i32
    return %c0_i32, %c0_i32_0 : i32, i32
  }
  func.func @transform_3(%arg0: i32) -> (i32, i32, i32) {
    %c0_i32 = arith.constant 0 : i32
    %c0_i32_0 = arith.constant 0 : i32
    %c0_i32_1 = arith.constant 0 : i32
    %c0_i32_2 = arith.constant 0 : i32
    return %c0_i32, %c0_i32_0, %c0_i32_1 : i32, i32, i32
  }
  func.func @transform_4(%arg0: i32) -> (i32, i32, i32) {
    %c0_i32 = arith.constant 0 : i32
    %c0_i32_0 = arith.constant 0 : i32
    %c0_i32_1 = arith.constant 0 : i32
    %c0_i32_2 = arith.constant 0 : i32
    return %c0_i32, %c0_i32_0, %c0_i32_1 : i32, i32, i32
  }
  func.func @transform_5(%arg0: i32) -> (i32, i32) {
    %c0_i32 = arith.constant 0 : i32
    %c0_i32_0 = arith.constant 0 : i32
    %c0_i32_1 = arith.constant 0 : i32
    return %c0_i32, %c0_i32_0 : i32, i32
  }
  func.func @transform_6(%arg0: i32) -> (i32, i32, i32) {
    %c0_i32 = arith.constant 0 : i32
    %c0_i32_0 = arith.constant 0 : i32
    %c0_i32_1 = arith.constant 0 : i32
    %c0_i32_2 = arith.constant 0 : i32
    return %c0_i32, %c0_i32_0, %c0_i32_1 : i32, i32, i32
  }
  func.func @transform_7(%arg0: i32) -> (i32, i32, i32) {
    %c0_i32 = arith.constant 0 : i32
    %c0_i32_0 = arith.constant 0 : i32
    %c0_i32_1 = arith.constant 0 : i32
    %c0_i32_2 = arith.constant 0 : i32
    return %c0_i32, %c0_i32_0, %c0_i32_1 : i32, i32, i32
  }
  func.func @transform_8(%arg0: i32) -> (i32, i32) {
    %c0_i32 = arith.constant 0 : i32
    %c0_i32_0 = arith.constant 0 : i32
    %c0_i32_1 = arith.constant 0 : i32
    return %c0_i32, %c0_i32_0 : i32, i32
  }
  func.func @transform_9(%arg0: i32) -> (i32, i32, i32) {
    %c0_i32 = arith.constant 0 : i32
    %c0_i32_0 = arith.constant 0 : i32
    %c0_i32_1 = arith.constant 0 : i32
    %c0_i32_2 = arith.constant 0 : i32
    return %c0_i32, %c0_i32_0, %c0_i32_1 : i32, i32, i32
  }
  func.func @transform_10(%arg0: i32) -> (i32, i32) {
    %c0_i32 = arith.constant 0 : i32
    %c0_i32_0 = arith.constant 0 : i32
    %c0_i32_1 = arith.constant 0 : i32
    return %c0_i32, %c0_i32_0 : i32, i32
  }
  func.func @transform_11(%arg0: i32) -> (i32, i32) {
    %c0_i32 = arith.constant 0 : i32
    %c0_i32_0 = arith.constant 0 : i32
    %c0_i32_1 = arith.constant 0 : i32
    return %c0_i32, %c0_i32_0 : i32, i32
  }
  func.func @transform_12(%arg0: i32) -> (i32, i32) {
    %c0_i32 = arith.constant 0 : i32
    %c0_i32_0 = arith.constant 0 : i32
    %c0_i32_1 = arith.constant 0 : i32
    return %c0_i32, %c0_i32_0 : i32, i32
  }
  func.func @transform_13(%arg0: i32) -> (i32, i32, i32) {
    %c0_i32 = arith.constant 0 : i32
    %c0_i32_0 = arith.constant 0 : i32
    %c0_i32_1 = arith.constant 0 : i32
    return %arg0, %c0_i32, %c0_i32_0 : i32, i32, i32
  }
}

</mosaic_0001>

<bundles_post_ra>
// kernel: forward.1
= control target key start
LH: loop header
LB: loop body
LE: loop exit
PB: predicated region body
PF: predicated region fallthrough
CT: control target
= control target key end

     0   :  { %s11597_s0 = inlined_call_operand.vmem [shape: bf16[2,196,16], index: 0, kind: input, shape index: {}]   ;;  %s11598_s1 = inlined_call_operand.hbm [shape: bf16[16,24], index: 1, kind: input, shape index: {}]   ;;  %s11599_s2 = inlined_call_operand.hbm [shape: f32[1,24], index: 2, kind: input, shape index: {}]   ;;  %s11600_s3 = inlined_call_operand.hbm [shape: bf16[9,49,196], index: 3, kind: input, shape index: {}]   ;;  %s11601_s4 = inlined_call_operand.hbm [shape: bf16[9,24,32], index: 4, kind: input, shape index: {}]   ;;  %s11602_s5 = inlined_call_operand.hbm [shape: f32[1,32], index: 5, kind: input, shape index: {}]   ;;  %s11603_s6 = inlined_call_operand.hbm [shape: bf16[9,25,49], index: 6, kind: input, shape index: {}]   ;;  %s11604_s7 = inlined_call_operand.hbm [shape: bf16[9,32,48], index: 7, kind: input, shape index: {}]   ;;  %s11605_s8 = inlined_call_operand.hbm [shape: f32[1,48], index: 8, kind: input, shape index: {}]   ;;  %s11606_s9 = inlined_call_operand.hbm [shape: bf16[25,48,512], index: 9, kind: input, shape index: {}]   ;;  %s11607_s10 = inlined_call_operand.hbm [shape: f32[1,512], index: 10, kind: input, shape index: {}]   ;;  %s11608_s11 = inlined_call_operand.hbm [shape: bf16[512,128], index: 11, kind: input, shape index: {}]   ;;  %s11609_s12 = inlined_call_operand.hbm [shape: f32[1,128], index: 12, kind: input, shape index: {}]   ;;  %s11610_s13 = inlined_call_operand.hbm [shape: f32[2,1,128], index: 13, kind: output, shape index: {}]  }
   0x1   :  { %11618 = sst [smem:[#allocation36_spill]] %s11598_s1 }
   0x2   :  { %11619 = sst [smem:[#allocation37_spill]] %s11599_s2 }
   0x3   :  { %11620 = sst [smem:[#allocation38_spill]] %s11601_s4 }
   0x4   :  { %11621 = sst [smem:[#allocation39_spill]] %s11603_s6 }
   0x5   :  { %11622 = sst [smem:[#allocation40_spill]] %s11605_s8 }
   0x6   :  { %18 = vsyncpa [#allocation3], 0 }
   0x7   :  { %19 = vsyncpa [#allocation6], 0 }
   0x8   :  { %20 = vsyncpa [#allocation9], 0 }
   0x9   :  { %21 = vsyncpa [#allocation12], 0 }
   0xa   :  { %22 = vsyncpa [#allocation15], 0 }
   0xb   :  { %23 = vsyncpa [#allocation18], 0 }
   0xc   :  { %24 = vsyncpa [#allocation21], 0 }
   0xd   :  { %25 = vsyncpa [#allocation4], 0 }
   0xe   :  { %27 = vsyncpa [#allocation4 + $0x1], 0  ;;  %s10334_s25 = smov 0   ;;  %s10336_s26 = smov 0  }
   0xf   :  { %s10338_s27 = smov 0   ;;  %s10340_s28 = smov 0  }
  0x10 LB: > { %11623 = sst [smem:[#allocation31_spill]] %s10231_s25  ;;  %s10355_s29 = sadd.s32 4294967295, %s10243_s28   ;;  %s10243_s28 = sphi %s10340_s28, %s11640_s28   ;;  %s10239_s27 = sphi %s10338_s27, %s11642_s27   ;;  %s10235_s26 = sphi %s10336_s26, %s11644_s26   ;;  %s10231_s25 = sphi %s10334_s25, %s11643_s25  }
  0x11   : > { %11624 = sst [smem:[#allocation32_spill]] %s10239_s27  ;;  %s7145_s30 = sadd.s32 4294967294, %s10243_s28  }
  0x12   : > { %s10359_s14 = sadd.s32 1, %s10243_s28   ;;  %s318_s15 = sadd.s32 1, %s10239_s27 }
  0x13   : > { %11625 = sst [smem:[#allocation33_spill]] %s10359_s14  ;;  %s315_s16 = ssub.s32 %s10243_s28, %s10359_s14 }
  0x14   : > { %p328_p0 = scmp.ne.s32.totalorder %s10239_s27, %s10235_s26  ;;  %p316_p1 = scmp.eq.s32.totalorder %s315_s16, 0 }
  0x15   : > { %p329_p2 = scmp.eq.s32.totalorder %s10355_s29, 1  ;;  %p334_p3 = scmp.ne.s32.totalorder %s10235_s26, %s10231_s25 }
  0x16   : > { %p335_p4 = scmp.eq.s32.totalorder %s7145_s30, 1  ;;  %p7146_p7 = scmp.ge.s32.totalorder %s10243_s28, 1 }
  0x17   : > { %s10370_s17 = scalar_select %p316_p1, %s10239_s27, %s318_s15  }
  0x18   : > { %p10372_p5 = por %p329_p2, %p328_p0  ;;  %p10376_p6 = por %p335_p4, %p334_p3 }
  0x19   : > { %11626 = sst [smem:[#allocation34_spill]] %s10370_s17  ;;  %p342_p8 = scmp.lt.s32.totalorder %s10243_s28, 3 }
  0x1a   : > { %s11628_s19 = scalar_select %p10376_p6, 1, 0 }
  0x1b   : > { %p9709_p9 = scmp.eq.s32.totalorder %s10355_s29, 0  ;;  %p10383_p10 = pnand %p7146_p7, %p342_p8 }
  0x1c   : > { %11629 = sst [smem:[#allocation35_spill]] %s11628_s19  ;;  %s10245_s24 = smov [#allocation5]  }
  0x1d   : > { %s11631_s2 = sld [smem:[#allocation37_spill]]  ;;  %p9668_p11 = pneg %p10383_p10 }
  0x1e   : > { %s370_s30 = sshll.u32 %s10245_s24, 4  ;;  %s11633_s4 = sld [smem:[#allocation38_spill]]  ;;  %s371_s30 = int_to_ptr.vmem [resolvable:$true] %s370_s30 }
  0x1f   : > { %p10394_p12 = pnand %p9709_p9, %p9668_p11  ;;  %s10246_s21 = smov [#allocation8]  }
  0x20   : > { %s395_s22 = sshll.u32 %s10246_s21, 4  ;;  %s11634_s6 = sld [smem:[#allocation39_spill]]  ;;  %s396_s22 = int_to_ptr.vmem [resolvable:$true] %s395_s22 }
  0x21   : > { %s11616_s19 = smov 64   ;;  %s10248_s25 = smov 4  }
  0x22   : > { %s11635_s8 = sld [smem:[#allocation40_spill]]  ;;  %s10257_s17 = smov [#allocation13]  }
  0x23   : > { %s368_s23 = sshll.u32 %s11631_s2, 4  ;;  %s10250_s2 = smov [#allocation14]   ;;  %s369_s23 = int_to_ptr.hbm [resolvable:$true] %s368_s23 }
  0x24   : > { %s393_s27 = sshll.u32 %s11633_s4, 4  ;;  %s450_s24 = sshll.u32 %s10250_s2, 4  ;;  %s394_s27 = int_to_ptr.hbm [resolvable:$true] %s393_s27  ;;  %s451_s24 = int_to_ptr.vmem [resolvable:$true] %s450_s24 }
  0x25   : > { %9674 = dma.hbm_to_vmem [thread:$0]  (!%p10394_p12), %s369_s23, 16, %s371_s30, [#allocation6]  }
  0x26   : > { %s419_s14 = sshll.u32 %s11634_s6, 4  ;;  %s10249_s30 = smov [#allocation11]   ;;  %s420_s14 = int_to_ptr.hbm [resolvable:$true] %s419_s14 }
  0x27   : > { %9680 = dma.hbm_to_vmem [thread:$0]  (!%p10394_p12), %s394_s27, 1728, %s396_s22, [#allocation9], %s11616_s19, %s11616_s19, %s10248_s25  }
  0x28   : > { %s448_s23 = sshll.u32 %s11635_s8, 4  ;;  %s421_s21 = sshll.u32 %s10249_s30, 4  ;;  %s449_s23 = int_to_ptr.hbm [resolvable:$true] %s448_s23  ;;  %s422_s21 = int_to_ptr.vmem [resolvable:$true] %s421_s21 }
  0x29   : > { %9686 = dma.hbm_to_vmem [thread:$0]  (!%p10394_p12), %s420_s14, 2304, %s422_s21, [#allocation12], %s11616_s19, %s11616_s19, %s10248_s25  }
  0x2a   : > { %s474_s27 = sshll.u32 %s11607_s10, 4  ;;  %s11636_s1 = sld [smem:[#allocation36_spill]]  ;;  %s475_s27 = int_to_ptr.hbm [resolvable:$true] %s474_s27 }
  0x2b   : > { %9692 = dma.hbm_to_vmem [thread:$0]  (!%p10394_p12), %s449_s23, 16, %s451_s24, [#allocation15]  }
  0x2c   : > { %s10251_s30 = smov [#allocation17]   ;;  %s10252_s14 = smov [#allocation2]  }
  0x2d   : > { %s476_s8 = sshll.u32 %s10251_s30, 4  ;;  %s355_s21 = sshll.u32 %s10252_s14, 4  ;;  %s477_s8 = int_to_ptr.vmem [resolvable:$true] %s476_s8  ;;  %s356_s21 = int_to_ptr.vmem [resolvable:$true] %s355_s21 }
  0x2e   : > { %9698 = dma.hbm_to_vmem [thread:$0]  (!%p10394_p12), %s475_s27, 64, %s477_s8, [#allocation18]  }
  0x2f   : > { %s379_s2 = sshll.u32 %s11600_s3, 4  ;;  %s10253_s23 = smov [#allocation7]   ;;  %s380_s2 = int_to_ptr.hbm [resolvable:$true] %s379_s2 }
  0x30   : > { %s353_s16 = sshll.u32 %s11636_s1, 4  ;;  %s381_s24 = sshll.u32 %s10253_s23, 4  ;;  %s354_s16 = int_to_ptr.hbm [resolvable:$true] %s353_s16  ;;  %s382_s24 = int_to_ptr.vmem [resolvable:$true] %s381_s24 }
  0x31   : > { %9671 = dma.hbm_to_vmem [thread:$0]  (!%p10394_p12), %s354_s16, 128, %s356_s21, [#allocation3], %s11616_s19, %s11616_s19, %s10248_s25  }
  0x32   : > { %s408_s8 = sshll.u32 %s11602_s5, 4  ;;  %s10254_s27 = smov 128   ;;  %s409_s8 = int_to_ptr.hbm [resolvable:$true] %s408_s8 }
  0x33   : > { %s10255_s30 = smov 8   ;;  %s10256_s14 = smov [#allocation10]  }
  0x34   : > { %9677 = dma.hbm_to_vmem [thread:$0]  (!%p10394_p12), %s380_s2, 8064, %s382_s24, [#allocation6], %s10254_s27, %s10254_s27, %s10255_s30  }
  0x35   : > { %s410_s4 = sshll.u32 %s10256_s14, 4  ;;  %s433_s16 = sshll.u32 %s11604_s7, 4  ;;  %s411_s4 = int_to_ptr.vmem [resolvable:$true] %s410_s4  ;;  %s434_s16 = int_to_ptr.hbm [resolvable:$true] %s433_s16 }
  0x36   : > { %9683 = dma.hbm_to_vmem [thread:$0]  (!%p10394_p12), %s409_s8, 16, %s411_s4, [#allocation9]  }
  0x37   : > { %s459_s22 = sshll.u32 %s11606_s9, 4  ;;  %s435_s19 = sshll.u32 %s10257_s17, 4  ;;  %s460_s22 = int_to_ptr.hbm [resolvable:$true] %s459_s22  ;;  %s436_s19 = int_to_ptr.vmem [resolvable:$true] %s435_s19 }
  0x38   : > { %s11637_s2 = smov 64   ;;  %s10258_s1 = smov [#allocation16]  }
  0x39   : > { %9689 = dma.hbm_to_vmem [thread:$0]  (!%p10394_p12), %s434_s16, 2304, %s436_s19, [#allocation12], %s11637_s2, %s11637_s2, %s10248_s25  }
  0x3a   : > { %s461_s24 = sshll.u32 %s10258_s1, 4  ;;  %s10259_s27 = smov 256   ;;  %s462_s24 = int_to_ptr.vmem [resolvable:$true] %s461_s24 }
  0x3b   : > { %s10260_s8 = smov 16   ;;  %s485_s4 = sshll.u32 %s11608_s11, 4  ;;  %s486_s4 = int_to_ptr.hbm [resolvable:$true] %s485_s4 }
  0x3c   : > { %9695 = dma.hbm_to_vmem [thread:$0]  (!%p10394_p12), %s460_s22, 38400, %s462_s24, [#allocation15], %s10259_s27, %s10259_s27, %s10260_s8  }
  0x3d   : > { %s10261_s6 = smov [#allocation19]   ;;  %s500_s19 = sshll.u32 %s11609_s12, 4  ;;  %s501_s19 = int_to_ptr.hbm [resolvable:$true] %s500_s19 }
  0x3e   : > { %s487_s21 = sshll.u32 %s10261_s6, 4  ;;  %s10262_s16 = smov [#allocation20]   ;;  %s488_s21 = int_to_ptr.vmem [resolvable:$true] %s487_s21 }
  0x3f   : > { %9701 = dma.hbm_to_vmem [thread:$0]  (!%p10394_p12), %s486_s4, 4096, %s488_s21, [#allocation18], %s11637_s2, %s11637_s2, %s10248_s25  }
  0x40   : > { %s502_s22 = sshll.u32 %s10262_s16, 4  ;;  %523 = sbr.rel (%p10383_p10) target bundleno = 3133 (0xc3d), region = 72  ;;  %s503_s22 = int_to_ptr.vmem [resolvable:$true] %s502_s22 }
  0x41   : > { %9704 = dma.hbm_to_vmem [thread:$0]  (!%p10394_p12), %s501_s19, 16, %s503_s22, [#allocation21]  }
  0x45   : > { %10198 = dma.done.wait (%p9709_p9), [#allocation3], 128  }
  0x46   : > { %10200 = vsyncadd (%p9709_p9), [#allocation3], 4294967168 }
  0x47   : > { %10202 = dma.done.wait (%p9709_p9), [#allocation6], 8080  }
  0x48   : > { %10204 = vsyncadd (%p9709_p9), [#allocation6], 4294959216 }
  0x49   : > { %10206 = dma.done.wait (%p9709_p9), [#allocation9], 1744  }
  0x4a   : > { %10208 = vsyncadd (%p9709_p9), [#allocation9], 4294965552 }
  0x4b   : > { %10210 = dma.done.wait (%p9709_p9), [#allocation12], 4608  }
  0x4c   : > { %10212 = vsyncadd (%p9709_p9), [#allocation12], 4294962688 }
  0x4d   : > { %10214 = dma.done.wait (%p9709_p9), [#allocation15], 38416  }
  0x4e   : > { %10216 = vsyncadd (%p9709_p9), [#allocation15], 4294928880 }
  0x4f   : > { %10218 = dma.done.wait (%p9709_p9), [#allocation18], 4160  }
  0x50   : > { %10220 = vsyncadd (%p9709_p9), [#allocation18], 4294963136 }
  0x51   : > { %10222 = dma.done.wait (%p9709_p9), [#allocation21], 16  }
  0x52   : > { %10224 = vsyncadd (%p9709_p9), [#allocation21], 4294967280  ;;  %p622_p13 = scmp.lt.s32.totalorder %s10355_s29, 1  ;;  %v9185_v0 = vld [vmem:[#allocation2] sm:$0xff]  ;;  %vm728_vm0 = vcmask 130048   ;;  %vm1138_vm1 = vcmask 1043456   ;;  %s6969_s30 = scalar_lea.hbm %s11610_s13, %s10355_s29 }
  0x53   : > { %775 = vmatpush.bf16.msra.mxu0 %v9185_v0  ;;  %v10524_v11 = vld [vmem:[#allocation5] ss:$0 sm:$0xff]  ;;  %vm932_vm2 = vcmask 1041408   ;;  %vm919_vm3 = vcmask 556032   ;;  %vm1125_vm4 = vcmask 195584   ;;  %vm2497_vm5 = vcmask 1040384  }
  0x54   : > { %s623_s25 = scalar_select %p622_p13, %s10355_s29, 1  ;;  %vm2490_vm6 = vcmask 400384   ;;  %vm2587_vm7 = vcmask 261120   ;;  %vm3373_vm8 = vcmask 392192  }
  0x55   : > { %s620_s24 = sand.u32 1, %s10235_s26   ;;  %s6973_s6 = sshll.u32 %s6969_s30, 4  ;;  %s6974_s6 = int_to_ptr.hbm [resolvable:$true] %s6973_s6 }
  0x56   : > { %s9617_s20 = smul.u32 100, %s623_s25  ;;  %s621_s14 = scalar_lea.vmem [#allocation22], %s620_s24 }
  0x57   : > { %s6971_s4 = sshll.u32 %s621_s14, 4  ;;  %s6961_s21 = scalar_lea.sflag [#allocation4], %s620_s24  ;;  %s6972_s4 = int_to_ptr.vmem [resolvable:$true] %s6971_s4 }
  0x58   : > { %s10505_s1 = scalar_lea.vmem %s11597_s0, %s9617_s20  ;;  %s10167_s23 = sshra.s32 %s6974_s6, 4  ;;  %s10168_s23 = int_to_ptr.hbm [resolvable:$true] %s10167_s23 }
  0x59   : > { %v9173_v1 = vld [vmem:[%s10505_s1] sm:$0xff]  ;;  %v9174_v2 = vld [vmem:[%s10505_s1 + $0x8] sm:$0xff]  ;;  %v9175_v3 = vld [vmem:[%s10505_s1 + $0x10] sm:$0xff]  ;;  %s10169_s17 = scalar_lea.hbm %s10168_s23, 1  ;;  %s10173_s29 = scalar_lea.hbm %s11610_s13, 2 }
  0x5a   : > { %7226 = vmatmul.msk.bf16.vlgmr.msra.gmra.mxu0 %vm728_vm0, %v9173_v1  ;;  %v9176_v4 = vld [vmem:[%s10505_s1 + $0x18] sm:$0xff]  ;;  %v9177_v5 = vld [vmem:[%s10505_s1 + $0x20] sm:$0xff]  ;;  %v9178_v6 = vld [vmem:[%s10505_s1 + $0x28] sm:$0xff]  ;;  %p10170_p0 = scmp.ne.s32.totalorder %s10168_s23, %s10169_s17  ;;  %p10174_p3 = scmp.lt.s32.totalorder %s10168_s23, %s11610_s13 }
  0x5b   : > { %v9179_v7 = vld [vmem:[%s10505_s1 + $0x30] sm:$0xff]  ;;  %v9180_v8 = vld [vmem:[%s10505_s1 + $0x38] sm:$0xff]  ;;  %v9181_v9 = vld [vmem:[%s10505_s1 + $0x40] sm:$0xff]  ;;  %p10175_p4 = scmp.lt.s32.totalorder %s10173_s29, %s10169_s17 }
  0x5c   : > { %v9182_v18 = vld [vmem:[%s10505_s1 + $0x48] sm:$0xff]  ;;  %v9183_v21 = vld [vmem:[%s10505_s1 + $0x50] sm:$0xff]  ;;  %v9184_v24 = vld [vmem:[%s10505_s1 + $0x58] sm:$0xff]  ;;  %p10171_p1 = pnand %p10170_p0, %p10372_p5 }
  0x5d   : > { %v652_v27 = vld [vmem:[%s10505_s1 + $0x60] sm:$0x3]  ;;  %p10176_p7 = por %p10175_p4, %p10174_p3 }
  0x5e   : > { %v708_v28 = vunpack.c.l.b16 %v652_v27  ;;  %p10172_p2 = pneg %p10171_p1 }
  0x60   : > { %v721_v29 = vpack.c.b16 %v708_v28, %v708_v28  ;;  %v7357_v28 = vld [vmem:[#allocation7 + $0xb8] sm:$0xf]  ;;  %p10177_p8 = pnand %p10176_p7, %p10172_p2 }
  0x6a   : > { %7227 = vmatmul.msk.bf16.gmra.mxu0 %vm728_vm0, %v9174_v2 }
  0x7a   : > { %7228 = vmatmul.msk.bf16.gmra.mxu0 %vm728_vm0, %v9175_v3 }
  0x8a   : > { %7229 = vmatmul.msk.bf16.gmra.mxu0 %vm728_vm0, %v9176_v4 }
  0x9a   : > { %7230 = vmatmul.msk.bf16.gmra.mxu0 %vm728_vm0, %v9177_v5 }
  0xaa   : > { %7231 = vmatmul.msk.bf16.gmra.mxu0 %vm728_vm0, %v9178_v6 }
  0xba   : > { %7232 = vmatmul.msk.bf16.gmra.mxu0 %vm728_vm0, %v9179_v7 }
  0xca   : > { %7233 = vmatmul.msk.bf16.gmra.mxu0 %vm728_vm0, %v9180_v8 }
  0xd7   : > { %v777_v10 = vpop.f32.mrf.mxu0 }
  0xd8   : > { %v778_v12 = vadd.f32 %v10524_v11, %v777_v10 }
  0xda   : > { %7234 = vmatmul.msk.bf16.gmra.mxu0 %vm728_vm0, %v9181_v9  ;;  %v841_v15 = vmax.f32 %v778_v12, 0.0 }
  0xdf   : > { %v779_v13 = vpop.f32.mrf.mxu0 }
  0xe0   : > { %v780_v14 = vadd.f32 %v10524_v11, %v779_v13 }
  0xe2   : > { %v842_v16 = vmax.f32 %v780_v14, 0.0  ;;  %v7349_v14 = vld [vmem:[#allocation7 + $0xa8] sm:$0xf] }
  0xe4   : > { %v10529_v17 = vpack.c.bf16 %v842_v16, %v841_v15  ;;  %v9208_v15 = vld [vmem:[#allocation7 + $0xac] sm:$0xf0] }
  0xe5   : > { %v7350_v16 = vor.u32 %v9208_v15, %v7349_v14 }
  0xe7   : > { %v10532_v19 = vpop.f32.mrf.mxu0 }
  0xe8   : > { %v783_v5 = vadd.f32 %v10524_v11, %v10532_v19 }
  0xea   : > { %7235 = vmatmul.msk.bf16.gmra.mxu0 %vm728_vm0, %v9182_v18  ;;  %v843_v10 = vmax.f32 %v783_v5, 0.0  ;;  %v1115_v18 = vld [vmem:[#allocation8 + $0x14] sm:$0xf] }
  0xeb   : > { %v1121_v19 = vunpack.c.l.b16 %v1115_v18 }
  0xef   : > { %v784_v20 = vpop.f32.mrf.mxu0 }
  0xf0   : > { %v785_v2 = vadd.f32 %v10524_v11, %v784_v20 }
  0xf2   : > { %v844_v8 = vmax.f32 %v785_v2, 0.0 }
  0xf4   : > { %v10592_v12 = vpack.c.bf16 %v844_v8, %v843_v10 }
  0xf7   : > { %v787_v22 = vpop.f32.mrf.mxu0 }
  0xf8   : > { %v788_v0 = vadd.f32 %v10524_v11, %v787_v22 }
  0xfa   : > { %7236 = vmatmul.msk.bf16.gmra.mxu0 %vm728_vm0, %v9183_v21  ;;  %v845_v6 = vmax.f32 %v788_v0, 0.0  ;;  %v1123_v21 = vpack.c.b16 %v1121_v19, %v1121_v19  ;;  %v9214_v19 = vld [vmem:[#allocation7 + $0xe4] sm:$0xf] }
  0xfc   : > { %v1140_v22 = vsel %vm1138_vm1, %v1123_v21, 0  ;;  %v9227_v21 = vld [vmem:[#allocation8 + $0x3c] sm:$0xff] }
  0xff   : > { %v789_v23 = vpop.f32.mrf.mxu0 }
 0x100   : > { %v790_v61 = vadd.f32 %v10524_v11, %v789_v23  ;;  %v9199_v23 = vld [vmem:[#allocation8 + $0xc] sm:$0xff] }
 0x102   : > { %v846_v3 = vmax.f32 %v790_v61, 0.0  ;;  %v1866_v61 = vld [vmem:[#allocation8 + $0x44] sm:$0xf] }
 0x103   : > { %v1872_v2 = vunpack.c.l.b16 %v1866_v61  ;;  %v7279_v61 = vld [vmem:[#allocation7 + $0x50] sm:$0xf0] }
 0x104   : > { %v10587_v9 = vpack.c.bf16 %v846_v3, %v845_v6  ;;  %v7249_v6 = vld [vmem:[#allocation7 + $0x10] sm:$0xf] }
 0x107   : > { %v792_v25 = vpop.f32.mrf.mxu0 }
 0x108   : > { %v793_v58 = vadd.f32 %v10524_v11, %v792_v25  ;;  %v9187_v25 = vld [vmem:[#allocation7 + $0x4] sm:$0xf0] }
 0x10a   : > { %7237 = vmatmul.msk.bf16.gmra.mxu0 %vm728_vm0, %v9184_v24  ;;  %v847_v1 = vmax.f32 %v793_v58, 0.0  ;;  %v7241_v24 = vld [vmem:[#allocation7] sm:$0xf] }
 0x10f   : > { %v794_v26 = vpop.f32.mrf.mxu0 }
 0x110   : > { %v795_v55 = vadd.f32 %v10524_v11, %v794_v26  ;;  %v7242_v26 = vor.u32 %v9187_v25, %v7241_v24  ;;  %v9191_v24 = vld [vmem:[#allocation7 + $0x24] sm:$0xf0] }
 0x112   : > { %v848_v62 = vmax.f32 %v795_v55, 0.0 }
 0x114   : > { %v10578_v4 = vpack.c.bf16 %v848_v62, %v847_v1 }
 0x117   : > { %v797_v30 = vpop.f32.mrf.mxu0 }
 0x118   : > { %v798_v53 = vadd.f32 %v10524_v11, %v797_v30 }
 0x11a   : > { %7238 = vmatmul.msk.bf16.gmra.mxu0 %vm728_vm0, %v721_v29  ;;  %v849_v59 = vmax.f32 %v798_v53, 0.0  ;;  %v9210_v29 = vld [vmem:[#allocation7 + $0xbc] sm:$0xf0] }
 0x11b   : > { %v7358_v30 = vor.u32 %v9210_v29, %v7357_v28  ;;  %v885_v29 = vld [vmem:[#allocation7 + $0x30] sm:$0x11] }
 0x11f   : > { %v799_v31 = vpop.f32.mrf.mxu0 }
 0x120   : > { %v800_v50 = vadd.f32 %v10524_v11, %v799_v31 }
 0x122   : > { %v850_v56 = vmax.f32 %v800_v50, 0.0 }
 0x124   : > { %v10571_v63 = vpack.c.bf16 %v850_v56, %v849_v59 }
 0x127   : > { %v802_v32 = vpop.f32.mrf.mxu0 }
 0x128   : > { %v803_v47 = vadd.f32 %v10524_v11, %v802_v32 }
 0x12a   : > { %v851_v54 = vmax.f32 %v803_v47, 0.0 }
 0x12f   : > { %v804_v33 = vpop.f32.mrf.mxu0 }
 0x130   : > { %v805_v44 = vadd.f32 %v10524_v11, %v804_v33  ;;  %v7365_v33 = vld [vmem:[#allocation7 + $0xc8] sm:$0xf] }
 0x132   : > { %v852_v51 = vmax.f32 %v805_v44, 0.0 }
 0x134   : > { %v10562_v57 = vpack.c.bf16 %v852_v51, %v851_v54 }
 0x137   : > { %v807_v34 = vpop.f32.mrf.mxu0 }
 0x138   : > { %v808_v41 = vadd.f32 %v10524_v11, %v807_v34  ;;  %v9212_v34 = vld [vmem:[#allocation7 + $0xcc] sm:$0xf0] }
 0x13a   : > { %v853_v48 = vmax.f32 %v808_v41, 0.0  ;;  %v10604_v41 = vld [vmem:[#allocation7 + $0xd8] sm:$0x11] }
 0x13b   : > { %v1425_v47 = vunpack.c.l.b16 %v10604_v41 }
 0x13d   : > { %v1433_v56 = vpack.c.b16 %v1425_v47, %v1425_v47  ;;  %v9198_v47 = vld [vmem:[#allocation7 + $0x5c] sm:$0xf0] }
 0x13f   : > { %v809_v35 = vpop.f32.mrf.mxu0 }
 0x140   : > { %v810_v39 = vadd.f32 %v10524_v11, %v809_v35  ;;  %v7366_v35 = vor.u32 %v9212_v34, %v7365_v33 }
 0x142   : > { %v854_v45 = vmax.f32 %v810_v39, 0.0 }
 0x144   : > { %v10555_v52 = vpack.c.bf16 %v854_v45, %v853_v48 }
 0x147   : > { %v812_v36 = vpop.f32.mrf.mxu0 }
 0x148   : > { %v813_v37 = vadd.f32 %v10524_v11, %v812_v36 }
 0x14a   : > { %v855_v42 = vmax.f32 %v813_v37, 0.0 }
 0x14f   : > { %v814_v38 = vpop.f32.mrf.mxu0 }
 0x150   : > { %v815_v40 = vadd.f32 %v10524_v11, %v814_v38 }
 0x152   : > { %v856_v43 = vmax.f32 %v815_v40, 0.0 }
 0x154   : > { %v10546_v46 = vpack.c.bf16 %v856_v43, %v855_v42 }
 0x156   : > { %936 = vmatpush.bf16.msra.mxu1 %v10546_v46  ;;  %1052 = vmatpush.bf16.msra.mxu3 %v10546_v46 }
 0x157   : > { %1451 = vmatpush.bf16.msrb.mxu0 %v10546_v46  ;;  %v10552_v49 = vpop.f32.mrf.mxu0 }
 0x158   : > { %v818_v3 = vadd.f32 %v10524_v11, %v10552_v49  ;;  %v7243_v49 = vld [vmem:[#allocation7 + $0x8] sm:$0xf0] }
 0x15a   : > { %937 = vmatpush.bf16.msra.mxu1 %v10555_v52  ;;  %1053 = vmatpush.bf16.msra.mxu3 %v10555_v52  ;;  %v857_v14 = vmax.f32 %v818_v3, 0.0 }
 0x15b   : > { %1452 = vmatpush.bf16.msrb.mxu0 %v10555_v52 }
 0x15e   : > { %938 = vmatpush.bf16.msra.mxu1 %v10562_v57  ;;  %1054 = vmatpush.bf16.msra.mxu3 %v10562_v57 }
 0x15f   : > { %1453 = vmatpush.bf16.msrb.mxu0 %v10562_v57  ;;  %v10568_v60 = vpop.f32.mrf.mxu0 }
 0x160   : > { %v820_v62 = vadd.f32 %v10524_v11, %v10568_v60 }
 0x162   : > { %939 = vmatpush.bf16.msra.mxu1 %v10571_v63  ;;  %1055 = vmatpush.bf16.msra.mxu3 %v10571_v63  ;;  %v858_v10 = vmax.f32 %v820_v62, 0.0 }
 0x163   : > { %1454 = vmatpush.bf16.msrb.mxu0 %v10571_v63 }
 0x164   : > { %v10636_v15 = vpack.c.bf16 %v858_v10, %v857_v14 }
 0x166   : > { %940 = vmatpush.bf16.msra.mxu1 %v10578_v4  ;;  %1056 = vmatpush.bf16.msra.mxu3 %v10578_v4 }
 0x167   : > { %1455 = vmatpush.bf16.msrb.mxu0 %v10578_v4  ;;  %v10585_v7 = vpop.f32.mrf.mxu0 }
 0x168   : > { %v823_v58 = vadd.f32 %v10524_v11, %v10585_v7  ;;  %v9189_v7 = vld [vmem:[#allocation7 + $0x14] sm:$0xf0] }
 0x169   : > { %v7250_v8 = vor.u32 %v9189_v7, %v7249_v6  ;;  %v998_v6 = vld [vmem:[#allocation8 + $0x8] sm:$0xf] }
 0x16a   : > { %941 = vmatpush.bf16.msra.mxu1 %v10587_v9  ;;  %1057 = vmatpush.bf16.msra.mxu3 %v10587_v9  ;;  %v859_v5 = vmax.f32 %v823_v58, 0.0  ;;  %v1175_v7 = vunpack.c.l.b16 %v998_v6 }
 0x16b   : > { %1456 = vmatpush.bf16.msrb.mxu0 %v10587_v9 }
 0x16e   : > { %942 = vmatpush.bf16.msra.mxu1 %v10592_v12  ;;  %1058 = vmatpush.bf16.msra.mxu3 %v10592_v12 }
 0x16f   : > { %1457 = vmatpush.bf16.msrb.mxu0 %v10592_v12  ;;  %v824_v13 = vpop.f32.mrf.mxu0 }
 0x170   : > { %v825_v53 = vadd.f32 %v10524_v11, %v824_v13  ;;  %v1874_v13 = vpack.c.b16 %v1872_v2, %v1872_v2  ;;  %v7287_v2 = vld [vmem:[#allocation7 + $0x60] sm:$0xf0] }
 0x172   : > { %943 = vmatpush.bf16.msra.mxu1 %v10529_v17  ;;  %1059 = vmatpush.bf16.msra.mxu3 %v10529_v17  ;;  %v860_v0 = vmax.f32 %v825_v53, 0.0 }
 0x173   : > { %1458 = vmatpush.bf16.msrb.mxu0 %v10529_v17 }
 0x174   : > { %v10631_v60 = vpack.c.bf16 %v860_v0, %v859_v5  ;;  %v9197_v0 = vld [vmem:[#allocation7 + $0x5c] sm:$0xf] }
 0x175   : > { %944 = vmatmul.bf16.vlgmr.msra.gmra.mxu1 %v7242_v26  ;;  %v9188_v26 = vld [vmem:[#allocation7 + $0x14] sm:$0xf]  ;;  %v7290_v3 = vor.u32 %v9197_v0, %v7287_v2  ;;  %v10688_v0 = vld [vmem:[#allocation7 + $0xa0] sm:$0x11] }
 0x176   : > { %1459 = vmatmul.bf16.vlgmr.msrb.gmra.mxu0 %v7350_v16  ;;  %1148 = vmatpush.bf16.msrb.mxu1 %v1140_v22  ;;  %v1889_v16 = vsel %vm1138_vm1, %v1874_v13, 0  ;;  %v1338_v13 = vld [vmem:[#allocation8 + $0x20] sm:$0xf]  ;;  %v1249_v2 = vunpack.c.l.b16 %v10688_v0 }
 0x177   : > { %v827_v20 = vpop.f32.mrf.mxu0 }
 0x178   : > { %v828_v48 = vadd.f32 %v10524_v11, %v827_v20  ;;  %v7387_v20 = vld [vmem:[#allocation7 + $0xe8] sm:$0xf0] }
 0x179   : > { %v7390_v22 = vor.u32 %v9214_v19, %v7387_v20 }
 0x17a   : > { %1149 = vmatpush.bf16.msrb.mxu1 %v9199_v23  ;;  %v861_v59 = vmax.f32 %v828_v48, 0.0  ;;  %v7257_v23 = vld [vmem:[#allocation7 + $0x20] sm:$0xf] }
 0x17b   : > { %v7258_v25 = vor.u32 %v9191_v24, %v7257_v23  ;;  %v7313_v23 = vld [vmem:[#allocation7 + $0x70] sm:$0xf]  ;;  %v9201_v24 = vld [vmem:[#allocation7 + $0x74] sm:$0xf0] }
 0x17f   : > { %v829_v27 = vpop.f32.mrf.mxu0 }
 0x180   : > { %v830_v43 = vadd.f32 %v10524_v11, %v829_v27  ;;  %v7251_v27 = vld [vmem:[#allocation7 + $0x18] sm:$0xf0] }
 0x181   : > { %v7254_v28 = vor.u32 %v9188_v26, %v7251_v27 }
 0x182   : > { %v862_v54 = vmax.f32 %v830_v43, 0.0 }
 0x184   : > { %v10624_v1 = vpack.c.bf16 %v862_v54, %v861_v59  ;;  %v1006_v54 = vld [vmem:[#allocation7 + $0x68] sm:$0x11] }
 0x185   : > { %949 = vmatmul.bf16.gmra.mxu1 %v7250_v8  ;;  %v9195_v59 = vld [vmem:[#allocation7 + $0x4c] sm:$0xf]  ;;  %v1177_v8 = vpack.c.b16 %v1175_v7, %v1175_v7  ;;  %v1027_v14 = vunpack.c.h.b16 %v1006_v54 }
 0x186   : > { %1464 = vmatmul.bf16.gmra.mxu0 %v7358_v30  ;;  %v905_v30 = vunpack.c.l.b16 %v885_v29  ;;  %v7282_v62 = vor.u32 %v9195_v59, %v7279_v61 }
 0x187   : > { %v832_v31 = vpop.f32.mrf.mxu0  ;;  %v1192_v10 = vsel %vm1138_vm1, %v1177_v8, 0  ;;  %v1035_v19 = vpack.c.b16 %v1027_v14, %v1027_v14  ;;  %v1257_v8 = vpack.c.b16 %v1249_v2, %v1249_v2 }
 0x188   : > { %v833_v40 = vadd.f32 %v10524_v11, %v832_v31  ;;  %v7269_v31 = vld [vmem:[#allocation7 + $0x38] sm:$0xf]  ;;  %v913_v34 = vpack.c.b16 %v905_v30, %v905_v30  ;;  %1200 = vmatpush.bf16.msrb.mxu3 %v1192_v10  ;;  %v9203_v30 = vld [vmem:[#allocation7 + $0x84] sm:$0xf0] }
 0x18a   : > { %v863_v50 = vmax.f32 %v833_v40, 0.0 }
 0x18f   : > { %v834_v32 = vpop.f32.mrf.mxu0 }
 0x190   : > { %v835_v38 = vadd.f32 %v10524_v11, %v834_v32  ;;  %v9194_v32 = vld [vmem:[#allocation7 + $0x3c] sm:$0xf0] }
 0x191   : > { %v7270_v33 = vor.u32 %v9194_v32, %v7269_v31 }
 0x192   : > { %v864_v44 = vmax.f32 %v835_v38, 0.0  ;;  %v7277_v38 = vld [vmem:[#allocation7 + $0x48] sm:$0xf] }
 0x193   : > { %1060 = vmatmul.bf16.vlgmr.msra.gmra.mxu3 %v7270_v33 }
 0x194   : > { %v10615_v55 = vpack.c.bf16 %v864_v44, %v863_v50  ;;  %v7285_v44 = vld [vmem:[#allocation7 + $0x58] sm:$0xf]  ;;  %v9193_v50 = vld [vmem:[#allocation7 + $0x3c] sm:$0xf] }
 0x195   : > { %954 = vmatmul.bf16.gmra.mxu1 %v7258_v25  ;;  %v7286_v48 = vor.u32 %v9198_v47, %v7285_v44  ;;  %v7314_v25 = vor.u32 %v9201_v24, %v7313_v23 }
 0x196   : > { %1469 = vmatmul.bf16.gmra.mxu0 %v7366_v35  ;;  %v9190_v35 = vld [vmem:[#allocation7 + $0x24] sm:$0xf] }
 0x197   : > { %v837_v36 = vpop.f32.mrf.mxu0 }
 0x198   : > { %v838_v37 = vadd.f32 %v10524_v11, %v837_v36  ;;  %v9186_v11 = vld [vmem:[#allocation7 + $0x4] sm:$0xf]  ;;  %v7259_v36 = vld [vmem:[#allocation7 + $0x28] sm:$0xf0] }
 0x199   : > { %v7246_v18 = vor.u32 %v9186_v11, %v7243_v49  ;;  %v9192_v11 = vld [vmem:[#allocation8] sm:$0xff]  ;;  %v1344_v49 = vunpack.c.l.b16 %v1338_v13 }
 0x19a   : > { %v865_v39 = vmax.f32 %v838_v37, 0.0  ;;  %v7262_v37 = vor.u32 %v9190_v35, %v7259_v36  ;;  %1201 = vmatpush.bf16.msrb.mxu3 %v9192_v11  ;;  %v9207_v11 = vld [vmem:[#allocation7 + $0xac] sm:$0xf] }
 0x19c   : > { %v878_v42 = vpack.c.bf16 %v865_v39, %v865_v39  ;;  %v9196_v39 = vld [vmem:[#allocation7 + $0x4c] sm:$0xf0] }
 0x19d   : > { %v7278_v40 = vor.u32 %v9196_v39, %v7277_v38  ;;  %v1690_v39 = vld [vmem:[#allocation8 + $0x38] sm:$0xf] }
 0x19e   : > { %v10607_v45 = vsel %vm932_vm2, %v878_v42, 0  ;;  %v906_v42 = vunpack.c.h.b16 %v885_v29  ;;  %v7321_v29 = vld [vmem:[#allocation7 + $0x80] sm:$0xf] }
 0x19f   : > { %v839_v51 = vpop.f32.mrf.mxu0  ;;  %967 = vmatpush.bf16.msra.mxu2 %v10607_v45  ;;  %1306 = vmatpush.bf16.msra.mxu1 %v10607_v45 }
 0x1a0   : > { %1658 = vmatpush.bf16.msra.mxu0 %v10607_v45  ;;  %v914_v43 = vpack.c.b16 %v906_v42, %v906_v42  ;;  %v7271_v51 = vld [vmem:[#allocation7 + $0x40] sm:$0xf0]  ;;  %v7329_v42 = vld [vmem:[#allocation7 + $0x90] sm:$0xf] }
 0x1a1   : > { %v7274_v53 = vor.u32 %v9193_v50, %v7271_v51 }
 0x1a3   : > { %968 = vmatpush.bf16.msra.mxu2 %v10615_v55  ;;  %1307 = vmatpush.bf16.msra.mxu1 %v10615_v55 }
 0x1a4   : > { %1659 = vmatpush.bf16.msra.mxu0 %v10615_v55  ;;  %1065 = vmatmul.bf16.gmra.mxu3 %v7278_v40  ;;  %v1696_v40 = vunpack.c.l.b16 %v1690_v39 }
 0x1a5   : > { %959 = vmatmul.bf16.gmra.mxu1 %v913_v34  ;;  %v7322_v34 = vor.u32 %v9203_v30, %v7321_v29 }
 0x1a6   : > { %1474 = vmatmul.bf16.gmra.mxu0 %v1433_v56  ;;  %v1026_v56 = vunpack.c.l.b16 %v1006_v54  ;;  %v1698_v44 = vpack.c.b16 %v1696_v40, %v1696_v40 }
 0x1a7   : > { %969 = vmatpush.bf16.msra.mxu2 %v10624_v1  ;;  %1308 = vmatpush.bf16.msra.mxu1 %v10624_v1 }
 0x1a8   : > { %1660 = vmatpush.bf16.msra.mxu0 %v10624_v1  ;;  %v1034_v58 = vpack.c.b16 %v1026_v56, %v1026_v56  ;;  %v1713_v54 = vsel %vm1138_vm1, %v1698_v44, 0  ;;  %v9220_v56 = vld [vmem:[#allocation8 + $0x30] sm:$0xff]  ;;  %v9213_v44 = vld [vmem:[#allocation8 + $0x24] sm:$0xff] }
 0x1ab   : > { %970 = vmatpush.bf16.msra.mxu2 %v10631_v60  ;;  %1309 = vmatpush.bf16.msra.mxu1 %v10631_v60 }
 0x1ac   : > { %1661 = vmatpush.bf16.msra.mxu0 %v10631_v60 }
 0x1af   : > { %971 = vmatpush.bf16.msra.mxu2 %v10636_v15  ;;  %1310 = vmatpush.bf16.msra.mxu1 %v10636_v15 }
 0x1b0   : > { %1662 = vmatpush.bf16.msra.mxu0 %v10636_v15 }
 0x1b2   : > { %7263 = vmatmul.msk.bf16.vlgmr.msra.gmra.mxu2 %vm919_vm3, %v7246_v18 }
 0x1b3   : > { %1083 = vmatpush.bf16.msrb.mxu2 %v10607_v45 }
 0x1b4   : > { %1897 = vmatpush.bf16.msrb.mxu0 %v1889_v16  ;;  %1070 = vmatmul.bf16.gmra.mxu3 %v7286_v48  ;;  %v1346_v16 = vpack.c.b16 %v1344_v49, %v1344_v49  ;;  %v7351_v49 = vld [vmem:[#allocation7 + $0xb0] sm:$0xf0] }
 0x1b6   : > { %7407 = vmatmul.msk.bf16.vlgmr.msra.gmra.mxu0 %vm919_vm3, %v7390_v22  ;;  %v1361_v20 = vsel %vm1138_vm1, %v1346_v16, 0 }
 0x1b7   : > { %1084 = vmatpush.bf16.msrb.mxu2 %v10615_v55  ;;  %1369 = vmatpush.bf16.msra.mxu3 %v1361_v20 }
 0x1b8   : > { %1898 = vmatpush.bf16.msrb.mxu0 %v9227_v21  ;;  %v9206_v21 = vld [vmem:[#allocation8 + $0x18] sm:$0xff] }
 0x1bb   : > { %1085 = vmatpush.bf16.msrb.mxu2 %v10624_v1  ;;  %1370 = vmatpush.bf16.msra.mxu3 %v9206_v21 }
 0x1bc   : > { %2155 = vmatpush.bf16.msra.mxu0 %v10546_v46 }
 0x1bf   : > { %1086 = vmatpush.bf16.msrb.mxu2 %v10631_v60 }
 0x1c0   : > { %2156 = vmatpush.bf16.msra.mxu0 %v10555_v52 }
 0x1c2   : > { %7264 = vmatmul.msk.bf16.gmra.mxu2 %vm919_vm3, %v7254_v28 }
 0x1c3   : > { %1087 = vmatpush.bf16.msrb.mxu2 %v10636_v15 }
 0x1c4   : > { %2157 = vmatpush.bf16.msra.mxu0 %v10562_v57  ;;  %1075 = vmatmul.bf16.gmra.mxu3 %v1034_v58 }
 0x1c7   : > { %1275 = vmatpush.bf16.msra.mxu2 %v10546_v46 }
 0x1c8   : > { %2158 = vmatpush.bf16.msra.mxu0 %v10571_v63 }
 0x1cb   : > { %1276 = vmatpush.bf16.msra.mxu2 %v10555_v52 }
 0x1cc   : > { %2159 = vmatpush.bf16.msra.mxu0 %v10578_v4 }
 0x1cf   : > { %1277 = vmatpush.bf16.msra.mxu2 %v10562_v57 }
 0x1d0   : > { %2160 = vmatpush.bf16.msra.mxu0 %v10587_v9 }
 0x1d2   : > { %7265 = vmatmul.msk.bf16.gmra.mxu2 %vm919_vm3, %v7262_v37 }
 0x1d3   : > { %1278 = vmatpush.bf16.msra.mxu2 %v10571_v63 }
 0x1d4   : > { %2161 = vmatpush.bf16.msra.mxu0 %v10592_v12 }
 0x1d7   : > { %1279 = vmatpush.bf16.msra.mxu2 %v10578_v4 }
 0x1d8   : > { %2162 = vmatpush.bf16.msra.mxu0 %v10529_v17 }
 0x1db   : > { %1280 = vmatpush.bf16.msra.mxu2 %v10587_v9 }
 0x1df   : > { %1281 = vmatpush.bf16.msra.mxu2 %v10592_v12 }
 0x1e2   : > { %7266 = vmatmul.msk.bf16.gmra.mxu2 %vm919_vm3, %v914_v43  ;;  %v9205_v43 = vld [vmem:[#allocation7 + $0x94] sm:$0xf0] }
 0x1e3   : > { %1282 = vmatpush.bf16.msra.mxu2 %v10529_v17 }
 0x1f2   : > { %7291 = vmatmul.msk.bf16.vlgmr.msrb.gmra.mxu2 %vm919_vm3, %v7274_v53  ;;  %v945_v5 = vpop.f32.mrf.mxu1  ;;  %v7330_v53 = vor.u32 %v9205_v43, %v7329_v42 }
 0x1f3   : > { %1482 = vmatpush.bf16.msrb.mxu2 %v10607_v45 }
 0x1f7   : > { %1483 = vmatpush.bf16.msrb.mxu2 %v10615_v55 }
 0x1fa   : > { %v947_v18 = vpop.f32.mrf.mxu1 }
 0x1fb   : > { %1484 = vmatpush.bf16.msrb.mxu2 %v10624_v1 }
 0x1ff   : > { %1485 = vmatpush.bf16.msrb.mxu2 %v10631_v60 }
 0x202   : > { %7292 = vmatmul.msk.bf16.gmra.mxu2 %vm919_vm3, %v7282_v62  ;;  %v950_v22 = vpop.f32.mrf.mxu1 }
 0x203   : > { %1486 = vmatpush.bf16.msrb.mxu2 %v10636_v15 }
 0x20a   : > { %v952_v26 = vpop.f32.mrf.mxu1 }
 0x212   : > { %7293 = vmatmul.msk.bf16.gmra.mxu2 %vm919_vm3, %v7290_v3  ;;  %v955_v28 = vpop.f32.mrf.mxu1 }
 0x216   : > { %v1061_v48 = vpop.f32.mrf.mxu3 }
 0x21a   : > { %v957_v35 = vpop.f32.mrf.mxu1 }
 0x21e   : > { %v1063_v62 = vpop.f32.mrf.mxu3 }
 0x222   : > { %7294 = vmatmul.msk.bf16.gmra.mxu2 %vm919_vm3, %v1035_v19  ;;  %v960_v38 = vpop.f32.mrf.mxu1  ;;  %v7354_v19 = vor.u32 %v9207_v11, %v7351_v49 }
 0x22a   : > { %v962_v58 = vpop.f32.mrf.mxu1 }
 0x232   : > { %1283 = vmatmul.bf16.vlgmr.msra.gmra.mxu2 %v7314_v25 }
 0x233   : > { %1721 = vmatpush.bf16.msra.mxu2 %v1713_v54  ;;  %v9209_v54 = vld [vmem:[#allocation7 + $0xbc] sm:$0xf] }
 0x235   : > { %v973_v27 = vpop.f32.mrf.mxu2 }
 0x236   : > { %v974_v32 = vadd.f32 %v973_v27, %v945_v5  ;;  %v1066_v5 = vpop.f32.mrf.mxu3 }
 0x237   : > { %1722 = vmatpush.bf16.msra.mxu2 %v9220_v56  ;;  %v7359_v56 = vld [vmem:[#allocation7 + $0xc0] sm:$0xf0] }
 0x238   : > { %v7362_v58 = vor.u32 %v9209_v54, %v7359_v56 }
 0x23d   : > { %v975_v31 = vpop.f32.mrf.mxu2 }
 0x23e   : > { %v976_v33 = vadd.f32 %v975_v31, %v947_v18  ;;  %v1068_v14 = vpop.f32.mrf.mxu3 }
 0x240   : > { %v992_v36 = vpack.c.bf16 %v976_v33, %v974_v32 }
 0x242   : > { %7307 = vmatmul.msk.bf16.vlgmr.msrb.gmra.mxu3 %vm1125_vm4, %v992_v36  ;;  %1288 = vmatmul.bf16.gmra.mxu2 %v7322_v34  ;;  %v1514_v36 = vld [vmem:[#allocation8 + $0x2c] sm:$0xf] }
 0x243   : > { %1627 = vmatpush.bf16.msrb.mxu3 %v10546_v46 }
 0x245   : > { %v978_v37 = vpop.f32.mrf.mxu2 }
 0x246   : > { %v979_v50 = vadd.f32 %v978_v37, %v950_v22  ;;  %v1071_v21 = vpop.f32.mrf.mxu3  ;;  %v1520_v37 = vunpack.c.l.b16 %v1514_v36 }
 0x247   : > { %1628 = vmatpush.bf16.msrb.mxu3 %v10555_v52 }
 0x24b   : > { %1629 = vmatpush.bf16.msrb.mxu3 %v10562_v57 }
 0x24d   : > { %v980_v47 = vpop.f32.mrf.mxu2 }
 0x24e   : > { %v981_v51 = vadd.f32 %v980_v47, %v952_v26  ;;  %v1073_v23 = vpop.f32.mrf.mxu3 }
 0x24f   : > { %1630 = vmatpush.bf16.msrb.mxu3 %v10571_v63 }
 0x250   : > { %v993_v59 = vpack.c.bf16 %v981_v51, %v979_v50 }
 0x252   : > { %7308 = vmatmul.msk.bf16.gmra.mxu3 %vm1125_vm4, %v993_v59  ;;  %1293 = vmatmul.bf16.gmra.mxu2 %v7330_v53 }
 0x253   : > { %1631 = vmatpush.bf16.msrb.mxu3 %v10578_v4 }
 0x255   : > { %v983_v61 = vpop.f32.mrf.mxu2 }
 0x256   : > { %v984_v6 = vadd.f32 %v983_v61, %v955_v28  ;;  %v1076_v28 = vpop.f32.mrf.mxu3  ;;  %v9200_v61 = vld [vmem:[#allocation7 + $0x74] sm:$0xf] }
 0x257   : > { %1632 = vmatpush.bf16.msrb.mxu3 %v10587_v9 }
 0x25b   : > { %1633 = vmatpush.bf16.msrb.mxu3 %v10592_v12 }
 0x25d   : > { %v985_v3 = vpop.f32.mrf.mxu2 }
 0x25e   : > { %v986_v7 = vadd.f32 %v985_v3, %v957_v35  ;;  %v1078_v30 = vpop.f32.mrf.mxu3 }
 0x25f   : > { %1634 = vmatpush.bf16.msrb.mxu3 %v10529_v17 }
 0x260   : > { %v994_v10 = vpack.c.bf16 %v986_v7, %v984_v6  ;;  %v7367_v6 = vld [vmem:[#allocation7 + $0xd0] sm:$0xf0] }
 0x262   : > { %7309 = vmatmul.msk.bf16.gmra.mxu3 %vm1125_vm4, %v994_v10  ;;  %1298 = vmatmul.bf16.gmra.mxu2 %v1257_v8 }
 0x265   : > { %v988_v13 = vpop.f32.mrf.mxu2 }
 0x266   : > { %v989_v16 = vadd.f32 %v988_v13, %v960_v38  ;;  %v1522_v38 = vpack.c.b16 %v1520_v37, %v1520_v37  ;;  %v9202_v13 = vld [vmem:[#allocation7 + $0x84] sm:$0xf] }
 0x268   : > { %v995_v20 = vpack.c.bf16 %v989_v16, %v989_v16  ;;  %v1537_v43 = vsel %vm1138_vm1, %v1522_v38, 0  ;;  %v1426_v16 = vunpack.c.h.b16 %v10604_v41 }
 0x26d   : > { %v990_v18 = vpop.f32.mrf.mxu2 }
 0x272   : > { %7310 = vmatmul.msk.bf16.gmra.mxu3 %vm1125_vm4, %v995_v20  ;;  %7371 = vmatmul.msk.bf16.vlgmr.msrb.gmra.mxu2 %vm919_vm3, %v7354_v19  ;;  %v1434_v19 = vpack.c.b16 %v1426_v16, %v1426_v16 }
 0x273   : > { %1979 = vmatpush.bf16.msrb.mxu2 %v10546_v46 }
 0x275   : > { %v1089_v22 = vpop.f32.mrf.mxu2 }
 0x276   : > { %v1090_v25 = vadd.f32 %v1089_v22, %v1061_v48  ;;  %v9204_v22 = vld [vmem:[#allocation7 + $0x94] sm:$0xf] }
 0x277   : > { %1980 = vmatpush.bf16.msrb.mxu2 %v10555_v52 }
 0x27b   : > { %1981 = vmatpush.bf16.msrb.mxu2 %v10562_v57 }
 0x27d   : > { %v1091_v24 = vpop.f32.mrf.mxu2 }
 0x27e   : > { %v1092_v26 = vadd.f32 %v1091_v24, %v1063_v62  ;;  %v7315_v62 = vld [vmem:[#allocation7 + $0x78] sm:$0xf0] }
 0x27f   : > { %1982 = vmatpush.bf16.msrb.mxu2 %v10571_v63  ;;  %v7318_v3 = vor.u32 %v9200_v61, %v7315_v62 }
 0x280   : > { %v1108_v27 = vpack.c.bf16 %v1092_v26, %v1090_v25 }
 0x282   : > { %7299 = vmatmul.msk.bf16.vlgmr.msrb.gmra.mxu1 %vm1125_vm4, %v1108_v27  ;;  %7372 = vmatmul.msk.bf16.gmra.mxu2 %vm919_vm3, %v7362_v58 }
 0x283   : > { %1983 = vmatpush.bf16.msrb.mxu2 %v10578_v4  ;;  %1545 = vmatpush.bf16.msrb.mxu1 %v1537_v43 }
 0x285   : > { %v1094_v29 = vpop.f32.mrf.mxu2 }
 0x286   : > { %v1095_v32 = vadd.f32 %v1094_v29, %v1066_v5  ;;  %v9211_v5 = vld [vmem:[#allocation7 + $0xcc] sm:$0xf] }
 0x287   : > { %1984 = vmatpush.bf16.msrb.mxu2 %v10587_v9  ;;  %1546 = vmatpush.bf16.msrb.mxu1 %v9213_v44  ;;  %v7370_v7 = vor.u32 %v9211_v5, %v7367_v6 }
 0x28b   : > { %1985 = vmatpush.bf16.msrb.mxu2 %v10592_v12 }
 0x28d   : > { %v1096_v31 = vpop.f32.mrf.mxu2 }
 0x28e   : > { %v1097_v33 = vadd.f32 %v1096_v31, %v1068_v14  ;;  %v7323_v14 = vld [vmem:[#allocation7 + $0x88] sm:$0xf0] }
 0x28f   : > { %1986 = vmatpush.bf16.msrb.mxu2 %v10529_v17  ;;  %v7326_v18 = vor.u32 %v9202_v13, %v7323_v14 }
 0x290   : > { %v1109_v34 = vpack.c.bf16 %v1097_v33, %v1095_v32  ;;  %v1460_v32 = vpop.f32.mrf.mxu0 }
 0x292   : > { %7300 = vmatmul.msk.bf16.gmra.mxu1 %vm1125_vm4, %v1109_v34  ;;  %7373 = vmatmul.msk.bf16.gmra.mxu2 %vm919_vm3, %v7370_v7 }
 0x295   : > { %v1099_v35 = vpop.f32.mrf.mxu2 }
 0x296   : > { %v1100_v40 = vadd.f32 %v1099_v35, %v1071_v21 }
 0x298   : > { %v1462_v35 = vpop.f32.mrf.mxu0 }
 0x29d   : > { %v1101_v39 = vpop.f32.mrf.mxu2 }
 0x29e   : > { %v1102_v42 = vadd.f32 %v1101_v39, %v1073_v23  ;;  %v7331_v23 = vld [vmem:[#allocation7 + $0x98] sm:$0xf0] }
 0x29f   : > { %v7334_v25 = vor.u32 %v9204_v22, %v7331_v23 }
 0x2a0   : > { %v1110_v47 = vpack.c.bf16 %v1102_v42, %v1100_v40  ;;  %v1465_v61 = vpop.f32.mrf.mxu0 }
 0x2a2   : > { %7301 = vmatmul.msk.bf16.gmra.mxu1 %vm1125_vm4, %v1110_v47  ;;  %7374 = vmatmul.msk.bf16.gmra.mxu2 %vm919_vm3, %v1434_v19 }
 0x2a5   : > { %v1104_v48 = vpop.f32.mrf.mxu2 }
 0x2a6   : > { %v1105_v50 = vadd.f32 %v1104_v48, %v1076_v28  ;;  %v1250_v28 = vunpack.c.h.b16 %v10688_v0 }
 0x2a8   : > { %v1111_v53 = vpack.c.bf16 %v1105_v50, %v1105_v50  ;;  %v1258_v31 = vpack.c.b16 %v1250_v28, %v1250_v28  ;;  %v1467_v6 = vpop.f32.mrf.mxu0 }
 0x2ad   : > { %v1106_v51 = vpop.f32.mrf.mxu2 }
 0x2b0   : > { %v1470_v19 = vpop.f32.mrf.mxu0 }
 0x2b2   : > { %7302 = vmatmul.msk.bf16.gmra.mxu1 %vm1125_vm4, %v1111_v53 }
 0x2b5   : > { %v10709_v59 = vpop.f32.mrf.mxu2 }
 0x2bd   : > { %v10712_v2 = vpop.f32.mrf.mxu2 }
 0x2c2   : > { %7335 = vmatmul.msk.bf16.vlgmr.msra.gmra.mxu1 %vm919_vm3, %v7318_v3 }
 0x2c3   : > { %1803 = vmatpush.bf16.msra.mxu1 %v10546_v46 }
 0x2c5   : > { %v1203_v8 = vpop.f32.mrf.mxu3  ;;  %v10716_v10 = vpop.f32.mrf.mxu2 }
 0x2c7   : > { %1804 = vmatpush.bf16.msra.mxu1 %v10555_v52 }
 0x2cb   : > { %1805 = vmatpush.bf16.msra.mxu1 %v10562_v57 }
 0x2cd   : > { %v10721_v11 = vpop.f32.mrf.mxu3  ;;  %v10723_v49 = vpop.f32.mrf.mxu2 }
 0x2cf   : > { %1806 = vmatpush.bf16.msra.mxu1 %v10571_v63 }
 0x2d2   : > { %7336 = vmatmul.msk.bf16.gmra.mxu1 %vm919_vm3, %v7326_v18 }
 0x2d3   : > { %1807 = vmatpush.bf16.msra.mxu1 %v10578_v4 }
 0x2d5   : > { %v1208_v20 = vpop.f32.mrf.mxu3  ;;  %v10729_v21 = vpop.f32.mrf.mxu2 }
 0x2d7   : > { %1808 = vmatpush.bf16.msra.mxu1 %v10587_v9 }
 0x2db   : > { %1809 = vmatpush.bf16.msra.mxu1 %v10592_v12 }
 0x2dd   : > { %v10734_v41 = vpop.f32.mrf.mxu3  ;;  %v10736_v24 = vpop.f32.mrf.mxu2 }
 0x2df   : > { %1810 = vmatpush.bf16.msra.mxu1 %v10529_v17 }
 0x2e2   : > { %7337 = vmatmul.msk.bf16.gmra.mxu1 %vm919_vm3, %v7334_v25 }
 0x2e5   : > { %v1213_v26 = vpop.f32.mrf.mxu3  ;;  %v10740_v27 = vpop.f32.mrf.mxu2 }
 0x2ed   : > { %v10743_v29 = vpop.f32.mrf.mxu3  ;;  %v1301_v30 = vpop.f32.mrf.mxu2 }
 0x2f2   : > { %7338 = vmatmul.msk.bf16.gmra.mxu1 %vm919_vm3, %v1258_v31 }
 0x2f5   : > { %v1218_v33 = vpop.f32.mrf.mxu3  ;;  %v1488_v34 = vpop.f32.mrf.mxu2 }
 0x2f6   : > { %v1489_v36 = vadd.f32 %v1488_v34, %v1460_v32 }
 0x2fd   : > { %v1220_v37 = vpop.f32.mrf.mxu3  ;;  %v1490_v38 = vpop.f32.mrf.mxu2 }
 0x2fe   : > { %v1491_v39 = vadd.f32 %v1490_v38, %v1462_v35 }
 0x2ff   : > { %v1151_v40 = vpop.f32.mrf.mxu1 }
 0x300   : > { %v1507_v42 = vpack.c.bf16 %v1491_v39, %v1489_v36  ;;  %v10746_v43 = vadd.f32 %v1203_v8, %v1151_v40 }
 0x302   : > { %7379 = vmatmul.msk.bf16.vlgmr.msrb.gmra.mxu1 %vm1125_vm4, %v1507_v42 }
 0x303   : > { %2010 = vmatpush.bf16.msrb.mxu1 %v10607_v45 }
 0x305   : > { %v1493_v62 = vpop.f32.mrf.mxu2 }
 0x306   : > { %v1494_v5 = vadd.f32 %v1493_v62, %v1465_v61 }
 0x307   : > { %2011 = vmatpush.bf16.msrb.mxu1 %v10615_v55  ;;  %v10751_v0 = vpop.f32.mrf.mxu1 }
 0x30b   : > { %2012 = vmatpush.bf16.msrb.mxu1 %v10624_v1 }
 0x30d   : > { %v1495_v7 = vpop.f32.mrf.mxu2 }
 0x30e   : > { %v1496_v8 = vadd.f32 %v1495_v7, %v1467_v6  ;;  %v9218_v6 = vld [vmem:[#allocation7 + $0x104] sm:$0xf]  ;;  %v7403_v7 = vld [vmem:[#allocation7 + $0x108] sm:$0xf0] }
 0x30f   : > { %2013 = vmatpush.bf16.msrb.mxu1 %v10631_v60  ;;  %v1156_v44 = vpop.f32.mrf.mxu1 }
 0x310   : > { %v10755_v47 = vadd.f32 %v1208_v20, %v1156_v44  ;;  %v1508_v13 = vpack.c.bf16 %v1496_v8, %v1494_v5  ;;  %v9215_v8 = vld [vmem:[#allocation7 + $0xe4] sm:$0xf0] }
 0x312   : > { %7380 = vmatmul.msk.bf16.gmra.mxu1 %vm1125_vm4, %v1508_v13 }
 0x313   : > { %2014 = vmatpush.bf16.msrb.mxu1 %v10636_v15 }
 0x315   : > { %v1498_v20 = vpop.f32.mrf.mxu2 }
 0x316   : > { %v1499_v25 = vadd.f32 %v1498_v20, %v1470_v19  ;;  %v7393_v19 = vld [vmem:[#allocation7 + $0xf0] sm:$0xf] }
 0x317   : > { %v10758_v48 = vpop.f32.mrf.mxu1 }
 0x31d   : > { %v1500_v28 = vpop.f32.mrf.mxu2 }
 0x31f   : > { %v1161_v50 = vpop.f32.mrf.mxu1 }
 0x320   : > { %v10760_v51 = vadd.f32 %v1213_v26, %v1161_v50  ;;  %v1472_v26 = vpop.f32.mrf.mxu0  ;;  %v9216_v50 = vld [vmem:[#allocation7 + $0xf4] sm:$0xf] }
 0x321   : > { %v1501_v30 = vadd.f32 %v1500_v28, %v1472_v26  ;;  %v9234_v28 = vld [vmem:[#allocation8 + $0x48] sm:$0xff] }
 0x323   : > { %v1509_v31 = vpack.c.bf16 %v1501_v30, %v1499_v25  ;;  %v7401_v30 = vld [vmem:[#allocation7 + $0x100] sm:$0xf] }
 0x325   : > { %7381 = vmatmul.msk.bf16.gmra.mxu1 %vm1125_vm4, %v1509_v31  ;;  %v1503_v35 = vpop.f32.mrf.mxu2  ;;  %v9219_v31 = vld [vmem:[#allocation7 + $0x104] sm:$0xf0] }
 0x327   : > { %v10762_v53 = vpop.f32.mrf.mxu1 }
 0x328   : > { %v1475_v34 = vpop.f32.mrf.mxu0 }
 0x329   : > { %v1504_v36 = vadd.f32 %v1503_v35, %v1475_v34 }
 0x32b   : > { %v1510_v38 = vpack.c.bf16 %v1504_v36, %v1504_v36 }
 0x32d   : > { %v1505_v40 = vpop.f32.mrf.mxu2 }
 0x32f   : > { %v1166_v54 = vpop.f32.mrf.mxu1 }
 0x330   : > { %v10764_v56 = vadd.f32 %v1218_v33, %v1166_v54  ;;  %v1477_v39 = vpop.f32.mrf.mxu0  ;;  %v7395_v54 = vld [vmem:[#allocation7 + $0xf8] sm:$0xf0] }
 0x331   : > { %v9224_v39 = vld [vmem:[#allocation7 + $0x12c] sm:$0xf0] }
 0x335   : > { %7382 = vmatmul.msk.bf16.gmra.mxu1 %vm1125_vm4, %v1510_v38  ;;  %v7429_v38 = vld [vmem:[#allocation7 + $0x128] sm:$0xf] }
 0x336   : > { %v7430_v40 = vor.u32 %v9224_v39, %v7429_v38 }
 0x337   : > { %v1168_v58 = vpop.f32.mrf.mxu1 }
 0x338   : > { %v7398_v58 = vor.u32 %v9216_v50, %v7395_v54 }
 0x33a   : > { %7408 = vmatmul.msk.bf16.gmra.mxu0 %vm919_vm3, %v7398_v58 }
 0x33f   : > { %v1312_v3 = vpop.f32.mrf.mxu1 }
 0x340   : > { %v1313_v16 = vadd.f32 %v1312_v3, %v10709_v59 }
 0x347   : > { %v1314_v14 = vpop.f32.mrf.mxu1 }
 0x348   : > { %v1315_v18 = vadd.f32 %v1314_v14, %v10712_v2  ;;  %v1581_v14 = vld [vmem:[#allocation7 + $0x110] sm:$0x11] }
 0x349   : > { %v1601_v35 = vunpack.c.l.b16 %v1581_v14 }
 0x34a   : > { %v1331_v22 = vpack.c.bf16 %v1315_v18, %v1313_v16  ;;  %v1602_v16 = vunpack.c.h.b16 %v1581_v14  ;;  %v9225_v14 = vld [vmem:[#allocation7 + $0x13c] sm:$0xf] }
 0x34b   : > { %v1609_v36 = vpack.c.b16 %v1601_v35, %v1601_v35 }
 0x34c   : > { %7343 = vmatmul.msk.bf16.vlgmr.msra.gmra.mxu3 %vm1125_vm4, %v1331_v22  ;;  %v1610_v18 = vpack.c.b16 %v1602_v16, %v1602_v16  ;;  %v2042_v22 = vld [vmem:[#allocation8 + $0x50] sm:$0xf]  ;;  %v7439_v16 = vld [vmem:[#allocation7 + $0x140] sm:$0xf0] }
 0x34d   : > { %1834 = vmatpush.bf16.msra.mxu3 %v10607_v45 }
 0x34f   : > { %v1317_v23 = vpop.f32.mrf.mxu1 }
 0x350   : > { %v1318_v2 = vadd.f32 %v1317_v23, %v10716_v10  ;;  %v2048_v23 = vunpack.c.l.b16 %v2042_v22 }
 0x351   : > { %1835 = vmatpush.bf16.msra.mxu3 %v10615_v55 }
 0x352   : > { %v2050_v25 = vpack.c.b16 %v2048_v23, %v2048_v23 }
 0x354   : > { %v2065_v26 = vsel %vm1138_vm1, %v2050_v25, 0 }
 0x355   : > { %1836 = vmatpush.bf16.msra.mxu3 %v10624_v1 }
 0x357   : > { %v1319_v59 = vpop.f32.mrf.mxu1 }
 0x358   : > { %v1320_v32 = vadd.f32 %v1319_v59, %v10723_v49  ;;  %v7402_v59 = vor.u32 %v9219_v31, %v7401_v30 }
 0x359   : > { %1837 = vmatpush.bf16.msra.mxu3 %v10631_v60 }
 0x35a   : > { %v1332_v33 = vpack.c.bf16 %v1320_v32, %v1318_v2  ;;  %v7421_v32 = vld [vmem:[#allocation7 + $0x118] sm:$0xf] }
 0x35c   : > { %7344 = vmatmul.msk.bf16.gmra.mxu3 %vm1125_vm4, %v1332_v33  ;;  %v9222_v33 = vld [vmem:[#allocation7 + $0x11c] sm:$0xf0] }
 0x35d   : > { %1838 = vmatpush.bf16.msra.mxu3 %v10636_v15  ;;  %v7422_v34 = vor.u32 %v9222_v33, %v7421_v32 }
 0x35f   : > { %v1322_v37 = vpop.f32.mrf.mxu1  ;;  %1811 = vmatmul.bf16.vlgmr.msra.gmra.mxu1 %v7422_v34 }
 0x360   : > { %v1323_v10 = vadd.f32 %v1322_v37, %v10729_v21  ;;  %v7406_v21 = vor.u32 %v9218_v6, %v7403_v7  ;;  %v9223_v7 = vld [vmem:[#allocation7 + $0x12c] sm:$0xf] }
 0x362   : > { %7409 = vmatmul.msk.bf16.gmra.mxu0 %vm919_vm3, %v7406_v21  ;;  %v7431_v21 = vld [vmem:[#allocation7 + $0x130] sm:$0xf0] }
 0x367   : > { %v1324_v42 = vpop.f32.mrf.mxu1 }
 0x368   : > { %v1325_v49 = vadd.f32 %v1324_v42, %v10736_v24  ;;  %v7385_v24 = vld [vmem:[#allocation7 + $0xe0] sm:$0xf] }
 0x369   : > { %v7386_v13 = vor.u32 %v9215_v8, %v7385_v24  ;;  %v7434_v8 = vor.u32 %v9223_v7, %v7431_v21  ;;  %v9228_v21 = vld [vmem:[#allocation7 + $0x154] sm:$0xf] }
 0x36a   : > { %v1333_v44 = vpack.c.bf16 %v1325_v49, %v1323_v10  ;;  %v9221_v10 = vld [vmem:[#allocation7 + $0x11c] sm:$0xf]  ;;  %v7423_v49 = vld [vmem:[#allocation7 + $0x120] sm:$0xf0] }
 0x36c   : > { %7345 = vmatmul.msk.bf16.gmra.mxu3 %vm1125_vm4, %v1333_v44  ;;  %v7426_v44 = vor.u32 %v9221_v10, %v7423_v49 }
 0x36f   : > { %v1327_v61 = vpop.f32.mrf.mxu1  ;;  %1816 = vmatmul.bf16.gmra.mxu1 %v7430_v40 }
 0x370   : > { %v1328_v62 = vadd.f32 %v1327_v61, %v10740_v27  ;;  %v9217_v27 = vld [vmem:[#allocation7 + $0xf4] sm:$0xf0] }
 0x371   : > { %v7394_v20 = vor.u32 %v9217_v27, %v7393_v19  ;;  %v7437_v61 = vld [vmem:[#allocation7 + $0x138] sm:$0xf]  ;;  %v1664_v19 = vpop.f32.mrf.mxu0 }
 0x372   : > { %v1334_v5 = vpack.c.bf16 %v1328_v62, %v1328_v62  ;;  %7410 = vmatmul.msk.bf16.gmra.mxu0 %vm919_vm3, %v1610_v18  ;;  %v9226_v62 = vld [vmem:[#allocation7 + $0x13c] sm:$0xf0]  ;;  %v1757_v18 = vld [vmem:[#allocation7 + $0x148] sm:$0x11] }
 0x373   : > { %v1777_v27 = vunpack.c.l.b16 %v1757_v18  ;;  %v1778_v25 = vunpack.c.h.b16 %v1757_v18 }
 0x377   : > { %v1329_v3 = vpop.f32.mrf.mxu1 }
 0x379   : > { %v1666_v23 = vpop.f32.mrf.mxu0 }
 0x37c   : > { %7346 = vmatmul.msk.bf16.gmra.mxu3 %vm1125_vm4, %v1334_v5  ;;  %v7438_v5 = vor.u32 %v9226_v62, %v7437_v61 }
 0x37f   : > { %v1548_v2 = vpop.f32.mrf.mxu1  ;;  %1821 = vmatmul.bf16.gmra.mxu1 %v7438_v5 }
 0x387   : > { %v10789_v37 = vpop.f32.mrf.mxu1 }
 0x38c   : > { %1635 = vmatmul.bf16.vlgmr.msrb.gmra.mxu3 %v7386_v13 }
 0x38d   : > { %2073 = vmatpush.bf16.msrb.mxu3 %v2065_v26 }
 0x38f   : > { %v1553_v42 = vpop.f32.mrf.mxu1 }
 0x391   : > { %2074 = vmatpush.bf16.msrb.mxu3 %v9234_v28  ;;  %v1786_v28 = vpack.c.b16 %v1778_v25, %v1778_v25 }
 0x397   : > { %v10791_v50 = vpop.f32.mrf.mxu1 }
 0x39c   : > { %1640 = vmatmul.bf16.gmra.mxu3 %v7394_v20  ;;  %v7442_v20 = vor.u32 %v9225_v14, %v7439_v16 }
 0x3a2   : > { %v1558_v6 = vpop.f32.mrf.mxu1 }
 0x3ac   : > { %1645 = vmatmul.bf16.gmra.mxu3 %v7402_v59 }
 0x3b7   : > { %v1669_v30 = vpop.f32.mrf.mxu0 }
 0x3bc   : > { %1650 = vmatmul.bf16.gmra.mxu3 %v1609_v36 }
 0x3cc   : > { %7443 = vmatmul.msk.bf16.vlgmr.msra.gmra.mxu3 %vm919_vm3, %v7426_v44 }
 0x3cd   : > { %2331 = vmatpush.bf16.msra.mxu3 %v10546_v46  ;;  %v10803_v46 = vpop.f32.mrf.mxu1 }
 0x3cf   : > { %v1372_v54 = vpop.f32.mrf.mxu3 }
 0x3d0   : > { %v1391_v58 = vadd.f32 %v1372_v54, %v10746_v43 }
 0x3d1   : > { %2332 = vmatpush.bf16.msra.mxu3 %v10555_v52 }
 0x3d2   : > { %v10797_v3 = vadd.f32 %v1548_v2, %v1391_v58  ;;  %v1671_v2 = vpop.f32.mrf.mxu0 }
 0x3d5   : > { %2333 = vmatpush.bf16.msra.mxu3 %v10562_v57  ;;  %v1563_v57 = vpop.f32.mrf.mxu1 }
 0x3d7   : > { %v10800_v24 = vpop.f32.mrf.mxu3 }
 0x3d9   : > { %2334 = vmatpush.bf16.msra.mxu3 %v10571_v63 }
 0x3dc   : > { %7444 = vmatmul.msk.bf16.gmra.mxu3 %vm919_vm3, %v7434_v8  ;;  %v7459_v8 = vld [vmem:[#allocation7 + $0x158] sm:$0xf0] }
 0x3dd   : > { %2335 = vmatpush.bf16.msra.mxu3 %v10578_v4  ;;  %v1785_v4 = vpack.c.b16 %v1777_v27, %v1777_v27  ;;  %v9230_v27 = vld [vmem:[#allocation7 + $0x164] sm:$0xf] }
 0x3df   : > { %v1377_v52 = vpop.f32.mrf.mxu3  ;;  %1826 = vmatmul.bf16.gmra.mxu1 %v1785_v4  ;;  %v1674_v33 = vpop.f32.mrf.mxu0 }
 0x3e0   : > { %v1393_v43 = vadd.f32 %v1377_v52, %v10755_v47  ;;  %v1565_v47 = vpop.f32.mrf.mxu1 }
 0x3e1   : > { %2336 = vmatpush.bf16.msra.mxu3 %v10587_v9 }
 0x3e2   : > { %v10809_v13 = vadd.f32 %v1553_v42, %v1393_v43  ;;  %v7462_v43 = vor.u32 %v9228_v21, %v7459_v8 }
 0x3e5   : > { %2337 = vmatpush.bf16.msra.mxu3 %v10592_v12 }
 0x3e7   : > { %v10812_v63 = vpop.f32.mrf.mxu3  ;;  %v1676_v35 = vpop.f32.mrf.mxu0 }
 0x3e8   : > { %v1812_v61 = vpop.f32.mrf.mxu1 }
 0x3e9   : > { %2338 = vmatpush.bf16.msra.mxu3 %v10529_v17 }
 0x3ec   : > { %7445 = vmatmul.msk.bf16.gmra.mxu3 %vm919_vm3, %v7442_v20  ;;  %v7467_v20 = vld [vmem:[#allocation7 + $0x168] sm:$0xf0] }
 0x3ed   : > { %v7470_v4 = vor.u32 %v9230_v27, %v7467_v20 }
 0x3ef   : > { %v1382_v9 = vpop.f32.mrf.mxu3  ;;  %v1679_v42 = vpop.f32.mrf.mxu0  ;;  %7479 = vmatmul.msk.bf16.vlgmr.msrb.gmra.mxu1 %vm919_vm3, %v7462_v43 }
 0x3f0   : > { %v1395_v22 = vadd.f32 %v1382_v9, %v10760_v51  ;;  %v1814_v7 = vpop.f32.mrf.mxu1 }
 0x3f2   : > { %v10817_v12 = vadd.f32 %v1558_v6, %v1395_v22  ;;  %v7457_v22 = vld [vmem:[#allocation7 + $0x150] sm:$0xf] }
 0x3f7   : > { %v10819_v26 = vpop.f32.mrf.mxu3  ;;  %v1681_v10 = vpop.f32.mrf.mxu0 }
 0x3f8   : > { %v1817_v14 = vpop.f32.mrf.mxu1 }
 0x3fc   : > { %7446 = vmatmul.msk.bf16.gmra.mxu3 %vm919_vm3, %v1786_v28 }
 0x3ff   : > { %v1387_v31 = vpop.f32.mrf.mxu3  ;;  %7480 = vmatmul.msk.bf16.gmra.mxu1 %vm919_vm3, %v7470_v4 }
 0x400   : > { %v1397_v17 = vadd.f32 %v1387_v31, %v10764_v56  ;;  %v1819_v47 = vpop.f32.mrf.mxu1 }
 0x402   : > { %v10823_v59 = vadd.f32 %v1563_v57, %v1397_v17 }
 0x407   : > { %v1389_v32 = vpop.f32.mrf.mxu3 }
 0x408   : > { %v1822_v28 = vpop.f32.mrf.mxu1  ;;  %v7475_v32 = vld [vmem:[#allocation7 + $0x178] sm:$0xf0] }
 0x40f   : > { %v1636_v34 = vpop.f32.mrf.mxu3 }
 0x410   : > { %v1665_v36 = vadd.f32 %v1664_v19, %v1636_v34 }
 0x417   : > { %v1638_v51 = vpop.f32.mrf.mxu3 }
 0x418   : > { %v1667_v38 = vadd.f32 %v1666_v23, %v1638_v51  ;;  %v9229_v23 = vld [vmem:[#allocation7 + $0x154] sm:$0xf0] }
 0x419   : > { %v7458_v17 = vor.u32 %v9229_v23, %v7457_v22  ;;  %v7503_v22 = vld [vmem:[#allocation7 + $0x1a0] sm:$0xf0]  ;;  %v7501_v23 = vld [vmem:[#allocation7 + $0x198] sm:$0xf] }
 0x41a   : > { %v1683_v39 = vpack.c.bf16 %v1667_v38, %v1665_v36  ;;  %v7465_v36 = vld [vmem:[#allocation7 + $0x160] sm:$0xf]  ;;  %v9231_v38 = vld [vmem:[#allocation7 + $0x164] sm:$0xf0] }
 0x41c   : > { %7415 = vmatmul.msk.bf16.vlgmr.msra.gmra.mxu2 %vm1125_vm4, %v1683_v39 }
 0x41d   : > { %2186 = vmatpush.bf16.msra.mxu2 %v10607_v45 }
 0x41f   : > { %v1641_v40 = vpop.f32.mrf.mxu3 }
 0x420   : > { %v1670_v49 = vadd.f32 %v1669_v30, %v1641_v40 }
 0x421   : > { %2187 = vmatpush.bf16.msra.mxu2 %v10615_v55 }
 0x425   : > { %2188 = vmatpush.bf16.msra.mxu2 %v10624_v1 }
 0x427   : > { %v1643_v56 = vpop.f32.mrf.mxu3 }
 0x428   : > { %v1672_v44 = vadd.f32 %v1671_v2, %v1643_v56  ;;  %v9232_v2 = vld [vmem:[#allocation7 + $0x174] sm:$0xf]  ;;  %v7466_v56 = vor.u32 %v9231_v38, %v7465_v36 }
 0x429   : > { %2189 = vmatpush.bf16.msra.mxu2 %v10631_v60  ;;  %v7478_v34 = vor.u32 %v9232_v2, %v7475_v32  ;;  %v9239_v32 = vld [vmem:[#allocation7 + $0x1ac] sm:$0xf] }
 0x42a   : > { %v1684_v54 = vpack.c.bf16 %v1672_v44, %v1670_v49  ;;  %v1933_v44 = vld [vmem:[#allocation7 + $0x180] sm:$0x11] }
 0x42b   : > { %7481 = vmatmul.msk.bf16.gmra.mxu1 %vm919_vm3, %v7478_v34  ;;  %v7509_v34 = vld [vmem:[#allocation7 + $0x1a8] sm:$0xf] }
 0x42c   : > { %7416 = vmatmul.msk.bf16.gmra.mxu2 %vm1125_vm4, %v1684_v54 }
 0x42d   : > { %2190 = vmatpush.bf16.msra.mxu2 %v10636_v15 }
 0x42f   : > { %v1646_v58 = vpop.f32.mrf.mxu3 }
 0x430   : > { %v1675_v5 = vadd.f32 %v1674_v33, %v1646_v58  ;;  %v7473_v58 = vld [vmem:[#allocation7 + $0x170] sm:$0xf] }
 0x437   : > { %v1648_v62 = vpop.f32.mrf.mxu3 }
 0x438   : > { %v1677_v6 = vadd.f32 %v1676_v35, %v1648_v62  ;;  %v1824_v35 = vpop.f32.mrf.mxu1 }
 0x43a   : > { %v1685_v52 = vpack.c.bf16 %v1677_v6, %v1675_v5 }
 0x43c   : > { %7417 = vmatmul.msk.bf16.gmra.mxu2 %vm1125_vm4, %v1685_v52  ;;  %v1953_v52 = vunpack.c.l.b16 %v1933_v44 }
 0x43f   : > { %v1651_v57 = vpop.f32.mrf.mxu3 }
 0x440   : > { %v1680_v16 = vadd.f32 %v1679_v42, %v1651_v57  ;;  %v1961_v57 = vpack.c.b16 %v1953_v52, %v1953_v52 }
 0x442   : > { %v1686_v19 = vpack.c.bf16 %v1680_v16, %v1680_v16  ;;  %v7495_v16 = vld [vmem:[#allocation7 + $0x190] sm:$0xf0] }
 0x447   : > { %v1653_v18 = vpop.f32.mrf.mxu3 }
 0x448   : > { %v7493_v18 = vld [vmem:[#allocation7 + $0x188] sm:$0xf] }
 0x44c   : > { %7418 = vmatmul.msk.bf16.gmra.mxu2 %vm1125_vm4, %v1686_v19  ;;  %v9236_v19 = vld [vmem:[#allocation7 + $0x18c] sm:$0xf0] }
 0x44d   : > { %v7494_v20 = vor.u32 %v9236_v19, %v7493_v18 }
 0x44f   : > { %v1840_v9 = vpop.f32.mrf.mxu3 }
 0x450   : > { %v1841_v25 = vadd.f32 %v1840_v9, %v1812_v61  ;;  %v9233_v61 = vld [vmem:[#allocation7 + $0x174] sm:$0xf0]  ;;  %v9237_v9 = vld [vmem:[#allocation7 + $0x19c] sm:$0xf] }
 0x457   : > { %v1842_v30 = vpop.f32.mrf.mxu3 }
 0x458   : > { %v1843_v31 = vadd.f32 %v1842_v30, %v1814_v7  ;;  %v7474_v7 = vor.u32 %v9233_v61, %v7473_v58  ;;  %v7506_v30 = vor.u32 %v9237_v9, %v7503_v22 }
 0x45a   : > { %v1859_v33 = vpack.c.bf16 %v1843_v31, %v1841_v25  ;;  %v9238_v25 = vld [vmem:[#allocation7 + $0x19c] sm:$0xf0] }
 0x45b   : > { %v7502_v31 = vor.u32 %v9238_v25, %v7501_v23  ;;  %v2218_v23 = vld [vmem:[#allocation8 + $0x5c] sm:$0xf] }
 0x45c   : > { %7451 = vmatmul.msk.bf16.vlgmr.msrb.gmra.mxu0 %vm1125_vm4, %v1859_v33  ;;  %1987 = vmatmul.bf16.vlgmr.msrb.gmra.mxu2 %v7458_v17  ;;  %v1827_v10 = vpop.f32.mrf.mxu1  ;;  %v7511_v33 = vld [vmem:[#allocation7 + $0x1b0] sm:$0xf0] }
 0x45d   : > { %2362 = vmatpush.bf16.msrb.mxu0 %v10607_v45  ;;  %v1954_v45 = vunpack.c.h.b16 %v1933_v44 }
 0x45f   : > { %v1845_v51 = vpop.f32.mrf.mxu3 }
 0x460   : > { %v1846_v39 = vadd.f32 %v1845_v51, %v1817_v14  ;;  %v9235_v14 = vld [vmem:[#allocation7 + $0x18c] sm:$0xf]  ;;  %v9240_v51 = vld [vmem:[#allocation7 + $0x1ac] sm:$0xf0] }
 0x461   : > { %2363 = vmatpush.bf16.msrb.mxu0 %v10615_v55  ;;  %v1962_v55 = vpack.c.b16 %v1954_v45, %v1954_v45  ;;  %v7498_v27 = vor.u32 %v9235_v14, %v7495_v16  ;;  %v7510_v36 = vor.u32 %v9240_v51, %v7509_v34  ;;  %v9241_v51 = vld [vmem:[#allocation8 + $0x54] sm:$0xff] }
 0x463   : > { %7482 = vmatmul.msk.bf16.gmra.mxu1 %vm919_vm3, %v1962_v55 }
 0x465   : > { %2364 = vmatpush.bf16.msrb.mxu0 %v10624_v1  ;;  %v1829_v1 = vpop.f32.mrf.mxu1 }
 0x467   : > { %v1847_v40 = vpop.f32.mrf.mxu3 }
 0x468   : > { %v1848_v42 = vadd.f32 %v1847_v40, %v1819_v47 }
 0x469   : > { %2365 = vmatpush.bf16.msrb.mxu0 %v10631_v60 }
 0x46a   : > { %v1860_v49 = vpack.c.bf16 %v1848_v42, %v1846_v39  ;;  %v2109_v42 = vld [vmem:[#allocation7 + $0x1b8] sm:$0x11] }
 0x46c   : > { %7452 = vmatmul.msk.bf16.gmra.mxu0 %vm1125_vm4, %v1860_v49  ;;  %1992 = vmatmul.bf16.gmra.mxu2 %v7466_v56  ;;  %v2129_v49 = vunpack.c.l.b16 %v2109_v42 }
 0x46d   : > { %2366 = vmatpush.bf16.msrb.mxu0 %v10636_v15  ;;  %v2016_v38 = vpop.f32.mrf.mxu1 }
 0x46e   : > { %v2137_v45 = vpack.c.b16 %v2129_v49, %v2129_v49 }
 0x46f   : > { %v1850_v54 = vpop.f32.mrf.mxu3 }
 0x470   : > { %v1851_v62 = vadd.f32 %v1850_v54, %v1822_v28 }
 0x475   : > { %v2018_v56 = vpop.f32.mrf.mxu1 }
 0x477   : > { %v1852_v5 = vpop.f32.mrf.mxu3 }
 0x478   : > { %v1853_v6 = vadd.f32 %v1852_v5, %v1824_v35 }
 0x47a   : > { %v1861_v60 = vpack.c.bf16 %v1853_v6, %v1851_v62 }
 0x47c   : > { %7453 = vmatmul.msk.bf16.gmra.mxu0 %vm1125_vm4, %v1861_v60  ;;  %1997 = vmatmul.bf16.gmra.mxu2 %v7474_v7 }
 0x47d   : > { %v2021_v55 = vpop.f32.mrf.mxu1 }
 0x47f   : > { %v1855_v21 = vpop.f32.mrf.mxu3 }
 0x480   : > { %v1856_v8 = vadd.f32 %v1855_v21, %v1827_v10  ;;  %v2130_v10 = vunpack.c.h.b16 %v2109_v42 }
 0x482   : > { %v1862_v15 = vpack.c.bf16 %v1856_v8, %v1856_v8  ;;  %v2138_v44 = vpack.c.b16 %v2130_v10, %v2130_v10 }
 0x485   : > { %v2023_v58 = vpop.f32.mrf.mxu1 }
 0x487   : > { %v1857_v43 = vpop.f32.mrf.mxu3 }
 0x48c   : > { %7454 = vmatmul.msk.bf16.gmra.mxu0 %vm1125_vm4, %v1862_v15  ;;  %2002 = vmatmul.bf16.gmra.mxu2 %v1961_v57 }
 0x49c   : > { %7515 = vmatmul.msk.bf16.vlgmr.msra.gmra.mxu2 %vm919_vm3, %v7498_v27  ;;  %2163 = vmatmul.bf16.vlgmr.msra.gmra.mxu0 %v7494_v20 }
 0x49f   : > { %v1724_v4 = vpop.f32.mrf.mxu2 }
 0x4a0   : > { %v1743_v47 = vadd.f32 %v1724_v4, %v10797_v3  ;;  %v7514_v3 = vor.u32 %v9239_v32, %v7511_v33 }
 0x4a7   : > { %v10849_v28 = vpop.f32.mrf.mxu2 }
 0x4ac   : > { %7516 = vmatmul.msk.bf16.gmra.mxu2 %vm919_vm3, %v7506_v30  ;;  %2168 = vmatmul.bf16.gmra.mxu0 %v7502_v31  ;;  %v2224_v30 = vunpack.c.l.b16 %v2218_v23 }
 0x4ae   : > { %v2226_v31 = vpack.c.b16 %v2224_v30, %v2224_v30 }
 0x4af   : > { %v1729_v17 = vpop.f32.mrf.mxu2 }
 0x4b0   : > { %v1745_v2 = vadd.f32 %v1729_v17, %v10809_v13  ;;  %v2241_v17 = vsel %vm1138_vm1, %v2226_v31, 0 }
 0x4b1   : > { %2249 = vmatpush.bf16.msra.mxu1 %v2241_v17  ;;  %v2285_v17 = vld [vmem:[#allocation7 + $0x1f0] sm:$0x11] }
 0x4b5   : > { %2250 = vmatpush.bf16.msra.mxu1 %v9241_v51  ;;  %v7545_v51 = vld [vmem:[#allocation7 + $0x1e0] sm:$0xf] }
 0x4b7   : > { %v10853_v35 = vpop.f32.mrf.mxu2 }
 0x4bc   : > { %7517 = vmatmul.msk.bf16.gmra.mxu2 %vm919_vm3, %v7514_v3  ;;  %2173 = vmatmul.bf16.gmra.mxu0 %v7510_v36  ;;  %v9242_v3 = vld [vmem:[#allocation7 + $0x1c4] sm:$0xf]  ;;  %v7531_v36 = vld [vmem:[#allocation7 + $0x1c8] sm:$0xf0] }
 0x4bf   : > { %v1734_v39 = vpop.f32.mrf.mxu2 }
 0x4c0   : > { %v1747_v40 = vadd.f32 %v1734_v39, %v10817_v12  ;;  %v2026_v12 = vpop.f32.mrf.mxu1 }
 0x4c7   : > { %v10857_v13 = vpop.f32.mrf.mxu2 }
 0x4c8   : > { %v2028_v21 = vpop.f32.mrf.mxu1 }
 0x4cc   : > { %7518 = vmatmul.msk.bf16.gmra.mxu2 %vm919_vm3, %v2138_v44  ;;  %2178 = vmatmul.bf16.gmra.mxu0 %v2137_v45 }
 0x4cf   : > { %v1739_v54 = vpop.f32.mrf.mxu2 }
 0x4d0   : > { %v1749_v1 = vadd.f32 %v1739_v54, %v10823_v59  ;;  %v7539_v54 = vld [vmem:[#allocation7 + $0x1d8] sm:$0xf0] }
 0x4d7   : > { %v1741_v61 = vpop.f32.mrf.mxu2 }
 0x4d9   : > { %v1900_v62 = vpop.f32.mrf.mxu0 }
 0x4da   : > { %v10861_v5 = vadd.f32 %v1900_v62, %v1743_v47  ;;  %v7529_v62 = vld [vmem:[#allocation7 + $0x1c0] sm:$0xf] }
 0x4df   : > { %v1988_v6 = vpop.f32.mrf.mxu2 }
 0x4e0   : > { %v2017_v8 = vadd.f32 %v2016_v38, %v1988_v6  ;;  %v2031_v14 = vpop.f32.mrf.mxu1 }
 0x4e1   : > { %v10863_v7 = vpop.f32.mrf.mxu0 }
 0x4e7   : > { %v1990_v60 = vpop.f32.mrf.mxu2 }
 0x4e8   : > { %v2019_v52 = vadd.f32 %v2018_v56, %v1990_v60  ;;  %v2033_v19 = vpop.f32.mrf.mxu1 }
 0x4e9   : > { %v1905_v43 = vpop.f32.mrf.mxu0 }
 0x4ea   : > { %v2035_v15 = vpack.c.bf16 %v2019_v52, %v2017_v8  ;;  %v10865_v57 = vadd.f32 %v1905_v43, %v1745_v2  ;;  %v9246_v43 = vld [vmem:[#allocation7 + $0x1e4] sm:$0xf] }
 0x4ec   : > { %7487 = vmatmul.msk.bf16.vlgmr.msrb.gmra.mxu3 %vm1125_vm4, %v2035_v15  ;;  %v7547_v15 = vld [vmem:[#allocation7 + $0x1e8] sm:$0xf0] }
 0x4ef   : > { %v1993_v59 = vpop.f32.mrf.mxu2 }
 0x4f0   : > { %v2022_v27 = vadd.f32 %v2021_v55, %v1993_v59  ;;  %v9244_v55 = vld [vmem:[#allocation7 + $0x1d4] sm:$0xf] }
 0x4f1   : > { %v10868_v16 = vpop.f32.mrf.mxu0 }
 0x4f7   : > { %v1995_v18 = vpop.f32.mrf.mxu2 }
 0x4f8   : > { %v2024_v20 = vadd.f32 %v2023_v58, %v1995_v18  ;;  %v7542_v58 = vor.u32 %v9244_v55, %v7539_v54  ;;  %v2305_v55 = vunpack.c.l.b16 %v2285_v17 }
 0x4f9   : > { %v1910_v4 = vpop.f32.mrf.mxu0 }
 0x4fa   : > { %v2036_v47 = vpack.c.bf16 %v2024_v20, %v2022_v27  ;;  %v10870_v9 = vadd.f32 %v1910_v4, %v1747_v40  ;;  %v7534_v40 = vor.u32 %v9242_v3, %v7531_v36  ;;  %v7537_v27 = vld [vmem:[#allocation7 + $0x1d0] sm:$0xf]  ;;  %v9245_v20 = vld [vmem:[#allocation7 + $0x1d4] sm:$0xf0]  ;;  %v9247_v3 = vld [vmem:[#allocation7 + $0x1e4] sm:$0xf0] }
 0x4fb   : > { %v7538_v23 = vor.u32 %v9245_v20, %v7537_v27  ;;  %v9248_v20 = vld [vmem:[#allocation8 + $0x60] sm:$0xff] }
 0x4fc   : > { %7488 = vmatmul.msk.bf16.gmra.mxu3 %vm1125_vm4, %v2036_v47  ;;  %7551 = vmatmul.msk.bf16.vlgmr.msrb.gmra.mxu0 %vm919_vm3, %v7534_v40 }
 0x4ff   : > { %v1998_v22 = vpop.f32.mrf.mxu2 }
 0x500   : > { %v2027_v32 = vadd.f32 %v2026_v12, %v1998_v22  ;;  %v9243_v12 = vld [vmem:[#allocation7 + $0x1c4] sm:$0xf0] }
 0x501   : > { %v10873_v25 = vpop.f32.mrf.mxu0  ;;  %v7530_v8 = vor.u32 %v9243_v12, %v7529_v62 }
 0x507   : > { %v2000_v2 = vpop.f32.mrf.mxu2 }
 0x508   : > { %v2029_v33 = vadd.f32 %v2028_v21, %v2000_v2  ;;  %v2306_v2 = vunpack.c.h.b16 %v2285_v17 }
 0x509   : > { %v1915_v34 = vpop.f32.mrf.mxu0 }
 0x50a   : > { %v2037_v38 = vpack.c.bf16 %v2029_v33, %v2027_v32  ;;  %v10876_v39 = vadd.f32 %v1915_v34, %v1749_v1  ;;  %v2314_v32 = vpack.c.b16 %v2306_v2, %v2306_v2 }
 0x50c   : > { %7489 = vmatmul.msk.bf16.gmra.mxu3 %vm1125_vm4, %v2037_v38  ;;  %7552 = vmatmul.msk.bf16.gmra.mxu0 %vm919_vm3, %v7542_v58 }
 0x50f   : > { %v2003_v42 = vpop.f32.mrf.mxu2 }
 0x510   : > { %v2032_v10 = vadd.f32 %v2031_v14, %v2003_v42  ;;  %v7550_v14 = vor.u32 %v9246_v43, %v7547_v15  ;;  %v7546_v42 = vor.u32 %v9247_v3, %v7545_v51 }
 0x511   : > { %v1917_v56 = vpop.f32.mrf.mxu0 }
 0x512   : > { %v2038_v44 = vpack.c.bf16 %v2032_v10, %v2032_v10 }
 0x517   : > { %v2005_v49 = vpop.f32.mrf.mxu2 }
 0x519   : > { %v2164_v45 = vpop.f32.mrf.mxu0 }
 0x51c   : > { %7490 = vmatmul.msk.bf16.gmra.mxu3 %vm1125_vm4, %v2038_v44  ;;  %7553 = vmatmul.msk.bf16.gmra.mxu0 %vm919_vm3, %v7550_v14 }
 0x51f   : > { %v2192_v1 = vpop.f32.mrf.mxu2 }
 0x520   : > { %v2193_v6 = vadd.f32 %v2192_v1, %v2164_v45  ;;  %v2313_v1 = vpack.c.b16 %v2305_v55, %v2305_v55 }
 0x521   : > { %v2166_v61 = vpop.f32.mrf.mxu0 }
 0x527   : > { %v2194_v60 = vpop.f32.mrf.mxu2 }
 0x528   : > { %v2195_v21 = vadd.f32 %v2194_v60, %v2166_v61 }
 0x529   : > { %v2169_v52 = vpop.f32.mrf.mxu0 }
 0x52a   : > { %v2211_v59 = vpack.c.bf16 %v2195_v21, %v2193_v6 }
 0x52c   : > { %7523 = vmatmul.msk.bf16.vlgmr.msra.gmra.mxu1 %vm1125_vm4, %v2211_v59  ;;  %2339 = vmatmul.bf16.vlgmr.msra.gmra.mxu3 %v7530_v8 }
 0x52d   : > { %7554 = vmatmul.msk.bf16.gmra.mxu0 %vm919_vm3, %v2314_v32 }
 0x52f   : > { %v2197_v18 = vpop.f32.mrf.mxu2 }
 0x530   : > { %v2198_v4 = vadd.f32 %v2197_v18, %v2169_v52  ;;  %v2394_v52 = vld [vmem:[#allocation8 + $0x68] sm:$0xf] }
 0x531   : > { %v2171_v19 = vpop.f32.mrf.mxu0  ;;  %v2400_v43 = vunpack.c.l.b16 %v2394_v52 }
 0x533   : > { %v2402_v15 = vpack.c.b16 %v2400_v43, %v2400_v43 }
 0x535   : > { %v2417_v14 = vsel %vm1138_vm1, %v2402_v15, 0 }
 0x536   : > { %2425 = vmatpush.bf16.msrb.mxu2 %v2417_v14 }
 0x537   : > { %v2199_v47 = vpop.f32.mrf.mxu2 }
 0x538   : > { %v2200_v22 = vadd.f32 %v2199_v47, %v2171_v19 }
 0x539   : > { %v2174_v30 = vpop.f32.mrf.mxu0 }
 0x53a   : > { %v2212_v31 = vpack.c.bf16 %v2200_v22, %v2198_v4  ;;  %2426 = vmatpush.bf16.msrb.mxu2 %v9248_v20 }
 0x53c   : > { %7524 = vmatmul.msk.bf16.gmra.mxu1 %vm1125_vm4, %v2212_v31  ;;  %2344 = vmatmul.bf16.gmra.mxu3 %v7538_v23 }
 0x53f   : > { %v2202_v33 = vpop.f32.mrf.mxu2 }
 0x540   : > { %v2203_v36 = vadd.f32 %v2202_v33, %v2174_v30 }
 0x541   : > { %v2176_v34 = vpop.f32.mrf.mxu0 }
 0x547   : > { %v2204_v38 = vpop.f32.mrf.mxu2 }
 0x548   : > { %v2205_v40 = vadd.f32 %v2204_v38, %v2176_v34 }
 0x549   : > { %v2179_v56 = vpop.f32.mrf.mxu0 }
 0x54a   : > { %v2213_v10 = vpack.c.bf16 %v2205_v40, %v2203_v36 }
 0x54c   : > { %7525 = vmatmul.msk.bf16.gmra.mxu1 %vm1125_vm4, %v2213_v10  ;;  %2349 = vmatmul.bf16.gmra.mxu3 %v7546_v42 }
 0x54f   : > { %v2207_v49 = vpop.f32.mrf.mxu2 }
 0x550   : > { %v2208_v45 = vadd.f32 %v2207_v49, %v2179_v56 }
 0x551   : > { %v2181_v44 = vpop.f32.mrf.mxu0 }
 0x552   : > { %v2214_v58 = vpack.c.bf16 %v2208_v45, %v2208_v45 }
 0x557   : > { %v2209_v54 = vpop.f32.mrf.mxu2 }
 0x55c   : > { %7526 = vmatmul.msk.bf16.gmra.mxu1 %vm1125_vm4, %v2214_v58  ;;  %2354 = vmatmul.bf16.gmra.mxu3 %v2313_v1 }
 0x56f   : > { %v2076_v61 = vpop.f32.mrf.mxu3 }
 0x570   : > { %v2095_v62 = vadd.f32 %v2076_v61, %v10861_v5 }
 0x577   : > { %v10889_v12 = vpop.f32.mrf.mxu3 }
 0x579   : > { %v2368_v8 = vpop.f32.mrf.mxu0 }
 0x57f   : > { %v2081_v6 = vpop.f32.mrf.mxu3 }
 0x580   : > { %v2097_v60 = vadd.f32 %v2081_v6, %v10865_v57 }
 0x581   : > { %v2370_v19 = vpop.f32.mrf.mxu0 }
 0x587   : > { %v10892_v21 = vpop.f32.mrf.mxu3 }
 0x589   : > { %v2373_v5 = vpop.f32.mrf.mxu0 }
 0x58f   : > { %v2086_v59 = vpop.f32.mrf.mxu3 }
 0x590   : > { %v2099_v18 = vadd.f32 %v2086_v59, %v10870_v9 }
 0x591   : > { %v2375_v47 = vpop.f32.mrf.mxu0 }
 0x597   : > { %v10896_v27 = vpop.f32.mrf.mxu3 }
 0x599   : > { %v2378_v31 = vpop.f32.mrf.mxu0 }
 0x59f   : > { %v2091_v4 = vpop.f32.mrf.mxu3 }
 0x5a0   : > { %v2101_v57 = vadd.f32 %v2091_v4, %v10876_v39 }
 0x5a1   : > { %v2380_v32 = vpop.f32.mrf.mxu0 }
 0x5a7   : > { %v2093_v22 = vpop.f32.mrf.mxu3 }
 0x5a9   : > { %v2252_v23 = vpop.f32.mrf.mxu1 }
 0x5aa   : > { %v10899_v30 = vadd.f32 %v2252_v23, %v2095_v62  ;;  %v2383_v38 = vpop.f32.mrf.mxu0 }
 0x5af   : > { %v2340_v17 = vpop.f32.mrf.mxu3 }
 0x5b0   : > { %v2369_v33 = vadd.f32 %v2368_v8, %v2340_v17  ;;  %v1206_v17 = vadd.f32 %v10721_v11, %v10751_v0 }
 0x5b1   : > { %v10901_v2 = vpop.f32.mrf.mxu1 }
 0x5b2   : > { %v2385_v56 = vpop.f32.mrf.mxu0 }
 0x5b7   : > { %v2342_v9 = vpop.f32.mrf.mxu3 }
 0x5b8   : > { %v2371_v34 = vadd.f32 %v2370_v19, %v2342_v9 }
 0x5b9   : > { %v2257_v51 = vpop.f32.mrf.mxu1 }
 0x5ba   : > { %v2387_v3 = vpack.c.bf16 %v2371_v34, %v2369_v33  ;;  %v10903_v36 = vadd.f32 %v2257_v51, %v2097_v60  ;;  %v1392_v33 = vadd.f32 %v10800_v24, %v1206_v17  ;;  %v9260_v17 = vld [vmem:[#allocation13 + $0x28] sm:$0xff] }
 0x5bb   : > { %2721 = vmatpush.bf16.msra.mxu2 %v9260_v17 }
 0x5bc   : > { %7559 = vmatmul.msk.bf16.vlgmr.msrb.gmra.mxu2 %vm1125_vm4, %v2387_v3 }
 0x5bf   : > { %v2345_v39 = vpop.f32.mrf.mxu3 }
 0x5c0   : > { %v2374_v10 = vadd.f32 %v2373_v5, %v2345_v39 }
 0x5c1   : > { %v2259_v40 = vpop.f32.mrf.mxu1 }
 0x5c7   : > { %v2347_v42 = vpop.f32.mrf.mxu3 }
 0x5c8   : > { %v2376_v49 = vadd.f32 %v2375_v47, %v2347_v42  ;;  %v1216_v47 = vadd.f32 %v10743_v29, %v10762_v53 }
 0x5c9   : > { %v2262_v44 = vpop.f32.mrf.mxu1 }
 0x5ca   : > { %v2388_v45 = vpack.c.bf16 %v2376_v49, %v2374_v10  ;;  %v2275_v55 = vadd.f32 %v2262_v44, %v2099_v18  ;;  %v1396_v22 = vadd.f32 %v10819_v26, %v1216_v47 }
 0x5cc   : > { %7560 = vmatmul.msk.bf16.gmra.mxu2 %vm1125_vm4, %v2388_v45 }
 0x5cf   : > { %v2350_v54 = vpop.f32.mrf.mxu3 }
 0x5d0   : > { %v2379_v61 = vadd.f32 %v2378_v31, %v2350_v54  ;;  %v1572_v31 = vadd.f32 %v10803_v46, %v1396_v22 }
 0x5d1   : > { %v2264_v58 = vpop.f32.mrf.mxu1 }
 0x5d7   : > { %v2352_v1 = vpop.f32.mrf.mxu3 }
 0x5d8   : > { %v2381_v62 = vadd.f32 %v2380_v32, %v2352_v1  ;;  %v1748_v32 = vadd.f32 %v10857_v13, %v1572_v31  ;;  %v9786_v13 = vld [vmem:[#allocation10] ss:$0 sm:$0xff] }
 0x5d9   : > { %v2267_v6 = vpop.f32.mrf.mxu1  ;;  %v9252_v31 = vld [vmem:[#allocation13 + $0x8] sm:$0xff] }
 0x5da   : > { %v2389_v60 = vpack.c.bf16 %v2381_v62, %v2379_v61  ;;  %v2277_v8 = vadd.f32 %v2267_v6, %v2101_v57  ;;  %v1211_v57 = vadd.f32 %v10734_v41, %v10758_v48  ;;  %v1924_v29 = vadd.f32 %v10873_v25, %v1748_v32  ;;  %v9259_v32 = vld [vmem:[#allocation13 + $0x20] sm:$0xff] }
 0x5db   : > { %v1568_v48 = vadd.f32 %v10789_v37, %v1392_v33  ;;  %2722 = vmatpush.bf16.msra.mxu2 %v9259_v32 }
 0x5dc   : > { %7561 = vmatmul.msk.bf16.gmra.mxu2 %vm1125_vm4, %v2389_v60  ;;  %v1394_v23 = vadd.f32 %v10812_v63, %v1211_v57  ;;  %v2100_v41 = vadd.f32 %v10896_v27, %v1924_v29  ;;  %v9256_v60 = vld [vmem:[#allocation13 + $0x18] sm:$0xff] }
 0x5dd   : > { %v1744_v11 = vadd.f32 %v10849_v28, %v1568_v48 }
 0x5de   : > { %v1570_v34 = vadd.f32 %v10791_v50, %v1394_v23  ;;  %v2276_v63 = vadd.f32 %v2264_v58, %v2100_v41  ;;  %v9265_v23 = vld [vmem:[#allocation11 + $0x40] sm:$0xff] }
 0x5df   : > { %v2355_v52 = vpop.f32.mrf.mxu3  ;;  %v1920_v50 = vadd.f32 %v10863_v7, %v1744_v11 }
 0x5e0   : > { %v2384_v15 = vadd.f32 %v2383_v38, %v2355_v52  ;;  %v1746_v53 = vadd.f32 %v10853_v35, %v1570_v34  ;;  %v10263_v38 = vmov 0   ;;  %v9253_v52 = vld [vmem:[#allocation11 + $0x10] sm:$0xff] }
 0x5e1   : > { %v2269_v43 = vpop.f32.mrf.mxu1  ;;  %v2096_v27 = vadd.f32 %v10889_v12, %v1920_v50  ;;  %v2499_v28 = vsel %vm2497_vm5, 65535, %v10263_v38  ;;  %v9261_v38 = vld [vmem:[#allocation11 + $0x30] sm:$0xff] }
 0x5e2   : > { %v2390_v14 = vpack.c.bf16 %v2384_v15, %v2384_v15  ;;  %v1922_v46 = vadd.f32 %v10868_v16, %v1746_v53  ;;  %v9249_v43 = vld [vmem:[#allocation11] sm:$0xff] }
 0x5e3   : > { %v9257_v15 = vld [vmem:[#allocation11 + $0x20] sm:$0xff] }
 0x5e4   : > { %v2098_v0 = vadd.f32 %v10892_v21, %v1922_v46  ;;  %v2272_v21 = vadd.f32 %v10901_v2, %v2096_v27 }
 0x5e6   : > { %v2274_v25 = vadd.f32 %v2259_v40, %v2098_v0 }
 0x5e7   : > { %v2357_v59 = vpop.f32.mrf.mxu3 }
 0x5e8   : > { %v9255_v59 = vld [vmem:[#allocation13 + $0x10] sm:$0xff] }
 0x5ec   : > { %7562 = vmatmul.msk.bf16.gmra.mxu2 %vm1125_vm4, %v2390_v14  ;;  %v7579_v14 = vld [vmem:[#allocation11 + $0x18] sm:$0xf] }
 0x63f   : > { %v2428_v18 = vpop.f32.mrf.mxu2 }
 0x640   : > { %v2447_v12 = vadd.f32 %v2428_v18, %v10899_v30  ;;  %v9254_v18 = vld [vmem:[#allocation11 + $0x18] sm:$0x10] }
 0x641   : > { %v7580_v47 = vor.u32 %v9254_v18, %v7579_v14 }
 0x642   : > { %v2458_v1 = vadd.f32 %v9786_v13, %v2447_v12 }
 0x644   : > { %v2465_v6 = vmax.f32 %v2458_v1, 0.0  ;;  %v9278_v1 = vld [vmem:[#allocation11 + $0x78] sm:$0x10] }
 0x647   : > { %v2430_v19 = vpop.f32.mrf.mxu2 }
 0x648   : > { %v2448_v7 = vadd.f32 %v2430_v19, %v2272_v21  ;;  %v7609_v19 = vld [vmem:[#allocation11 + $0x28] sm:$0xf]  ;;  %v9274_v21 = vld [vmem:[#allocation11 + $0x68] sm:$0x10] }
 0x64a   : > { %v2459_v2 = vadd.f32 %v9786_v13, %v2448_v7  ;;  %v9281_v7 = vld [vmem:[#allocation11 + $0x80] sm:$0xff] }
 0x64c   : > { %v2466_v30 = vmax.f32 %v2459_v2, 0.0 }
 0x64f   : > { %v2433_v5 = vpop.f32.mrf.mxu2 }
 0x650   : > { %v2449_v42 = vadd.f32 %v2433_v5, %v10903_v36  ;;  %v9258_v5 = vld [vmem:[#allocation11 + $0x28] sm:$0x10] }
 0x651   : > { %v7610_v22 = vor.u32 %v9258_v5, %v7609_v19 }
 0x657   : > { %v2435_v20 = vpop.f32.mrf.mxu2 }
 0x658   : > { %v2450_v37 = vadd.f32 %v2435_v20, %v2274_v25  ;;  %v7569_v20 = vld [vmem:[#allocation11 + $0x8] sm:$0xf] }
 0x65a   : > { %v2461_v40 = vadd.f32 %v9786_v13, %v2450_v37 }
 0x65c   : > { %v2468_v36 = vmax.f32 %v2461_v40, 0.0  ;;  %v9269_v40 = vld [vmem:[#allocation11 + $0x50] sm:$0xff] }
 0x65f   : > { %v2438_v4 = vpop.f32.mrf.mxu2 }
 0x660   : > { %v2451_v3 = vadd.f32 %v2438_v4, %v2275_v55  ;;  %v2460_v55 = vadd.f32 %v9786_v13, %v2449_v42  ;;  %v9250_v4 = vld [vmem:[#allocation11 + $0x8] sm:$0x10] }
 0x661   : > { %v7570_v57 = vor.u32 %v9250_v4, %v7569_v20  ;;  %v9263_v20 = vld [vmem:[#allocation13 + $0x30] sm:$0xff] }
 0x662   : > { %v2462_v56 = vadd.f32 %v9786_v13, %v2451_v3  ;;  %v2467_v61 = vmax.f32 %v2460_v55, 0.0  ;;  %v7729_v55 = vld [vmem:[#allocation11 + $0x88] sm:$0xf] }
 0x664   : > { %v2469_v54 = vmax.f32 %v2462_v56, 0.0  ;;  %v10944_v62 = vpack.c.bf16 %v2468_v36, %v2467_v61  ;;  %v7629_v56 = vld [vmem:[#allocation11 + $0x38] sm:$0xf]  ;;  %v9277_v36 = vld [vmem:[#allocation11 + $0x70] sm:$0xff] }
 0x667   : > { %v2440_v9 = vpop.f32.mrf.mxu2 }
 0x668   : > { %v2452_v24 = vadd.f32 %v2440_v9, %v2276_v63  ;;  %v9251_v9 = vld [vmem:[#allocation13] sm:$0xff] }
 0x66a   : > { %v2463_v39 = vadd.f32 %v9786_v13, %v2452_v24  ;;  %v9266_v24 = vld [vmem:[#allocation11 + $0x48] sm:$0x10] }
 0x66c   : > { %v2470_v44 = vmax.f32 %v2463_v39, 0.0 }
 0x66e   : > { %v10939_v58 = vpack.c.bf16 %v2470_v44, %v2469_v54  ;;  %v7669_v44 = vld [vmem:[#allocation11 + $0x58] sm:$0xf]  ;;  %v9282_v54 = vld [vmem:[#allocation11 + $0x88] sm:$0x10] }
 0x66f   : > { %v2443_v26 = vpop.f32.mrf.mxu2  ;;  %v7730_v2 = vor.u32 %v9282_v54, %v7729_v55 }
 0x670   : > { %v2453_v51 = vadd.f32 %v2443_v26, %v2277_v8  ;;  %v10949_v8 = vpack.c.bf16 %v2466_v30, %v2465_v6  ;;  %v9267_v6 = vld [vmem:[#allocation13 + $0x40] sm:$0xff] }
 0x672   : > { %v2464_v35 = vadd.f32 %v9786_v13, %v2453_v51  ;;  %v7649_v13 = vld [vmem:[#allocation11 + $0x48] sm:$0xf] }
 0x673   : > { %v7650_v51 = vor.u32 %v9266_v24, %v7649_v13 }
 0x674   : > { %v2471_v16 = vmax.f32 %v2464_v35, 0.0 }
 0x676   : > { %v2475_v10 = vpack.c.bf16 %v2471_v16, %v2471_v16  ;;  %v9273_v16 = vld [vmem:[#allocation11 + $0x60] sm:$0xff] }
 0x677   : > { %v2445_v49 = vpop.f32.mrf.mxu2 }
 0x678   : > { %v10933_v45 = vand.u32 %v2499_v28, %v2475_v10  ;;  %v7689_v28 = vld [vmem:[#allocation11 + $0x68] sm:$0xf]  ;;  %v9262_v10 = vld [vmem:[#allocation11 + $0x38] sm:$0x10] }
 0x679   : > { %v7690_v42 = vor.u32 %v9274_v21, %v7689_v28  ;;  %v7630_v49 = vor.u32 %v9262_v10, %v7629_v56  ;;  %v9280_v28 = vld [vmem:[#allocation13 + $0x78] sm:$0xff] }
 0x67a   : > { %2507 = vmatpush.bf16.msrb.mxu1 %v10933_v45  ;;  %2553 = vmatpush.bf16.msrb.mxu3 %v10933_v45 }
 0x67b   : > { %2675 = vmatpush.bf16.msra.mxu0 %v10933_v45 }
 0x67e   : > { %2508 = vmatpush.bf16.msrb.mxu1 %v10939_v58  ;;  %2554 = vmatpush.bf16.msrb.mxu3 %v10939_v58 }
 0x67f   : > { %2676 = vmatpush.bf16.msra.mxu0 %v10939_v58 }
 0x682   : > { %2509 = vmatpush.bf16.msrb.mxu1 %v10944_v62  ;;  %2555 = vmatpush.bf16.msrb.mxu3 %v10944_v62 }
 0x683   : > { %2677 = vmatpush.bf16.msra.mxu0 %v10944_v62 }
 0x686   : > { %2510 = vmatpush.bf16.msrb.mxu1 %v10949_v8  ;;  %2556 = vmatpush.bf16.msrb.mxu3 %v10949_v8 }
 0x687   : > { %2678 = vmatpush.bf16.msra.mxu0 %v10949_v8 }
 0x689   : > { %7581 = vmatmul.msk.bf16.vlgmr.msrb.gmra.mxu3 %vm2490_vm6, %v9253_v52  ;;  %7571 = vmatmul.msk.bf16.vlgmr.msrb.gmra.mxu1 %vm2490_vm6, %v9249_v43 }
 0x68a   : > { %2600 = vmatpush.bf16.msra.mxu1 %v9256_v60  ;;  %7611 = vmatmul.msk.bf16.vlgmr.msra.gmra.mxu0 %vm2490_vm6, %v9257_v15  ;;  %v9264_v15 = vld [vmem:[#allocation13 + $0x38] sm:$0xff] }
 0x68b   : > { %2851 = vmatpush.bf16.msrb.mxu0 %v10933_v45  ;;  %2637 = vmatpush.bf16.msra.mxu3 %v9252_v31 }
 0x68e   : > { %2601 = vmatpush.bf16.msra.mxu1 %v9255_v59 }
 0x68f   : > { %2852 = vmatpush.bf16.msrb.mxu0 %v10939_v58  ;;  %2638 = vmatpush.bf16.msra.mxu3 %v9251_v9 }
 0x692   : > { %2763 = vmatpush.bf16.msrb.mxu1 %v10933_v45 }
 0x693   : > { %2853 = vmatpush.bf16.msrb.mxu0 %v10944_v62  ;;  %2809 = vmatpush.bf16.msrb.mxu3 %v9264_v15 }
 0x696   : > { %2764 = vmatpush.bf16.msrb.mxu1 %v10939_v58 }
 0x697   : > { %2854 = vmatpush.bf16.msrb.mxu0 %v10949_v8  ;;  %2810 = vmatpush.bf16.msrb.mxu3 %v9263_v20  ;;  %v7829_v20 = vld [vmem:[#allocation16 + $0x40] sm:$0xf] }
 0x699   : > { %7582 = vmatmul.msk.bf16.gmra.mxu3 %vm2490_vm6, %v7580_v47  ;;  %7572 = vmatmul.msk.bf16.gmra.mxu1 %vm2490_vm6, %v7570_v57 }
 0x69a   : > { %2765 = vmatpush.bf16.msrb.mxu1 %v10944_v62  ;;  %7612 = vmatmul.msk.bf16.gmra.mxu0 %vm2490_vm6, %v7610_v22 }
 0x69b   : > { %3027 = vmatpush.bf16.msra.mxu0 %v10933_v45 }
 0x69e   : > { %2766 = vmatpush.bf16.msrb.mxu1 %v10949_v8 }
 0x69f   : > { %3028 = vmatpush.bf16.msra.mxu0 %v10939_v58 }
 0x6a3   : > { %3029 = vmatpush.bf16.msra.mxu0 %v10944_v62 }
 0x6a7   : > { %3030 = vmatpush.bf16.msra.mxu0 %v10949_v8 }
 0x6aa   : > { %7651 = vmatmul.msk.bf16.vlgmr.msrb.gmra.mxu0 %vm2490_vm6, %v9265_v23 }
 0x6ab   : > { %3203 = vmatpush.bf16.msrb.mxu0 %v10933_v45 }
 0x6af   : > { %3204 = vmatpush.bf16.msrb.mxu0 %v10939_v58 }
 0x6b3   : > { %3205 = vmatpush.bf16.msrb.mxu0 %v10944_v62 }
 0x6b7   : > { %3206 = vmatpush.bf16.msrb.mxu0 %v10949_v8 }
 0x6ba   : > { %7652 = vmatmul.msk.bf16.gmra.mxu0 %vm2490_vm6, %v7650_v51 }
 0x6ca   : > { %7691 = vmatmul.msk.bf16.vlgmr.msra.gmra.mxu0 %vm2490_vm6, %v9273_v16 }
 0x6da   : > { %7692 = vmatmul.msk.bf16.gmra.mxu0 %vm2490_vm6, %v7690_v42  ;;  %v9279_v42 = vld [vmem:[#allocation13 + $0x70] sm:$0xff] }
 0x6ea   : > { %7731 = vmatmul.msk.bf16.vlgmr.msrb.gmra.mxu0 %vm2490_vm6, %v9281_v7 }
 0x6fa   : > { %7732 = vmatmul.msk.bf16.gmra.mxu0 %vm2490_vm6, %v7730_v2 }
 0x706   : > { %v2512_v33 = vpop.f32.mrf.mxu1 }
 0x707   : > { %v2680_v34 = vpop.f32.mrf.mxu0 }
 0x70c   : > { %v2558_v29 = vpop.f32.mrf.mxu3 }
 0x70e   : > { %v2514_v53 = vpop.f32.mrf.mxu1 }
 0x70f   : > { %v2522_v41 = vpack.c.bf16 %v2514_v53, %v2512_v33  ;;  %v2682_v48 = vpop.f32.mrf.mxu0  ;;  %v9275_v53 = vld [vmem:[#allocation13 + $0x60] sm:$0xff] }
 0x710   : > { %v2690_v46 = vpack.c.bf16 %v2682_v48, %v2680_v34  ;;  %v9276_v34 = vld [vmem:[#allocation13 + $0x68] sm:$0xff] }
 0x711   : > { %7601 = vmatmul.msk.bf16.vlgmr.msra.gmra.mxu3 %vm2587_vm7, %v2522_v41 }
 0x712   : > { %7621 = vmatmul.msk.bf16.vlgmr.msra.gmra.mxu2 %vm2587_vm7, %v2690_v46 }
 0x714   : > { %v2560_v63 = vpop.f32.mrf.mxu3 }
 0x715   : > { %v2568_v11 = vpack.c.bf16 %v2560_v63, %v2558_v29  ;;  %v9272_v63 = vld [vmem:[#allocation13 + $0x58] sm:$0xff] }
 0x716   : > { %v2517_v0 = vpop.f32.mrf.mxu1  ;;  %2985 = vmatpush.bf16.msra.mxu3 %v9272_v63  ;;  %v7777_v63 = vld [vmem:[#allocation16 + $0xa0] sm:$0xf] }
 0x717   : > { %7591 = vmatmul.msk.bf16.vlgmr.msra.gmra.mxu1 %vm2587_vm7, %v2568_v11  ;;  %v2685_v26 = vpop.f32.mrf.mxu0 }
 0x718   : > { %2939 = vmatpush.bf16.msra.mxu1 %v10933_v45 }
 0x71c   : > { %2940 = vmatpush.bf16.msra.mxu1 %v10939_v58  ;;  %v2563_v50 = vpop.f32.mrf.mxu3 }
 0x71e   : > { %v2519_v25 = vpop.f32.mrf.mxu1 }
 0x71f   : > { %v2687_v3 = vpop.f32.mrf.mxu0  ;;  %v2523_v35 = vpack.c.bf16 %v2519_v25, %v2517_v0 }
 0x720   : > { %2941 = vmatpush.bf16.msra.mxu1 %v10944_v62  ;;  %v2691_v27 = vpack.c.bf16 %v2687_v3, %v2685_v26  ;;  %v9271_v26 = vld [vmem:[#allocation13 + $0x50] sm:$0xff]  ;;  %v9284_v3 = vld [vmem:[#allocation13 + $0x88] sm:$0xff] }
 0x721   : > { %7602 = vmatmul.msk.bf16.gmra.mxu3 %vm2587_vm7, %v2523_v35 }
 0x722   : > { %7622 = vmatmul.msk.bf16.gmra.mxu2 %vm2587_vm7, %v2691_v27  ;;  %2986 = vmatpush.bf16.msra.mxu3 %v9271_v26 }
 0x724   : > { %2942 = vmatpush.bf16.msra.mxu1 %v10949_v8  ;;  %v2565_v37 = vpop.f32.mrf.mxu3 }
 0x725   : > { %v2569_v39 = vpack.c.bf16 %v2565_v37, %v2563_v50  ;;  %v9283_v37 = vld [vmem:[#allocation13 + $0x80] sm:$0xff] }
 0x727   : > { %7592 = vmatmul.msk.bf16.gmra.mxu1 %vm2587_vm7, %v2569_v39  ;;  %v2856_v30 = vpop.f32.mrf.mxu0 }
 0x72f   : > { %v2858_v60 = vpop.f32.mrf.mxu0 }
 0x737   : > { %7631 = vmatmul.msk.bf16.vlgmr.msrb.gmra.mxu1 %vm2490_vm6, %v9261_v38  ;;  %v2861_v19 = vpop.f32.mrf.mxu0 }
 0x738   : > { %3115 = vmatpush.bf16.msrb.mxu1 %v10933_v45  ;;  %v9270_v45 = vld [vmem:[#allocation11 + $0x58] sm:$0x10] }
 0x739   : > { %v7670_v12 = vor.u32 %v9270_v45, %v7669_v44 }
 0x73c   : > { %3116 = vmatpush.bf16.msrb.mxu1 %v10939_v58  ;;  %v7709_v58 = vld [vmem:[#allocation11 + $0x78] sm:$0xf] }
 0x73d   : > { %v7710_v61 = vor.u32 %v9278_v1, %v7709_v58 }
 0x73f   : > { %v2863_v22 = vpop.f32.mrf.mxu0 }
 0x740   : > { %3117 = vmatpush.bf16.msrb.mxu1 %v10944_v62  ;;  %v9268_v62 = vld [vmem:[#allocation13 + $0x48] sm:$0xff]  ;;  %v2867_v57 = vpack.c.bf16 %v2863_v22, %v2861_v19  ;;  %v9295_v22 = vld [vmem:[#allocation16 + $0x4c] sm:$0xf0] }
 0x741   : > { %2897 = vmatpush.bf16.msrb.mxu2 %v9268_v62 }
 0x744   : > { %3118 = vmatpush.bf16.msrb.mxu1 %v10949_v8  ;;  %v2866_v8 = vpack.c.bf16 %v2858_v60, %v2856_v30 }
 0x745   : > { %2898 = vmatpush.bf16.msrb.mxu2 %v9267_v6 }
 0x747   : > { %7632 = vmatmul.msk.bf16.gmra.mxu1 %vm2490_vm6, %v7630_v49  ;;  %v3032_v33 = vpop.f32.mrf.mxu0 }
 0x748   : > { %7661 = vmatmul.msk.bf16.vlgmr.msrb.gmra.mxu2 %vm2587_vm7, %v2866_v8 }
 0x749   : > { %3073 = vmatpush.bf16.msra.mxu2 %v9276_v34  ;;  %v7813_v34 = vld [vmem:[#allocation16 + $0x20] sm:$0xf] }
 0x74d   : > { %3074 = vmatpush.bf16.msra.mxu2 %v9275_v53  ;;  %v9291_v53 = vld [vmem:[#allocation16 + $0x2c] sm:$0xf0] }
 0x74f   : > { %v3034_v41 = vpop.f32.mrf.mxu0 }
 0x750   : > { %v3042_v48 = vpack.c.bf16 %v3034_v41, %v3032_v33  ;;  %v9289_v41 = vld [vmem:[#allocation16 + $0x24] sm:$0xf] }
 0x751   : > { %3249 = vmatpush.bf16.msrb.mxu2 %v9284_v3 }
 0x755   : > { %3250 = vmatpush.bf16.msrb.mxu2 %v9283_v37 }
 0x757   : > { %7671 = vmatmul.msk.bf16.vlgmr.msra.gmra.mxu1 %vm2490_vm6, %v9269_v40  ;;  %v3037_v11 = vpop.f32.mrf.mxu0 }
 0x758   : > { %7662 = vmatmul.msk.bf16.gmra.mxu2 %vm2587_vm7, %v2867_v57  ;;  %v9293_v57 = vld [vmem:[#allocation16 + $0x44] sm:$0xf] }
 0x75f   : > { %v3039_v24 = vpop.f32.mrf.mxu0 }
 0x760   : > { %v3043_v51 = vpack.c.bf16 %v3039_v24, %v3037_v11  ;;  %v9307_v11 = vld [vmem:[#allocation16 + $0xac] sm:$0xf0] }
 0x761   : > { %v7778_v26 = vor.u32 %v9307_v11, %v7777_v63  ;;  %v7849_v11 = vld [vmem:[#allocation16 + $0xc0] sm:$0xf] }
 0x763   : > { %3382 = vmatpush.bf16.msra.mxu1 %v7778_v26  ;;  %v9309_v26 = vld [vmem:[#allocation16 + $0xc4] sm:$0xf] }
 0x767   : > { %7672 = vmatmul.msk.bf16.gmra.mxu1 %vm2490_vm6, %v7670_v12  ;;  %v3208_v25 = vpop.f32.mrf.mxu0 }
 0x768   : > { %7701 = vmatmul.msk.bf16.vlgmr.msra.gmra.mxu2 %vm2587_vm7, %v3042_v48  ;;  %v7815_v48 = vld [vmem:[#allocation16 + $0x30] sm:$0xf0] }
 0x76f   : > { %v3210_v39 = vpop.f32.mrf.mxu0 }
 0x770   : > { %v3218_v16 = vpack.c.bf16 %v3210_v39, %v3208_v25  ;;  %v9285_v25 = vld [vmem:[#allocation16 + $0x4] sm:$0xf]  ;;  %v7761_v39 = vld [vmem:[#allocation16 + $0x80] sm:$0xf] }
 0x777   : > { %7711 = vmatmul.msk.bf16.vlgmr.msrb.gmra.mxu1 %vm2490_vm6, %v9277_v36  ;;  %v3213_v49 = vpop.f32.mrf.mxu0 }
 0x778   : > { %7702 = vmatmul.msk.bf16.gmra.mxu2 %vm2587_vm7, %v3043_v51  ;;  %v7797_v51 = vld [vmem:[#allocation16] sm:$0xf] }
 0x77f   : > { %v3215_v44 = vpop.f32.mrf.mxu0 }
 0x780   : > { %v3219_v45 = vpack.c.bf16 %v3215_v44, %v3213_v49  ;;  %v9299_v49 = vld [vmem:[#allocation16 + $0x6c] sm:$0xf0]  ;;  %v7747_v44 = vld [vmem:[#allocation16 + $0x70] sm:$0xf0] }
 0x787   : > { %7712 = vmatmul.msk.bf16.gmra.mxu1 %vm2490_vm6, %v7710_v61 }
 0x788   : > { %7741 = vmatmul.msk.bf16.vlgmr.msrb.gmra.mxu2 %vm2587_vm7, %v3218_v16  ;;  %v9303_v16 = vld [vmem:[#allocation16 + $0x8c] sm:$0xf0] }
 0x794   : > { %v2603_v52 = vpop.f32.mrf.mxu1  ;;  %v2640_v43 = vpop.f32.mrf.mxu3 }
 0x795   : > { %v2641_v59 = vadd.f32 %v2640_v43, %v2603_v52  ;;  %v2724_v14 = vpop.f32.mrf.mxu2 }
 0x797   : > { %v11003_v18 = vadd.f32 %v2724_v14, %v2641_v59 }
 0x798   : > { %7742 = vmatmul.msk.bf16.gmra.mxu2 %vm2587_vm7, %v3219_v45 }
 0x79c   : > { %v11005_v5 = vpop.f32.mrf.mxu1  ;;  %v11007_v4 = vpop.f32.mrf.mxu3 }
 0x79d   : > { %v11009_v47 = vpop.f32.mrf.mxu2 }
 0x7a4   : > { %v2608_v23 = vpop.f32.mrf.mxu1  ;;  %v2645_v31 = vpop.f32.mrf.mxu3 }
 0x7a5   : > { %v2729_v17 = vpop.f32.mrf.mxu2  ;;  %v2646_v9 = vadd.f32 %v2645_v31, %v2608_v23 }
 0x7a7   : > { %v11012_v32 = vadd.f32 %v2729_v17, %v2646_v9  ;;  %v7830_v17 = vor.u32 %v9295_v22, %v7829_v20  ;;  %v7831_v9 = vld [vmem:[#allocation16 + $0x50] sm:$0xf0]  ;;  %v7865_v20 = vld [vmem:[#allocation16 + $0xe0] sm:$0xf]  ;;  %v9315_v22 = vld [vmem:[#allocation16 + $0xec] sm:$0xf0] }
 0x7a8   : > { %v7834_v33 = vor.u32 %v9293_v57, %v7831_v9  ;;  %v9313_v57 = vld [vmem:[#allocation16 + $0xe4] sm:$0xf]  ;;  %v7866_v9 = vor.u32 %v9315_v22, %v7865_v20  ;;  %v7917_v20 = vld [vmem:[#allocation16 + $0x140] sm:$0xf] }
 0x7a9   : > { %3497 = vmatpush.bf16.msra.mxu0 %v7830_v17 }
 0x7aa   : > { %3510 = vmatpush.bf16.msra.mxu2 %v7834_v33  ;;  %v7867_v33 = vld [vmem:[#allocation16 + $0xf0] sm:$0xf0] }
 0x7ac   : > { %v11014_v29 = vpop.f32.mrf.mxu1  ;;  %v11030_v30 = vpop.f32.mrf.mxu3 }
 0x7ad   : > { %v11026_v1 = vpop.f32.mrf.mxu2 }
 0x7b4   : > { %v2768_v46 = vpop.f32.mrf.mxu1 }
 0x7bc   : > { %v2770_v0 = vpop.f32.mrf.mxu1 }
 0x7bd   : > { %v2778_v13 = vpack.c.bf16 %v2770_v0, %v2768_v46  ;;  %v7818_v46 = vor.u32 %v9289_v41, %v7815_v48  ;;  %v9305_v0 = vld [vmem:[#allocation16 + $0xa4] sm:$0xf]  ;;  %v9308_v41 = vld [vmem:[#allocation16 + $0xb4] sm:$0xf0] }
 0x7bf   : > { %7641 = vmatmul.msk.bf16.vlgmr.msrb.gmra.mxu3 %vm2587_vm7, %v2778_v13  ;;  %v7779_v13 = vld [vmem:[#allocation16 + $0xb0] sm:$0xf0]  ;;  %3511 = vmatpush.bf16.msra.mxu2 %v7818_v46  ;;  %v7787_v46 = vld [vmem:[#allocation16 + $0xb8] sm:$0xf0] }
 0x7c0   : > { %3161 = vmatpush.bf16.msrb.mxu3 %v9280_v28  ;;  %v7782_v24 = vor.u32 %v9305_v0, %v7779_v13  ;;  %v9311_v0 = vld [vmem:[#allocation16 + $0xcc] sm:$0xf0] }
 0x7c4   : > { %v2773_v50 = vpop.f32.mrf.mxu1  ;;  %3162 = vmatpush.bf16.msrb.mxu3 %v9279_v42  ;;  %v7763_v42 = vld [vmem:[#allocation16 + $0x90] sm:$0xf0] }
 0x7cb   : > { %v11028_v61 = vpop.f32.mrf.mxu2 }
 0x7cc   : > { %v2775_v35 = vpop.f32.mrf.mxu1 }
 0x7cd   : > { %v2779_v27 = vpack.c.bf16 %v2775_v35, %v2773_v50  ;;  %v9287_v50 = vld [vmem:[#allocation16 + $0xc] sm:$0xf0] }
 0x7ce   : > { %v7798_v35 = vor.u32 %v9287_v50, %v7797_v51  ;;  %v7851_v51 = vld [vmem:[#allocation16 + $0xd0] sm:$0xf0] }
 0x7cf   : > { %7642 = vmatmul.msk.bf16.gmra.mxu3 %vm2587_vm7, %v2779_v27  ;;  %v7799_v27 = vld [vmem:[#allocation16 + $0x10] sm:$0xf0] }
 0x7d0   : > { %v7802_v37 = vor.u32 %v9285_v25, %v7799_v27  ;;  %v9304_v25 = vld [vmem:[#allocation16 + $0x94] sm:$0xf0] }
 0x7d2   : > { %3512 = vmatpush.bf16.msra.mxu2 %v7802_v37  ;;  %v7771_v37 = vld [vmem:[#allocation16 + $0x98] sm:$0xf0] }
 0x7d3   : > { %v11032_v62 = vpop.f32.mrf.mxu2 }
 0x7d4   : > { %v2944_v38 = vpop.f32.mrf.mxu1 }
 0x7db   : > { %v2905_v60 = vpop.f32.mrf.mxu2 }
 0x7dc   : > { %v2946_v21 = vpop.f32.mrf.mxu1 }
 0x7dd   : > { %v2954_v56 = vpack.c.bf16 %v2946_v21, %v2944_v38  ;;  %v9301_v38 = vld [vmem:[#allocation16 + $0x84] sm:$0xf]  ;;  %v7762_v21 = vor.u32 %v9303_v16, %v7761_v39 }
 0x7df   : > { %7681 = vmatmul.msk.bf16.vlgmr.msra.gmra.mxu3 %vm2587_vm7, %v2954_v56  ;;  %v7766_v56 = vor.u32 %v9301_v38, %v7763_v42  ;;  %3383 = vmatpush.bf16.msra.mxu1 %v7762_v21  ;;  %v7753_v38 = vld [vmem:[#allocation16 + $0x68] sm:$0xf]  ;;  %v9298_v21 = vld [vmem:[#allocation16 + $0x6c] sm:$0xf] }
 0x7e0   : > { %3395 = vmatpush.bf16.msra.mxu3 %v7782_v24  ;;  %v7850_v24 = vor.u32 %v9311_v0, %v7849_v11  ;;  %v9323_v0 = vld [vmem:[#allocation16 + $0x12c] sm:$0xf0] }
 0x7e3   : > { %v11038_v52 = vpop.f32.mrf.mxu2 }
 0x7e4   : > { %v2949_v10 = vpop.f32.mrf.mxu1  ;;  %3396 = vmatpush.bf16.msra.mxu3 %v7766_v56 }
 0x7eb   : > { %v11041_v14 = vpop.f32.mrf.mxu2 }
 0x7ec   : > { %v2951_v7 = vpop.f32.mrf.mxu1 }
 0x7ed   : > { %v2955_v40 = vpack.c.bf16 %v2951_v7, %v2949_v10  ;;  %v7745_v10 = vld [vmem:[#allocation16 + $0x60] sm:$0xf]  ;;  %v9297_v7 = vld [vmem:[#allocation16 + $0x64] sm:$0xf] }
 0x7ee   : > { %v7750_v45 = vor.u32 %v9297_v7, %v7747_v44  ;;  %v11062_v44 = vld [vmem:[#allocation14] ss:$0 sm:$0xff] }
 0x7ef   : > { %7682 = vmatmul.msk.bf16.gmra.mxu3 %vm2587_vm7, %v2955_v40  ;;  %v7746_v40 = vor.u32 %v9299_v49, %v7745_v10 }
 0x7f0   : > { %3397 = vmatpush.bf16.msra.mxu3 %v7750_v45  ;;  %v7933_v45 = vld [vmem:[#allocation16 + $0x160] sm:$0xf] }
 0x7f1   : > { %3384 = vmatpush.bf16.msra.mxu1 %v7746_v40 }
 0x7f3   : > { %v11047_v31 = vpop.f32.mrf.mxu2 }
 0x7f4   : > { %v3120_v12 = vpop.f32.mrf.mxu1 }
 0x7fb   : > { %v3081_v28 = vpop.f32.mrf.mxu2 }
 0x7fc   : > { %v3122_v55 = vpop.f32.mrf.mxu1 }
 0x7fd   : > { %v3130_v54 = vpack.c.bf16 %v3122_v55, %v3120_v12  ;;  %v7881_v12 = vld [vmem:[#allocation16 + $0x100] sm:$0xf]  ;;  %v9319_v55 = vld [vmem:[#allocation16 + $0x10c] sm:$0xf0] }
 0x7ff   : > { %7721 = vmatmul.msk.bf16.vlgmr.msrb.gmra.mxu3 %vm2587_vm7, %v3130_v54  ;;  %v9317_v54 = vld [vmem:[#allocation16 + $0x104] sm:$0xf] }
 0x803   : > { %v11053_v17 = vpop.f32.mrf.mxu2 }
 0x804   : > { %v3125_v2 = vpop.f32.mrf.mxu1 }
 0x80b   : > { %v3252_v42 = vpop.f32.mrf.mxu2 }
 0x80c   : > { %v3127_v36 = vpop.f32.mrf.mxu1 }
 0x80d   : > { %v3131_v58 = vpack.c.bf16 %v3127_v36, %v3125_v2  ;;  %v7882_v36 = vor.u32 %v9319_v55, %v7881_v12  ;;  %v9331_v55 = vld [vmem:[#allocation16 + $0x16c] sm:$0xf0] }
 0x80f   : > { %7722 = vmatmul.msk.bf16.gmra.mxu3 %vm2587_vm7, %v3131_v58  ;;  %v7883_v58 = vld [vmem:[#allocation16 + $0x110] sm:$0xf0] }
 0x842   : > { %v11034_v6 = vpop.f32.mrf.mxu3 }
 0x84a   : > { %v11036_v8 = vpop.f32.mrf.mxu3 }
 0x852   : > { %v2817_v43 = vpop.f32.mrf.mxu3 }
 0x853   : > { %v2824_v15 = vadd.f32 %v2817_v43, %v11012_v32  ;;  %v7814_v32 = vor.u32 %v9291_v53, %v7813_v34  ;;  %v7886_v43 = vor.u32 %v9317_v54, %v7883_v58  ;;  %v2822_v34 = vadd.f32 %v11034_v6, %v11003_v18  ;;  %v7769_v6 = vld [vmem:[#allocation16 + $0x88] sm:$0xf]  ;;  %v9329_v54 = vld [vmem:[#allocation16 + $0x164] sm:$0xf] }
 0x854   : > { %v7870_v53 = vor.u32 %v9313_v57, %v7867_v33  ;;  %v7854_v18 = vor.u32 %v9309_v26, %v7851_v51  ;;  %v7770_v27 = vor.u32 %v9304_v25, %v7769_v6  ;;  %v9327_v57 = vld [vmem:[#allocation16 + $0x14c] sm:$0xf0]  ;;  %v7919_v33 = vld [vmem:[#allocation16 + $0x150] sm:$0xf0]  ;;  %v9321_v26 = vld [vmem:[#allocation16 + $0x124] sm:$0xf] }
 0x855   : > { %v2912_v59 = vadd.f32 %v2905_v60, %v2824_v15  ;;  %3498 = vmatpush.bf16.msra.mxu0 %v7814_v32  ;;  %3639 = vmatpush.bf16.msrb.mxu2 %v7886_v43  ;;  %v7785_v32 = vld [vmem:[#allocation16 + $0xa8] sm:$0xf]  ;;  %v2910_v50 = vadd.f32 %v11028_v61, %v2822_v34  ;;  %v7755_v61 = vld [vmem:[#allocation16 + $0x78] sm:$0xf0]  ;;  %v9292_v6 = vld [vmem:[#allocation16 + $0x34] sm:$0xf0] }
 0x856   : > { %v7786_v48 = vor.u32 %v9308_v41, %v7785_v32  ;;  %v7758_v49 = vor.u32 %v9298_v21, %v7755_v61  ;;  %v7837_v34 = vld [vmem:[#allocation16 + $0x48] sm:$0xf]  ;;  %v9296_v32 = vld [vmem:[#allocation16 + $0x54] sm:$0xf0]  ;;  %v9294_v41 = vld [vmem:[#allocation16 + $0x4c] sm:$0xf] }
 0x857   : > { %v7838_v51 = vor.u32 %v9296_v32, %v7837_v34  ;;  %v9320_v34 = vld [vmem:[#allocation16 + $0x114] sm:$0xf0]  ;;  %v7891_v32 = vld [vmem:[#allocation16 + $0x118] sm:$0xf0] }
 0x858   : > { %3408 = vmatpush.bf16.msrb.mxu1 %v7786_v48  ;;  %v7918_v48 = vor.u32 %v9327_v57, %v7917_v20  ;;  %v9339_v20 = vld [vmem:[#allocation16 + $0x1ac] sm:$0xf0]  ;;  %v9337_v57 = vld [vmem:[#allocation16 + $0x1a4] sm:$0xf] }
 0x859   : > { %3499 = vmatpush.bf16.msra.mxu0 %v7798_v35  ;;  %3640 = vmatpush.bf16.msrb.mxu2 %v7870_v53  ;;  %v9302_v35 = vld [vmem:[#allocation16 + $0x8c] sm:$0xf] }
 0x85a   : > { %v11043_v19 = vpop.f32.mrf.mxu3  ;;  %v7774_v16 = vor.u32 %v9302_v35, %v7771_v37  ;;  %v9290_v35 = vld [vmem:[#allocation16 + $0x2c] sm:$0xf] }
 0x85c   : > { %3409 = vmatpush.bf16.msrb.mxu1 %v7770_v27  ;;  %v7823_v27 = vld [vmem:[#allocation16 + $0x38] sm:$0xf0] }
 0x85d   : > { %3626 = vmatpush.bf16.msrb.mxu0 %v7882_v36  ;;  %3641 = vmatpush.bf16.msrb.mxu2 %v7854_v18  ;;  %v7821_v18 = vld [vmem:[#allocation16 + $0x28] sm:$0xf] }
 0x85e   : > { %v7822_v21 = vor.u32 %v9292_v6, %v7821_v18  ;;  %v9314_v18 = vld [vmem:[#allocation16 + $0xec] sm:$0xf]  ;;  %v7875_v6 = vld [vmem:[#allocation16 + $0xf8] sm:$0xf0] }
 0x861   : > { %3627 = vmatpush.bf16.msrb.mxu0 %v7866_v9  ;;  %v9325_v9 = vld [vmem:[#allocation16 + $0x144] sm:$0xf] }
 0x862   : > { %v11045_v23 = vpop.f32.mrf.mxu3 }
 0x863   : > { %v2998_v39 = vadd.f32 %v11045_v23, %v2910_v50 }
 0x865   : > { %3628 = vmatpush.bf16.msrb.mxu0 %v7850_v24  ;;  %v3086_v10 = vadd.f32 %v11041_v14, %v2998_v39  ;;  %v7934_v14 = vor.u32 %v9331_v55, %v7933_v45  ;;  %v7903_v24 = vld [vmem:[#allocation16 + $0x130] sm:$0xf0]  ;;  %v9341_v45 = vld [vmem:[#allocation16 + $0x1c4] sm:$0xf] }
 0x86a   : > { %v11049_v3 = vpop.f32.mrf.mxu3 }
 0x872   : > { %v2993_v2 = vpop.f32.mrf.mxu3 }
 0x873   : > { %v3000_v60 = vadd.f32 %v2993_v2, %v2912_v59  ;;  %v9306_v59 = vld [vmem:[#allocation16 + $0xac] sm:$0xf]  ;;  %v7935_v2 = vld [vmem:[#allocation16 + $0x170] sm:$0xf0] }
 0x874   : > { %v7790_v63 = vor.u32 %v9306_v59, %v7787_v46  ;;  %v7938_v43 = vor.u32 %v9329_v54, %v7935_v2  ;;  %v7839_v59 = vld [vmem:[#allocation16 + $0x58] sm:$0xf0]  ;;  %v7922_v46 = vor.u32 %v9325_v9, %v7919_v33  ;;  %v7971_v9 = vld [vmem:[#allocation16 + $0x1b0] sm:$0xf0]  ;;  %v7889_v33 = vld [vmem:[#allocation16 + $0x108] sm:$0xf] }
 0x875   : > { %v11051_v15 = vadd.f32 %v3081_v28, %v3000_v60  ;;  %v9300_v28 = vld [vmem:[#allocation16 + $0x74] sm:$0xf0]  ;;  %v11067_v60 = vpop.f32.mrf.mxu2  ;;  %v7842_v50 = vor.u32 %v9294_v41, %v7839_v59  ;;  %v7974_v59 = vor.u32 %v9337_v57, %v7971_v9  ;;  %v7943_v57 = vld [vmem:[#allocation16 + $0x178] sm:$0xf0] }
 0x876   : > { %3421 = vmatpush.bf16.msrb.mxu3 %v7790_v63  ;;  %v7754_v56 = vor.u32 %v9300_v28, %v7753_v38  ;;  %v7901_v63 = vld [vmem:[#allocation16 + $0x120] sm:$0xf]  ;;  %v7906_v38 = vor.u32 %v9321_v26, %v7903_v24  ;;  %v7890_v26 = vor.u32 %v9320_v34, %v7889_v33 }
 0x877   : > { %v8005_v34 = vld [vmem:[#allocation16 + $0x1e0] sm:$0xf] }
 0x878   : > { %3410 = vmatpush.bf16.msrb.mxu1 %v7754_v56  ;;  %v7805_v56 = vld [vmem:[#allocation16 + $0x8] sm:$0xf] }
 0x87a   : > { %v11057_v13 = vpop.f32.mrf.mxu3  ;;  %3422 = vmatpush.bf16.msrb.mxu3 %v7774_v16  ;;  %v7902_v16 = vor.u32 %v9323_v0, %v7901_v63  ;;  %v9333_v63 = vld [vmem:[#allocation16 + $0x184] sm:$0xf]  ;;  %v7955_v0 = vld [vmem:[#allocation16 + $0x190] sm:$0xf0] }
 0x87d   : > { %v3257_v39 = vpop.f32.mrf.mxu2 }
 0x87e   : > { %3423 = vmatpush.bf16.msrb.mxu3 %v7758_v49  ;;  %v9286_v49 = vld [vmem:[#allocation16 + $0xc] sm:$0xf] }
 0x882   : > { %v3164_v7 = vpop.f32.mrf.mxu3 }
 0x883   : > { %v3174_v40 = vadd.f32 %v3164_v7, %v3086_v10  ;;  %v9288_v10 = vld [vmem:[#allocation16 + $0x14] sm:$0xf0]  ;;  %v7807_v7 = vld [vmem:[#allocation16 + $0x18] sm:$0xf0] }
 0x884   : > { %v7806_v55 = vor.u32 %v9288_v10, %v7805_v56  ;;  %v7810_v54 = vor.u32 %v9286_v49, %v7807_v7  ;;  %v9355_v56 = vld [vmem:[#allocation16 + $0x22c] sm:$0xf0]  ;;  %v8039_v10 = vld [vmem:[#allocation16 + $0x230] sm:$0xf0] }
 0x885   : > { %v3262_v23 = vadd.f32 %v3252_v42, %v3174_v40  ;;  %v7826_v42 = vor.u32 %v9290_v35, %v7823_v27  ;;  %v7985_v40 = vld [vmem:[#allocation16 + $0x1c0] sm:$0xf]  ;;  %v7958_v27 = vor.u32 %v9333_v63, %v7955_v0  ;;  %v9328_v63 = vld [vmem:[#allocation16 + $0x154] sm:$0xf0]  ;;  %v9326_v0 = vld [vmem:[#allocation16 + $0x14c] sm:$0xf] }
 0x887   : > { %v3270_v12 = vadd.f32 %v11062_v44, %v3262_v23  ;;  %v9343_v23 = vld [vmem:[#allocation16 + $0x1cc] sm:$0xf0] }
 0x889   : > { %v3274_v36 = vmax.f32 %v3270_v12, 0.0  ;;  %v7987_v12 = vld [vmem:[#allocation16 + $0x1d0] sm:$0xf0] }
 0x88a   : > { %v11065_v58 = vpop.f32.mrf.mxu3 }
 0x88b   : > { %v11069_v22 = vpack.c.bf16 %v3274_v36, %v3274_v36  ;;  %v7986_v36 = vor.u32 %v9343_v23, %v7985_v40 }
 0x88d   : > { %v3308_v53 = vunpack.c.l.b16 %v11069_v22  ;;  %7843 = vmatmul.msk.bf16.vlgmr.msra.gmra.mxu0 %vm3373_vm8, %v11069_v22  ;;  %7844 = vmatmul.msk.bf16.vlgmr.msra.gmra.mxu2 %vm3373_vm8, %v11069_v22 }
 0x88e   : > { %3759 = vmatpush.bf16.msra.mxu0 %v7934_v14  ;;  %3772 = vmatpush.bf16.msra.mxu2 %v7938_v43  ;;  %v7990_v14 = vor.u32 %v9341_v45, %v7987_v12  ;;  %v7969_v43 = vld [vmem:[#allocation16 + $0x1a0] sm:$0xf] }
 0x88f   : > { %v11076_v11 = vpack.c.b16 %v3308_v53, %v3308_v53  ;;  %v9318_v53 = vld [vmem:[#allocation16 + $0x10c] sm:$0xf]  ;;  %v7970_v41 = vor.u32 %v9339_v20, %v7969_v43  ;;  %v8021_v12 = vld [vmem:[#allocation16 + $0x200] sm:$0xf]  ;;  %v9332_v43 = vld [vmem:[#allocation16 + $0x174] sm:$0xf0] }
 0x890   : > { %v7894_v24 = vor.u32 %v9318_v53, %v7891_v32  ;;  %v9330_v20 = vld [vmem:[#allocation16 + $0x16c] sm:$0xf]  ;;  %v9347_v53 = vld [vmem:[#allocation16 + $0x1ec] sm:$0xf0]  ;;  %v9345_v32 = vld [vmem:[#allocation16 + $0x1e4] sm:$0xf] }
 0x891   : > { %v11079_v25 = vshrl.u32 %v11076_v11, 16  ;;  %v11090_v2 = vrot.slane %v11076_v11, 1 }
 0x892   : > { %v3169_v37 = vpop.f32.mrf.mxu3  ;;  %3760 = vmatpush.bf16.msra.mxu0 %v7918_v48  ;;  %3773 = vmatpush.bf16.msra.mxu2 %v7922_v46  ;;  %v7953_v48 = vld [vmem:[#allocation16 + $0x180] sm:$0xf]  ;;  %v9335_v46 = vld [vmem:[#allocation16 + $0x18c] sm:$0xf0] }
 0x893   : > { %v3176_v28 = vadd.f32 %v3169_v37, %v11051_v15  ;;  %7791 = vmatmul.msk.bf16.vlgmr.msra.gmra.mxu1 %vm3373_vm8, %v11079_v25  ;;  %7792 = vmatmul.msk.bf16.vlgmr.msra.gmra.mxu3 %vm3373_vm8, %v11079_v25  ;;  %v7954_v35 = vor.u32 %v9335_v46, %v7953_v48  ;;  %v11101_v40 = vrot.slane %v11079_v25, 1  ;;  %v7946_v48 = vor.u32 %v9330_v20, %v7943_v57  ;;  %v7925_v46 = vld [vmem:[#allocation16 + $0x148] sm:$0xf]  ;;  %v9359_v20 = vld [vmem:[#allocation16 + $0x24c] sm:$0xf0] }
 0x894   : > { %3523 = vmatpush.bf16.msra.mxu1 %v7838_v51  ;;  %3536 = vmatpush.bf16.msra.mxu3 %v7842_v50  ;;  %v7873_v51 = vld [vmem:[#allocation16 + $0xe8] sm:$0xf]  ;;  %v9316_v50 = vld [vmem:[#allocation16 + $0xf4] sm:$0xf0]  ;;  %v9357_v57 = vld [vmem:[#allocation16 + $0x244] sm:$0xf] }
 0x895   : > { %v3264_v61 = vadd.f32 %v3257_v39, %v3176_v28  ;;  %v7874_v37 = vor.u32 %v9316_v50, %v7873_v51  ;;  %v7878_v39 = vor.u32 %v9314_v18, %v7875_v6  ;;  %v9310_v28 = vld [vmem:[#allocation16 + $0xcc] sm:$0xf]  ;;  %v7926_v50 = vor.u32 %v9328_v63, %v7925_v46  ;;  %v7909_v6 = vld [vmem:[#allocation16 + $0x128] sm:$0xf] }
 0x896   : > { %3761 = vmatpush.bf16.msra.mxu0 %v7902_v16  ;;  %3774 = vmatpush.bf16.msra.mxu2 %v7906_v38  ;;  %v7857_v16 = vld [vmem:[#allocation16 + $0xc8] sm:$0xf]  ;;  %v9312_v38 = vld [vmem:[#allocation16 + $0xd4] sm:$0xf0] }
 0x897   : > { %v11087_v15 = vadd.f32 %v11062_v44, %v3264_v61  ;;  %v9353_v61 = vld [vmem:[#allocation16 + $0x224] sm:$0xf]  ;;  %v7858_v49 = vor.u32 %v9312_v38, %v7857_v16  ;;  %v9367_v16 = vld [vmem:[#allocation16 + $0x28c] sm:$0xf0] }
 0x898   : > { %3524 = vmatpush.bf16.msra.mxu1 %v7822_v21  ;;  %3537 = vmatpush.bf16.msra.mxu3 %v7826_v42  ;;  %v7859_v21 = vld [vmem:[#allocation16 + $0xd8] sm:$0xf0]  ;;  %v8037_v42 = vld [vmem:[#allocation16 + $0x220] sm:$0xf]  ;;  %v8042_v45 = vor.u32 %v9353_v61, %v8039_v10  ;;  %v9365_v38 = vld [vmem:[#allocation16 + $0x284] sm:$0xf] }
 0x899   : > { %v7862_v7 = vor.u32 %v9310_v28, %v7859_v21  ;;  %v8038_v23 = vor.u32 %v9355_v56, %v8037_v42  ;;  %v8091_v28 = vld [vmem:[#allocation16 + $0x290] sm:$0xf0]  ;;  %v8073_v10 = vld [vmem:[#allocation16 + $0x260] sm:$0xf] }
 0x89a   : > { %v8094_v61 = vor.u32 %v9365_v38, %v8091_v28  ;;  %v8125_v28 = vld [vmem:[#allocation16 + $0x2c0] sm:$0xf] }
 0x89c   : > { %3525 = vmatpush.bf16.msra.mxu1 %v7806_v55  ;;  %3538 = vmatpush.bf16.msra.mxu3 %v7810_v54  ;;  %v9351_v55 = vld [vmem:[#allocation16 + $0x20c] sm:$0xf0]  ;;  %v9349_v54 = vld [vmem:[#allocation16 + $0x204] sm:$0xf] }
 0x89d   : > { %7895 = vmatmul.msk.bf16.vlgmr.msrb.gmra.mxu0 %vm3373_vm8, %v11090_v2  ;;  %7896 = vmatmul.msk.bf16.vlgmr.msrb.gmra.mxu2 %vm3373_vm8, %v11090_v2  ;;  %v8022_v9 = vor.u32 %v9351_v55, %v8021_v12  ;;  %v9344_v12 = vld [vmem:[#allocation16 + $0x1d4] sm:$0xf0]  ;;  %v9342_v55 = vld [vmem:[#allocation16 + $0x1cc] sm:$0xf] }
 0x89e   : > { %3892 = vmatpush.bf16.msrb.mxu0 %v7986_v36  ;;  %3905 = vmatpush.bf16.msrb.mxu2 %v7990_v14  ;;  %v8023_v36 = vld [vmem:[#allocation16 + $0x210] sm:$0xf0]  ;;  %v7941_v14 = vld [vmem:[#allocation16 + $0x168] sm:$0xf] }
 0x89f   : > { %v8026_v33 = vor.u32 %v9349_v54, %v8023_v36  ;;  %v7995_v54 = vld [vmem:[#allocation16 + $0x1d8] sm:$0xf0] }
 0x8a2   : > { %3893 = vmatpush.bf16.msrb.mxu0 %v7970_v41  ;;  %3906 = vmatpush.bf16.msrb.mxu2 %v7974_v59  ;;  %v8007_v41 = vld [vmem:[#allocation16 + $0x1f0] sm:$0xf0]  ;;  %v7942_v59 = vor.u32 %v9332_v43, %v7941_v14  ;;  %v8057_v43 = vld [vmem:[#allocation16 + $0x240] sm:$0xf] }
 0x8a3   : > { %7793 = vmatmul.msk.bf16.vlgmr.msrb.gmra.mxu1 %vm3373_vm8, %v11079_v25  ;;  %7794 = vmatmul.msk.bf16.vlgmr.msrb.gmra.mxu3 %vm3373_vm8, %v11079_v25  ;;  %v8010_v51 = vor.u32 %v9345_v32, %v8007_v41  ;;  %v9340_v32 = vld [vmem:[#allocation16 + $0x1b4] sm:$0xf0]  ;;  %v9338_v41 = vld [vmem:[#allocation16 + $0x1ac] sm:$0xf] }
 0x8a4   : > { %3652 = vmatpush.bf16.msrb.mxu1 %v7890_v26  ;;  %3665 = vmatpush.bf16.msrb.mxu3 %v7894_v24  ;;  %v7927_v26 = vld [vmem:[#allocation16 + $0x158] sm:$0xf0]  ;;  %v8006_v24 = vor.u32 %v9347_v53, %v8005_v34  ;;  %v7998_v34 = vor.u32 %v9342_v55, %v7995_v54  ;;  %v7977_v53 = vld [vmem:[#allocation16 + $0x1a8] sm:$0xf]  ;;  %v9371_v55 = vld [vmem:[#allocation16 + $0x2ac] sm:$0xf0] }
 0x8a5   : > { %v7930_v18 = vor.u32 %v9326_v0, %v7927_v26  ;;  %v7978_v63 = vor.u32 %v9340_v32, %v7977_v53  ;;  %v7961_v26 = vld [vmem:[#allocation16 + $0x188] sm:$0xf]  ;;  %v9369_v54 = vld [vmem:[#allocation16 + $0x2a4] sm:$0xf] }
 0x8a6   : > { %3894 = vmatpush.bf16.msrb.mxu0 %v7954_v35  ;;  %3907 = vmatpush.bf16.msrb.mxu2 %v7958_v27  ;;  %v9324_v35 = vld [vmem:[#allocation16 + $0x134] sm:$0xf0]  ;;  %v9322_v27 = vld [vmem:[#allocation16 + $0x12c] sm:$0xf] }
 0x8a7   : > { %v7910_v21 = vor.u32 %v9324_v35, %v7909_v6  ;;  %v9379_v6 = vld [vmem:[#allocation16 + $0x2ec] sm:$0xf0]  ;;  %v9377_v35 = vld [vmem:[#allocation16 + $0x2e4] sm:$0xf] }
 0x8a8   : > { %3653 = vmatpush.bf16.msrb.mxu1 %v7874_v37  ;;  %3666 = vmatpush.bf16.msrb.mxu3 %v7878_v39  ;;  %v7911_v37 = vld [vmem:[#allocation16 + $0x138] sm:$0xf0]  ;;  %v8089_v39 = vld [vmem:[#allocation16 + $0x280] sm:$0xf] }
 0x8a9   : > { %v7914_v42 = vor.u32 %v9322_v27, %v7911_v37  ;;  %v8090_v56 = vor.u32 %v9367_v16, %v8089_v39  ;;  %v8143_v27 = vld [vmem:[#allocation16 + $0x2f0] sm:$0xf0] }
 0x8aa   : > { %v8146_v38 = vor.u32 %v9377_v35, %v8143_v27 }
 0x8ac   : > { %3654 = vmatpush.bf16.msrb.mxu1 %v7858_v49  ;;  %3667 = vmatpush.bf16.msrb.mxu3 %v7862_v7  ;;  %v9363_v49 = vld [vmem:[#allocation16 + $0x26c] sm:$0xf0]  ;;  %v9361_v7 = vld [vmem:[#allocation16 + $0x264] sm:$0xf] }
 0x8ad   : > { %7947 = vmatmul.msk.bf16.vlgmr.msra.gmra.mxu0 %vm3373_vm8, %v11101_v40  ;;  %7948 = vmatmul.msk.bf16.vlgmr.msra.gmra.mxu2 %vm3373_vm8, %v11101_v40  ;;  %v8074_v36 = vor.u32 %v9363_v49, %v8073_v10  ;;  %v9356_v10 = vld [vmem:[#allocation16 + $0x234] sm:$0xf0]  ;;  %v9354_v49 = vld [vmem:[#allocation16 + $0x22c] sm:$0xf] }
 0x8ae   : > { %4025 = vmatpush.bf16.msra.mxu0 %v8038_v23  ;;  %4038 = vmatpush.bf16.msra.mxu2 %v8042_v45  ;;  %v8075_v23 = vld [vmem:[#allocation16 + $0x270] sm:$0xf0]  ;;  %v7993_v45 = vld [vmem:[#allocation16 + $0x1c8] sm:$0xf] }
 0x8af   : > { %v8078_v14 = vor.u32 %v9361_v7, %v8075_v23  ;;  %v8047_v7 = vld [vmem:[#allocation16 + $0x238] sm:$0xf0] }
 0x8b2   : > { %4026 = vmatpush.bf16.msra.mxu0 %v8022_v9  ;;  %4039 = vmatpush.bf16.msra.mxu2 %v8026_v33  ;;  %v8059_v9 = vld [vmem:[#allocation16 + $0x250] sm:$0xf0]  ;;  %v7994_v33 = vor.u32 %v9344_v12, %v7993_v45  ;;  %v8109_v12 = vld [vmem:[#allocation16 + $0x2a0] sm:$0xf] }
 0x8b3   : > { %7845 = vmatmul.msk.bf16.vlgmr.msra.gmra.mxu1 %vm3373_vm8, %v11069_v22  ;;  %7846 = vmatmul.msk.bf16.vlgmr.msra.gmra.mxu3 %vm3373_vm8, %v11069_v22  ;;  %v11112_v22 = vrot.slane %v11076_v11, 2  ;;  %v8062_v46 = vor.u32 %v9357_v57, %v8059_v9  ;;  %v9352_v57 = vld [vmem:[#allocation16 + $0x214] sm:$0xf0]  ;;  %v9350_v9 = vld [vmem:[#allocation16 + $0x20c] sm:$0xf] }
 0x8b4   : > { %3785 = vmatpush.bf16.msra.mxu1 %v7942_v59  ;;  %3798 = vmatpush.bf16.msra.mxu3 %v7946_v48  ;;  %v7979_v59 = vld [vmem:[#allocation16 + $0x1b8] sm:$0xf0]  ;;  %v8058_v48 = vor.u32 %v9359_v20, %v8057_v43  ;;  %v8050_v43 = vor.u32 %v9354_v49, %v8047_v7  ;;  %v8029_v20 = vld [vmem:[#allocation16 + $0x208] sm:$0xf]  ;;  %v9381_v49 = vld [vmem:[#allocation16 + $0x304] sm:$0xf] }
 0x8b5   : > { %v7982_v0 = vor.u32 %v9338_v41, %v7979_v59  ;;  %v8030_v32 = vor.u32 %v9352_v57, %v8029_v20  ;;  %v8013_v59 = vld [vmem:[#allocation16 + $0x1e8] sm:$0xf]  ;;  %v8163_v7 = vld [vmem:[#allocation16 + $0x310] sm:$0xf0] }
 0x8b6   : > { %4027 = vmatpush.bf16.msra.mxu0 %v8006_v24  ;;  %4040 = vmatpush.bf16.msra.mxu2 %v8010_v51  ;;  %v9336_v24 = vld [vmem:[#allocation16 + $0x194] sm:$0xf0]  ;;  %v9334_v51 = vld [vmem:[#allocation16 + $0x18c] sm:$0xf] }
 0x8b7   : > { %v7962_v37 = vor.u32 %v9336_v24, %v7961_v26  ;;  %v9391_v26 = vld [vmem:[#allocation16 + $0x34c] sm:$0xf0]  ;;  %v9389_v24 = vld [vmem:[#allocation16 + $0x344] sm:$0xf] }
 0x8b8   : > { %3786 = vmatpush.bf16.msra.mxu1 %v7926_v50  ;;  %3799 = vmatpush.bf16.msra.mxu3 %v7930_v18  ;;  %v7963_v50 = vld [vmem:[#allocation16 + $0x198] sm:$0xf0]  ;;  %v8141_v18 = vld [vmem:[#allocation16 + $0x2e0] sm:$0xf] }
 0x8b9   : > { %v7966_v39 = vor.u32 %v9334_v51, %v7963_v50  ;;  %v8142_v16 = vor.u32 %v9379_v6, %v8141_v18  ;;  %v8195_v51 = vld [vmem:[#allocation16 + $0x350] sm:$0xf0]  ;;  %v2643_v50 = vadd.f32 %v11007_v4, %v11005_v5  ;;  %v11136_v6 = vrot.slane %v11076_v11, 3  ;;  %v9368_v5 = vld [vmem:[#allocation16 + $0x294] sm:$0xf0] }
 0x8ba   : > { %v8198_v27 = vor.u32 %v9389_v24, %v8195_v51  ;;  %v9366_v4 = vld [vmem:[#allocation16 + $0x28c] sm:$0xf]  ;;  %v8099_v11 = vld [vmem:[#allocation16 + $0x298] sm:$0xf0]  ;;  %v8229_v51 = vld [vmem:[#allocation16 + $0x380] sm:$0xf] }
 0x8bc   : > { %3787 = vmatpush.bf16.msra.mxu1 %v7910_v21  ;;  %3800 = vmatpush.bf16.msra.mxu3 %v7914_v42  ;;  %v9375_v21 = vld [vmem:[#allocation16 + $0x2cc] sm:$0xf0]  ;;  %v9373_v42 = vld [vmem:[#allocation16 + $0x2c4] sm:$0xf] }
 0x8bd   : > { %7999 = vmatmul.msk.bf16.vlgmr.msrb.gmra.mxu0 %vm3373_vm8, %v11112_v22  ;;  %8000 = vmatmul.msk.bf16.vlgmr.msrb.gmra.mxu2 %vm3373_vm8, %v11112_v22  ;;  %v8126_v23 = vor.u32 %v9375_v21, %v8125_v28  ;;  %v2735_v28 = vadd.f32 %v11009_v47, %v2643_v50  ;;  %v8097_v21 = vld [vmem:[#allocation16 + $0x288] sm:$0xf]  ;;  %v9383_v47 = vld [vmem:[#allocation16 + $0x30c] sm:$0xf0] }
 0x8be   : > { %4158 = vmatpush.bf16.msrb.mxu0 %v8090_v56  ;;  %4171 = vmatpush.bf16.msrb.mxu2 %v8094_v61  ;;  %v8127_v56 = vld [vmem:[#allocation16 + $0x2d0] sm:$0xf0]  ;;  %v8045_v61 = vld [vmem:[#allocation16 + $0x228] sm:$0xf]  ;;  %v9399_v50 = vld [vmem:[#allocation16 + $0x38c] sm:$0xf0] }
 0x8bf   : > { %v8130_v45 = vor.u32 %v9373_v42, %v8127_v56  ;;  %v2823_v42 = vadd.f32 %v11036_v8, %v2735_v28  ;;  %v8166_v8 = vor.u32 %v9381_v49, %v8163_v7  ;;  %v9393_v28 = vld [vmem:[#allocation16 + $0x364] sm:$0xf] }
 0x8c2   : > { %4159 = vmatpush.bf16.msrb.mxu0 %v8074_v36  ;;  %4172 = vmatpush.bf16.msrb.mxu2 %v8078_v14  ;;  %v8111_v36 = vld [vmem:[#allocation16 + $0x2b0] sm:$0xf0]  ;;  %v8046_v14 = vor.u32 %v9356_v10, %v8045_v61  ;;  %v8161_v10 = vld [vmem:[#allocation16 + $0x300] sm:$0xf] }
 0x8c3   : > { %7897 = vmatmul.msk.bf16.vlgmr.msrb.gmra.mxu1 %vm3373_vm8, %v11090_v2  ;;  %7898 = vmatmul.msk.bf16.vlgmr.msrb.gmra.mxu3 %vm3373_vm8, %v11090_v2  ;;  %v11123_v2 = vrot.slane %v11079_v25, 2  ;;  %v8114_v53 = vor.u32 %v9369_v54, %v8111_v36  ;;  %v9362_v54 = vld [vmem:[#allocation16 + $0x26c] sm:$0xf]  ;;  %v8083_v36 = vld [vmem:[#allocation16 + $0x278] sm:$0xf0] }
 0x8c4   : > { %3918 = vmatpush.bf16.msrb.mxu1 %v7994_v33  ;;  %3931 = vmatpush.bf16.msrb.mxu3 %v7998_v34  ;;  %v8031_v33 = vld [vmem:[#allocation16 + $0x218] sm:$0xf0]  ;;  %v8110_v34 = vor.u32 %v9371_v55, %v8109_v12  ;;  %v8081_v12 = vld [vmem:[#allocation16 + $0x268] sm:$0xf]  ;;  %v9364_v55 = vld [vmem:[#allocation16 + $0x274] sm:$0xf0] }
 0x8c5   : > { %v8034_v41 = vor.u32 %v9350_v9, %v8031_v33  ;;  %v8082_v57 = vor.u32 %v9364_v55, %v8081_v12  ;;  %v8086_v9 = vor.u32 %v9362_v54, %v8083_v36  ;;  %v8065_v33 = vld [vmem:[#allocation16 + $0x248] sm:$0xf]  ;;  %v9370_v12 = vld [vmem:[#allocation16 + $0x2ac] sm:$0xf]  ;;  %v8119_v55 = vld [vmem:[#allocation16 + $0x2b8] sm:$0xf0] }
 0x8c6   : > { %4160 = vmatpush.bf16.msrb.mxu0 %v8058_v48  ;;  %4173 = vmatpush.bf16.msrb.mxu2 %v8062_v46  ;;  %v9348_v48 = vld [vmem:[#allocation16 + $0x1f4] sm:$0xf0]  ;;  %v9346_v46 = vld [vmem:[#allocation16 + $0x1ec] sm:$0xf]  ;;  %v9415_v36 = vld [vmem:[#allocation16 + $0x40c] sm:$0xf0] }
 0x8c8   : > { %3919 = vmatpush.bf16.msrb.mxu1 %v7978_v63  ;;  %3932 = vmatpush.bf16.msrb.mxu3 %v7982_v0  ;;  %v8015_v63 = vld [vmem:[#allocation16 + $0x1f8] sm:$0xf0]  ;;  %v8193_v0 = vld [vmem:[#allocation16 + $0x340] sm:$0xf] }
 0x8c9   : > { %v8018_v18 = vor.u32 %v9346_v46, %v8015_v63  ;;  %v8194_v35 = vor.u32 %v9391_v26, %v8193_v0  ;;  %v11153_v0 = vrot.slane %v11079_v25, 3 }
 0x8cc   : > { %3920 = vmatpush.bf16.msrb.mxu1 %v7962_v37  ;;  %3933 = vmatpush.bf16.msrb.mxu3 %v7966_v39  ;;  %v8177_v37 = vld [vmem:[#allocation16 + $0x320] sm:$0xf]  ;;  %v9387_v39 = vld [vmem:[#allocation16 + $0x32c] sm:$0xf0] }
 0x8cd   : > { %8051 = vmatmul.msk.bf16.vlgmr.msra.gmra.mxu0 %vm3373_vm8, %v11123_v2  ;;  %8052 = vmatmul.msk.bf16.vlgmr.msra.gmra.mxu2 %vm3373_vm8, %v11123_v2  ;;  %v8178_v56 = vor.u32 %v9387_v39, %v8177_v37  ;;  %v8230_v37 = vor.u32 %v9399_v50, %v8229_v51 }
 0x8ce   : > { %4291 = vmatpush.bf16.msra.mxu0 %v8142_v16  ;;  %4304 = vmatpush.bf16.msra.mxu2 %v8146_v38  ;;  %v9385_v16 = vld [vmem:[#allocation16 + $0x324] sm:$0xf]  ;;  %v8179_v38 = vld [vmem:[#allocation16 + $0x330] sm:$0xf0] }
 0x8cf   : > { %v8182_v61 = vor.u32 %v9385_v16, %v8179_v38  ;;  %v8213_v16 = vld [vmem:[#allocation16 + $0x360] sm:$0xf]  ;;  %v9395_v38 = vld [vmem:[#allocation16 + $0x36c] sm:$0xf0] }
 0x8d2   : > { %4292 = vmatpush.bf16.msra.mxu0 %v8126_v23  ;;  %4305 = vmatpush.bf16.msra.mxu2 %v8130_v45  ;;  %v8098_v23 = vor.u32 %v9368_v5, %v8097_v21  ;;  %v8102_v45 = vor.u32 %v9366_v4, %v8099_v11  ;;  %v8215_v21 = vld [vmem:[#allocation16 + $0x370] sm:$0xf0]  ;;  %v8133_v11 = vld [vmem:[#allocation16 + $0x2c8] sm:$0xf] }
 0x8d3   : > { %7949 = vmatmul.msk.bf16.vlgmr.msra.gmra.mxu1 %vm3373_vm8, %v11101_v40  ;;  %7950 = vmatmul.msk.bf16.vlgmr.msra.gmra.mxu3 %vm3373_vm8, %v11101_v40  ;;  %v8014_v40 = vor.u32 %v9348_v48, %v8013_v59  ;;  %v9401_v59 = vld [vmem:[#allocation16 + $0x3a4] sm:$0xf]  ;;  %v8247_v48 = vld [vmem:[#allocation16 + $0x3b0] sm:$0xf0] }
 0x8d4   : > { %4051 = vmatpush.bf16.msra.mxu1 %v8046_v14  ;;  %4064 = vmatpush.bf16.msra.mxu3 %v8050_v43  ;;  %v2911_v14 = vadd.f32 %v11032_v62, %v2823_v42  ;;  %v8162_v43 = vor.u32 %v9383_v47, %v8161_v10  ;;  %v8067_v62 = vld [vmem:[#allocation16 + $0x258] sm:$0xf0]  ;;  %v8250_v24 = vor.u32 %v9401_v59, %v8247_v48  ;;  %v9376_v42 = vld [vmem:[#allocation16 + $0x2d4] sm:$0xf0]  ;;  %v9390_v59 = vld [vmem:[#allocation16 + $0x34c] sm:$0xf] }
 0x8d5   : > { %v8214_v47 = vor.u32 %v9395_v38, %v8213_v16  ;;  %v8134_v49 = vor.u32 %v9376_v42, %v8133_v11  ;;  %v8203_v48 = vld [vmem:[#allocation16 + $0x358] sm:$0xf0]  ;;  %v8169_v16 = vld [vmem:[#allocation16 + $0x308] sm:$0xf]  ;;  %v9384_v38 = vld [vmem:[#allocation16 + $0x314] sm:$0xf0] }
 0x8d6   : > { %4293 = vmatpush.bf16.msra.mxu0 %v8110_v34  ;;  %4306 = vmatpush.bf16.msra.mxu2 %v8114_v53  ;;  %v2999_v20 = vadd.f32 %v11049_v3, %v2911_v14  ;;  %v9360_v34 = vld [vmem:[#allocation16 + $0x254] sm:$0xf0]  ;;  %v9358_v53 = vld [vmem:[#allocation16 + $0x24c] sm:$0xf]  ;;  %v9413_v14 = vld [vmem:[#allocation16 + $0x404] sm:$0xf]  ;;  %v8206_v50 = vor.u32 %v9390_v59, %v8203_v48 }
 0x8d7   : > { %v8070_v3 = vor.u32 %v9358_v53, %v8067_v62  ;;  %v9409_v53 = vld [vmem:[#allocation16 + $0x3e4] sm:$0xf]  ;;  %v8283_v62 = vld [vmem:[#allocation16 + $0x3f0] sm:$0xf0]  ;;  %v9427_v11 = vld [vmem:[#allocation16 + $0x46c] sm:$0xf0] }
 0x8d8   : > { %4052 = vmatpush.bf16.msra.mxu1 %v8030_v32  ;;  %4065 = vmatpush.bf16.msra.mxu3 %v8034_v41  ;;  %v8245_v32 = vld [vmem:[#allocation16 + $0x3a0] sm:$0xf]  ;;  %v9403_v41 = vld [vmem:[#allocation16 + $0x3ac] sm:$0xf0]  ;;  %v3087_v46 = vadd.f32 %v11047_v31, %v2999_v20  ;;  %v9380_v31 = vld [vmem:[#allocation16 + $0x2f4] sm:$0xf0]  ;;  %v8122_v20 = vor.u32 %v9370_v12, %v8119_v55 }
 0x8d9   : > { %v8246_v26 = vor.u32 %v9403_v41, %v8245_v32  ;;  %v8201_v32 = vld [vmem:[#allocation16 + $0x348] sm:$0xf]  ;;  %v9392_v41 = vld [vmem:[#allocation16 + $0x354] sm:$0xf0]  ;;  %v9425_v42 = vld [vmem:[#allocation16 + $0x464] sm:$0xf] }
 0x8da   : > { %v3175_v63 = vadd.f32 %v11065_v58, %v3087_v46  ;;  %v9378_v58 = vld [vmem:[#allocation16 + $0x2ec] sm:$0xf]  ;;  %v8202_v51 = vor.u32 %v9392_v41, %v8201_v32  ;;  %v9421_v12 = vld [vmem:[#allocation16 + $0x444] sm:$0xf]  ;;  %v8335_v55 = vld [vmem:[#allocation16 + $0x450] sm:$0xf0] }
 0x8db   : > { %v8237_v59 = vld [vmem:[#allocation16 + $0x388] sm:$0xf] }
 0x8dc   : > { %4053 = vmatpush.bf16.msra.mxu1 %v8014_v40  ;;  %4066 = vmatpush.bf16.msra.mxu3 %v8018_v18  ;;  %v9397_v40 = vld [vmem:[#allocation16 + $0x384] sm:$0xf]  ;;  %v8231_v18 = vld [vmem:[#allocation16 + $0x390] sm:$0xf0]  ;;  %v3263_v25 = vadd.f32 %v11067_v60, %v3175_v63  ;;  %v8218_v60 = vor.u32 %v9393_v28, %v8215_v21  ;;  %v9407_v63 = vld [vmem:[#allocation16 + $0x3cc] sm:$0xf0] }
 0x8dd   : > { %8103 = vmatmul.msk.bf16.vlgmr.msrb.gmra.mxu0 %vm3373_vm8, %v11136_v6  ;;  %8104 = vmatmul.msk.bf16.vlgmr.msrb.gmra.mxu2 %vm3373_vm8, %v11136_v6  ;;  %v8234_v39 = vor.u32 %v9397_v40, %v8231_v18  ;;  %v8185_v40 = vld [vmem:[#allocation16 + $0x328] sm:$0xf]  ;;  %v9388_v18 = vld [vmem:[#allocation16 + $0x334] sm:$0xf0]  ;;  %v9382_v28 = vld [vmem:[#allocation16 + $0x30c] sm:$0xf] }
 0x8de   : > { %4423 = vmatpush.bf16.msrb.mxu0 %v8194_v35  ;;  %4436 = vmatpush.bf16.msrb.mxu2 %v8198_v27  ;;  %v8149_v35 = vld [vmem:[#allocation16 + $0x2e8] sm:$0xf]  ;;  %v8151_v27 = vld [vmem:[#allocation16 + $0x2f8] sm:$0xf0]  ;;  %v3271_v10 = vadd.f32 %v11062_v44, %v3263_v25  ;;  %v8297_v44 = vld [vmem:[#allocation16 + $0x400] sm:$0xf] }
 0x8df   : > { %v8150_v5 = vor.u32 %v9380_v31, %v8149_v35  ;;  %v8154_v4 = vor.u32 %v9378_v58, %v8151_v27  ;;  %v9386_v35 = vld [vmem:[#allocation16 + $0x32c] sm:$0xf]  ;;  %v8187_v31 = vld [vmem:[#allocation16 + $0x338] sm:$0xf0] }
 0x8e0   : > { %v3275_v54 = vmax.f32 %v3271_v10, 0.0  ;;  %v8171_v21 = vld [vmem:[#allocation16 + $0x318] sm:$0xf0] }
 0x8e1   : > { %v8174_v10 = vor.u32 %v9382_v28, %v8171_v21 }
 0x8e2   : > { %4424 = vmatpush.bf16.msrb.mxu0 %v8178_v56  ;;  %4437 = vmatpush.bf16.msrb.mxu2 %v8182_v61  ;;  %v9374_v56 = vld [vmem:[#allocation16 + $0x2cc] sm:$0xf]  ;;  %v8135_v61 = vld [vmem:[#allocation16 + $0x2d8] sm:$0xf0] }
 0x8e3   : > { %8001 = vmatmul.msk.bf16.vlgmr.msrb.gmra.mxu1 %vm3373_vm8, %v11112_v22  ;;  %8002 = vmatmul.msk.bf16.vlgmr.msrb.gmra.mxu3 %vm3373_vm8, %v11112_v22  ;;  %v8066_v22 = vor.u32 %v9360_v34, %v8065_v33  ;;  %v8138_v7 = vor.u32 %v9374_v56, %v8135_v61  ;;  %v11165_v33 = vpack.c.bf16 %v3275_v54, %v3275_v54  ;;  %v9411_v34 = vld [vmem:[#allocation16 + $0x3ec] sm:$0xf0]  ;;  %v8351_v56 = vld [vmem:[#allocation16 + $0x470] sm:$0xf0]  ;;  %v11178_v61 = vpop.f32.mrf.mxu2  ;;  %v8253_v54 = vld [vmem:[#allocation16 + $0x3a8] sm:$0xf] }
 0x8e4   : > { %4184 = vmatpush.bf16.msrb.mxu1 %v8098_v23  ;;  %4197 = vmatpush.bf16.msrb.mxu3 %v8102_v45  ;;  %v8117_v23 = vld [vmem:[#allocation16 + $0x2a8] sm:$0xf]  ;;  %v9372_v45 = vld [vmem:[#allocation16 + $0x2b4] sm:$0xf0] }
 0x8e5   : > { %v4488_v58 = vunpack.c.l.b16 %v11165_v33 }
 0x8e6   : > { %4425 = vmatpush.bf16.msrb.mxu0 %v8162_v43  ;;  %4438 = vmatpush.bf16.msrb.mxu2 %v8166_v8  ;;  %v8299_v43 = vld [vmem:[#allocation16 + $0x410] sm:$0xf0]  ;;  %v8118_v8 = vor.u32 %v9372_v45, %v8117_v23  ;;  %v8333_v23 = vld [vmem:[#allocation16 + $0x440] sm:$0xf]  ;;  %v9423_v45 = vld [vmem:[#allocation16 + $0x44c] sm:$0xf0] }
 0x8e8   : > { %4185 = vmatpush.bf16.msrb.mxu1 %v8082_v57  ;;  %4198 = vmatpush.bf16.msrb.mxu3 %v8086_v9  ;;  %v8302_v57 = vor.u32 %v9413_v14, %v8299_v43  ;;  %v8281_v9 = vld [vmem:[#allocation16 + $0x3e0] sm:$0xf]  ;;  %v8255_v14 = vld [vmem:[#allocation16 + $0x3b8] sm:$0xf0]  ;;  %v11187_v43 = vpop.f32.mrf.mxu3 }
 0x8e9   : > { %v8282_v46 = vor.u32 %v9411_v34, %v8281_v9  ;;  %v9417_v9 = vld [vmem:[#allocation16 + $0x424] sm:$0xf]  ;;  %v8319_v34 = vld [vmem:[#allocation16 + $0x430] sm:$0xf0] }
 0x8ec   : > { %4186 = vmatpush.bf16.msrb.mxu1 %v8066_v22  ;;  %4199 = vmatpush.bf16.msrb.mxu3 %v8070_v3  ;;  %v8286_v22 = vor.u32 %v9409_v53, %v8283_v62  ;;  %v8265_v3 = vld [vmem:[#allocation16 + $0x3c0] sm:$0xf] }
 0x8ed   : > { %8155 = vmatmul.msk.bf16.vlgmr.msra.gmra.mxu0 %vm3373_vm8, %v11153_v0  ;;  %8156 = vmatmul.msk.bf16.vlgmr.msra.gmra.mxu2 %vm3373_vm8, %v11153_v0  ;;  %v8266_v27 = vor.u32 %v9407_v63, %v8265_v3  ;;  %v8239_v3 = vld [vmem:[#allocation16 + $0x398] sm:$0xf0] }
 0x8ee   : > { %4561 = vmatpush.bf16.msra.mxu0 %v8246_v26  ;;  %4574 = vmatpush.bf16.msra.mxu2 %v8250_v24  ;;  %v9405_v26 = vld [vmem:[#allocation16 + $0x3c4] sm:$0xf]  ;;  %v8267_v24 = vld [vmem:[#allocation16 + $0x3d0] sm:$0xf0] }
 0x8ef   : > { %v8270_v25 = vor.u32 %v9405_v26, %v8267_v24  ;;  %v8322_v24 = vor.u32 %v9417_v9, %v8319_v34 }
 0x8f2   : > { %4562 = vmatpush.bf16.msra.mxu0 %v8230_v37  ;;  %4575 = vmatpush.bf16.msra.mxu2 %v8234_v39  ;;  %v8186_v37 = vor.u32 %v9388_v18, %v8185_v40  ;;  %v8190_v39 = vor.u32 %v9386_v35, %v8187_v31  ;;  %v8221_v40 = vld [vmem:[#allocation16 + $0x368] sm:$0xf]  ;;  %v9396_v18 = vld [vmem:[#allocation16 + $0x374] sm:$0xf0]  ;;  %v9394_v35 = vld [vmem:[#allocation16 + $0x36c] sm:$0xf] }
 0x8f3   : > { %8053 = vmatmul.msk.bf16.vlgmr.msra.gmra.mxu1 %vm3373_vm8, %v11123_v2  ;;  %8054 = vmatmul.msk.bf16.vlgmr.msra.gmra.mxu3 %vm3373_vm8, %v11123_v2  ;;  %v8298_v2 = vor.u32 %v9415_v36, %v8297_v44  ;;  %v9404_v44 = vld [vmem:[#allocation16 + $0x3b4] sm:$0xf0]  ;;  %v9402_v36 = vld [vmem:[#allocation16 + $0x3ac] sm:$0xf]  ;;  %v8223_v31 = vld [vmem:[#allocation16 + $0x378] sm:$0xf0] }
 0x8f4   : > { %4317 = vmatpush.bf16.msra.mxu1 %v8150_v5  ;;  %4330 = vmatpush.bf16.msra.mxu3 %v8154_v4  ;;  %v11176_v5 = vpack.c.b16 %v4488_v58, %v4488_v58  ;;  %v8349_v4 = vld [vmem:[#allocation16 + $0x460] sm:$0xf]  ;;  %v8254_v32 = vor.u32 %v9404_v44, %v8253_v54  ;;  %v8258_v41 = vor.u32 %v9402_v36, %v8255_v14 }
 0x8f5   : > { %v8226_v21 = vor.u32 %v9394_v35, %v8223_v31  ;;  %v8369_v14 = vld [vmem:[#allocation16 + $0x480] sm:$0xf]  ;;  %v9451_v31 = vld [vmem:[#allocation16 + $0x52c] sm:$0xf0] }
 0x8f6   : > { %4563 = vmatpush.bf16.msra.mxu0 %v8214_v47  ;;  %4576 = vmatpush.bf16.msra.mxu2 %v8218_v60  ;;  %v11181_v60 = vshrl.u32 %v11176_v5, 16  ;;  %v8453_v35 = vld [vmem:[#allocation16 + $0x520] sm:$0xf] }
 0x8f8   : > { %4318 = vmatpush.bf16.msra.mxu1 %v8134_v49  ;;  %4331 = vmatpush.bf16.msra.mxu3 %v8138_v7  ;;  %v8350_v49 = vor.u32 %v9427_v11, %v8349_v4  ;;  %v8354_v7 = vor.u32 %v9425_v42, %v8351_v56  ;;  %v11194_v11 = vrot.slane %v11176_v5, 1 }
 0x8fc   : > { %4319 = vmatpush.bf16.msra.mxu1 %v8118_v8  ;;  %4332 = vmatpush.bf16.msra.mxu3 %v8122_v20  ;;  %v8334_v8 = vor.u32 %v9423_v45, %v8333_v23  ;;  %v8338_v20 = vor.u32 %v9421_v12, %v8335_v55  ;;  %v8305_v23 = vld [vmem:[#allocation16 + $0x408] sm:$0xf]  ;;  %v9416_v45 = vld [vmem:[#allocation16 + $0x414] sm:$0xf0]  ;;  %v9414_v12 = vld [vmem:[#allocation16 + $0x40c] sm:$0xf] }
 0x8fd   : > { %8207 = vmatmul.msk.bf16.vlgmr.msrb.gmra.mxu0 %vm3373_vm8, %v11165_v33  ;;  %8208 = vmatmul.msk.bf16.vlgmr.msrb.gmra.mxu2 %vm3373_vm8, %v11165_v33  ;;  %v8307_v55 = vld [vmem:[#allocation16 + $0x418] sm:$0xf0]  ;;  %v8306_v34 = vor.u32 %v9416_v45, %v8305_v23 }
 0x8fe   : > { %4694 = vmatpush.bf16.msrb.mxu0 %v8298_v2  ;;  %4707 = vmatpush.bf16.msrb.mxu2 %v8302_v57  ;;  %v8317_v2 = vld [vmem:[#allocation16 + $0x420] sm:$0xf]  ;;  %v9419_v57 = vld [vmem:[#allocation16 + $0x42c] sm:$0xf0]  ;;  %v8359_v23 = vld [vmem:[#allocation16 + $0x478] sm:$0xf0] }
 0x8ff   : > { %v8318_v26 = vor.u32 %v9419_v57, %v8317_v2  ;;  %v8371_v2 = vld [vmem:[#allocation16 + $0x490] sm:$0xf0] }
 0x902   : > { %4695 = vmatpush.bf16.msrb.mxu0 %v8282_v46  ;;  %4708 = vmatpush.bf16.msrb.mxu2 %v8286_v22  ;;  %v9400_v46 = vld [vmem:[#allocation16 + $0x394] sm:$0xf0]  ;;  %v9398_v22 = vld [vmem:[#allocation16 + $0x38c] sm:$0xf] }
 0x903   : > { %8105 = vmatmul.msk.bf16.vlgmr.msrb.gmra.mxu1 %vm3373_vm8, %v11136_v6  ;;  %8106 = vmatmul.msk.bf16.vlgmr.msrb.gmra.mxu3 %vm3373_vm8, %v11136_v6  ;;  %v8170_v6 = vor.u32 %v9384_v38, %v8169_v16  ;;  %v8403_v16 = vld [vmem:[#allocation16 + $0x4d0] sm:$0xf0] }
 0x904   : > { %4449 = vmatpush.bf16.msrb.mxu1 %v8202_v51  ;;  %4462 = vmatpush.bf16.msrb.mxu3 %v8206_v50  ;;  %v8238_v51 = vor.u32 %v9400_v46, %v8237_v59  ;;  %v8242_v50 = vor.u32 %v9398_v22, %v8239_v3  ;;  %v9410_v59 = vld [vmem:[#allocation16 + $0x3ec] sm:$0xf] }
 0x906   : > { %4696 = vmatpush.bf16.msrb.mxu0 %v8266_v27  ;;  %4709 = vmatpush.bf16.msrb.mxu2 %v8270_v25  ;;  %v8401_v27 = vld [vmem:[#allocation16 + $0x4c0] sm:$0xf] }
 0x908   : > { %4450 = vmatpush.bf16.msrb.mxu1 %v8186_v37  ;;  %4463 = vmatpush.bf16.msrb.mxu3 %v8190_v39  ;;  %v9439_v37 = vld [vmem:[#allocation16 + $0x4cc] sm:$0xf0]  ;;  %v9437_v39 = vld [vmem:[#allocation16 + $0x4c4] sm:$0xf] }
 0x909   : > { %v8402_v42 = vor.u32 %v9439_v37, %v8401_v27  ;;  %v8406_v56 = vor.u32 %v9437_v39, %v8403_v16  ;;  %v8455_v27 = vld [vmem:[#allocation16 + $0x530] sm:$0xf0] }
 0x90a   : > { %v3501_v47 = vpop.f32.mrf.mxu0 }
 0x90c   : > { %4451 = vmatpush.bf16.msrb.mxu1 %v8170_v6  ;;  %4464 = vmatpush.bf16.msrb.mxu3 %v8174_v10  ;;  %v8385_v6 = vld [vmem:[#allocation16 + $0x4a0] sm:$0xf] }
 0x90d   : > { %8259 = vmatmul.msk.bf16.vlgmr.msra.gmra.mxu0 %vm3373_vm8, %v11181_v60  ;;  %8260 = vmatmul.msk.bf16.vlgmr.msra.gmra.mxu2 %vm3373_vm8, %v11181_v60 }
 0x90e   : > { %4827 = vmatpush.bf16.msra.mxu0 %v8350_v49  ;;  %4840 = vmatpush.bf16.msra.mxu2 %v8354_v7  ;;  %v9433_v49 = vld [vmem:[#allocation16 + $0x4a4] sm:$0xf]  ;;  %v8387_v7 = vld [vmem:[#allocation16 + $0x4b0] sm:$0xf0] }
 0x90f   : > { %v8390_v36 = vor.u32 %v9433_v49, %v8387_v7  ;;  %v9428_v49 = vld [vmem:[#allocation16 + $0x474] sm:$0xf0]  ;;  %v9426_v7 = vld [vmem:[#allocation16 + $0x46c] sm:$0xf] }
 0x910   : > { %v3386_v53 = vpop.f32.mrf.mxu1  ;;  %v3514_v62 = vpop.f32.mrf.mxu2 }
 0x911   : > { %v3502_v48 = vadd.f32 %v3501_v47, %v3386_v53  ;;  %v9435_v47 = vld [vmem:[#allocation16 + $0x4ac] sm:$0xf0]  ;;  %v8310_v53 = vor.u32 %v9414_v12, %v8307_v55  ;;  %v8421_v55 = vld [vmem:[#allocation16 + $0x4e0] sm:$0xf] }
 0x912   : > { %v3503_v63 = vpop.f32.mrf.mxu0  ;;  %4828 = vmatpush.bf16.msra.mxu0 %v8334_v8  ;;  %4841 = vmatpush.bf16.msra.mxu2 %v8338_v20  ;;  %v8386_v44 = vor.u32 %v9435_v47, %v8385_v6  ;;  %v9431_v8 = vld [vmem:[#allocation16 + $0x48c] sm:$0xf0]  ;;  %v9429_v20 = vld [vmem:[#allocation16 + $0x484] sm:$0xf]  ;;  %v8439_v6 = vld [vmem:[#allocation16 + $0x510] sm:$0xf0] }
 0x913   : > { %8157 = vmatmul.msk.bf16.vlgmr.msra.gmra.mxu1 %vm3373_vm8, %v11153_v0  ;;  %8158 = vmatmul.msk.bf16.vlgmr.msra.gmra.mxu3 %vm3373_vm8, %v11153_v0  ;;  %v8222_v0 = vor.u32 %v9396_v18, %v8221_v40  ;;  %v8370_v22 = vor.u32 %v9431_v8, %v8369_v14  ;;  %v8374_v3 = vor.u32 %v9429_v20, %v8371_v2  ;;  %v8275_v40 = vld [vmem:[#allocation16 + $0x3d8] sm:$0xf0]  ;;  %v8357_v47 = vld [vmem:[#allocation16 + $0x468] sm:$0xf] }
 0x914   : > { %4587 = vmatpush.bf16.msra.mxu1 %v8254_v32  ;;  %4600 = vmatpush.bf16.msra.mxu3 %v8258_v41  ;;  %v9412_v41 = vld [vmem:[#allocation16 + $0x3f4] sm:$0xf0]  ;;  %v8358_v20 = vor.u32 %v9428_v49, %v8357_v47  ;;  %v8362_v2 = vor.u32 %v9426_v7, %v8359_v23  ;;  %v8409_v47 = vld [vmem:[#allocation16 + $0x4c8] sm:$0xf]  ;;  %v9438_v7 = vld [vmem:[#allocation16 + $0x4cc] sm:$0xf] }
 0x915   : > { %v9440_v49 = vld [vmem:[#allocation16 + $0x4d4] sm:$0xf0]  ;;  %v8411_v23 = vld [vmem:[#allocation16 + $0x4d8] sm:$0xf0] }
 0x916   : > { %v3399_v58 = vpop.f32.mrf.mxu3  ;;  %4829 = vmatpush.bf16.msra.mxu0 %v8318_v26  ;;  %4842 = vmatpush.bf16.msra.mxu2 %v8322_v24  ;;  %v8273_v24 = vld [vmem:[#allocation16 + $0x3c8] sm:$0xf] }
 0x917   : > { %v3515_v25 = vadd.f32 %v3514_v62, %v3399_v58  ;;  %v8289_v62 = vld [vmem:[#allocation16 + $0x3e8] sm:$0xf]  ;;  %v9449_v58 = vld [vmem:[#allocation16 + $0x524] sm:$0xf] }
 0x918   : > { %v3388_v38 = vpop.f32.mrf.mxu1  ;;  %v3516_v28 = vpop.f32.mrf.mxu2  ;;  %4588 = vmatpush.bf16.msra.mxu1 %v8238_v51  ;;  %4601 = vmatpush.bf16.msra.mxu3 %v8242_v50  ;;  %v8290_v63 = vor.u32 %v9412_v41, %v8289_v62  ;;  %v9408_v51 = vld [vmem:[#allocation16 + $0x3d4] sm:$0xf0]  ;;  %v9406_v50 = vld [vmem:[#allocation16 + $0x3cc] sm:$0xf] }
 0x919   : > { %v8278_v39 = vor.u32 %v9406_v50, %v8275_v40  ;;  %v11213_v38 = vrot.slane %v11181_v60, 1  ;;  %v8454_v28 = vor.u32 %v9451_v31, %v8453_v35  ;;  %v9424_v62 = vld [vmem:[#allocation16 + $0x454] sm:$0xf0]  ;;  %v9422_v41 = vld [vmem:[#allocation16 + $0x44c] sm:$0xf] }
 0x91a   : > { %v3630_v4 = vpop.f32.mrf.mxu0  ;;  %v8505_v50 = vld [vmem:[#allocation16 + $0x580] sm:$0xf]  ;;  %v9463_v35 = vld [vmem:[#allocation16 + $0x58c] sm:$0xf0]  ;;  %v9461_v31 = vld [vmem:[#allocation16 + $0x584] sm:$0xf] }
 0x91b   : > { %v11196_v10 = vadd.f32 %v3630_v4, %v3502_v48  ;;  %v8291_v48 = vld [vmem:[#allocation16 + $0x3f8] sm:$0xf0] }
 0x91c   : > { %4589 = vmatpush.bf16.msra.mxu1 %v8222_v0  ;;  %4602 = vmatpush.bf16.msra.mxu3 %v8226_v21  ;;  %v8294_v26 = vor.u32 %v9410_v59, %v8291_v48  ;;  %v8458_v0 = vor.u32 %v9449_v58, %v8455_v27  ;;  %v8437_v21 = vld [vmem:[#allocation16 + $0x500] sm:$0xf]  ;;  %v8343_v59 = vld [vmem:[#allocation16 + $0x458] sm:$0xf0]  ;;  %v8507_v58 = vld [vmem:[#allocation16 + $0x590] sm:$0xf0] }
 0x91d   : > { %8311 = vmatmul.msk.bf16.vlgmr.msrb.gmra.mxu0 %vm3373_vm8, %v11194_v11  ;;  %8312 = vmatmul.msk.bf16.vlgmr.msrb.gmra.mxu2 %vm3373_vm8, %v11194_v11 }
 0x91e   : > { %v3401_v54 = vpop.f32.mrf.mxu3  ;;  %4960 = vmatpush.bf16.msrb.mxu0 %v8402_v42  ;;  %4973 = vmatpush.bf16.msrb.mxu2 %v8406_v56  ;;  %v9447_v42 = vld [vmem:[#allocation16 + $0x50c] sm:$0xf0]  ;;  %v9445_v56 = vld [vmem:[#allocation16 + $0x504] sm:$0xf] }
 0x91f   : > { %v8442_v12 = vor.u32 %v9445_v56, %v8439_v6  ;;  %v9443_v54 = vld [vmem:[#allocation16 + $0x4ec] sm:$0xf0]  ;;  %v9457_v56 = vld [vmem:[#allocation16 + $0x564] sm:$0xf]  ;;  %v8491_v6 = vld [vmem:[#allocation16 + $0x570] sm:$0xf0] }
 0x920   : > { %v11202_v57 = vpop.f32.mrf.mxu1  ;;  %v3643_v9 = vpop.f32.mrf.mxu2 }
 0x921   : > { %v11204_v32 = vadd.f32 %v3643_v9, %v3515_v25  ;;  %v8341_v9 = vld [vmem:[#allocation16 + $0x448] sm:$0xf] }
 0x922   : > { %v3632_v46 = vpop.f32.mrf.mxu0  ;;  %4961 = vmatpush.bf16.msrb.mxu0 %v8386_v44  ;;  %4974 = vmatpush.bf16.msrb.mxu2 %v8390_v36  ;;  %v9441_v44 = vld [vmem:[#allocation16 + $0x4e4] sm:$0xf]  ;;  %v8423_v36 = vld [vmem:[#allocation16 + $0x4f0] sm:$0xf0] }
 0x923   : > { %8209 = vmatmul.msk.bf16.vlgmr.msrb.gmra.mxu1 %vm3373_vm8, %v11165_v33  ;;  %8210 = vmatmul.msk.bf16.vlgmr.msrb.gmra.mxu3 %vm3373_vm8, %v11165_v33  ;;  %v8274_v33 = vor.u32 %v9408_v51, %v8273_v24  ;;  %v8422_v46 = vor.u32 %v9443_v54, %v8421_v55  ;;  %v8327_v24 = vld [vmem:[#allocation16 + $0x438] sm:$0xf0]  ;;  %v9455_v55 = vld [vmem:[#allocation16 + $0x54c] sm:$0xf0]  ;;  %v9453_v54 = vld [vmem:[#allocation16 + $0x544] sm:$0xf] }
 0x924   : > { %4720 = vmatpush.bf16.msrb.mxu1 %v8306_v34  ;;  %4733 = vmatpush.bf16.msrb.mxu3 %v8310_v53 }
 0x926   : > { %v11210_v18 = vpop.f32.mrf.mxu3  ;;  %4962 = vmatpush.bf16.msrb.mxu0 %v8370_v22  ;;  %4975 = vmatpush.bf16.msrb.mxu2 %v8374_v3  ;;  %v8426_v22 = vor.u32 %v9441_v44, %v8423_v36  ;;  %v8346_v3 = vor.u32 %v9422_v41, %v8343_v59  ;;  %v8475_v44 = vld [vmem:[#allocation16 + $0x550] sm:$0xf0]  ;;  %v9436_v41 = vld [vmem:[#allocation16 + $0x4b4] sm:$0xf0]  ;;  %v9434_v59 = vld [vmem:[#allocation16 + $0x4ac] sm:$0xf] }
 0x928   : > { %v3414_v25 = vpop.f32.mrf.mxu1  ;;  %v3645_v37 = vpop.f32.mrf.mxu2  ;;  %4721 = vmatpush.bf16.msrb.mxu1 %v8290_v63  ;;  %4734 = vmatpush.bf16.msrb.mxu3 %v8294_v26  ;;  %v9420_v63 = vld [vmem:[#allocation16 + $0x434] sm:$0xf0]  ;;  %v9418_v26 = vld [vmem:[#allocation16 + $0x42c] sm:$0xf] }
 0x92a   : > { %v3763_v16 = vpop.f32.mrf.mxu0 }
 0x92b   : > { %v11216_v4 = vadd.f32 %v3763_v16, %v11196_v10  ;;  %v8438_v10 = vor.u32 %v9447_v42, %v8437_v21  ;;  %v11236_v16 = vrot.slane %v11176_v5, 2  ;;  %v8489_v21 = vld [vmem:[#allocation16 + $0x560] sm:$0xf] }
 0x92c   : > { %4722 = vmatpush.bf16.msrb.mxu1 %v8274_v33  ;;  %4735 = vmatpush.bf16.msrb.mxu3 %v8278_v39  ;;  %v8330_v33 = vor.u32 %v9418_v26, %v8327_v24  ;;  %v8379_v26 = vld [vmem:[#allocation16 + $0x498] sm:$0xf0] }
 0x92d   : > { %8363 = vmatmul.msk.bf16.vlgmr.msra.gmra.mxu0 %vm3373_vm8, %v11213_v38  ;;  %8364 = vmatmul.msk.bf16.vlgmr.msra.gmra.mxu2 %vm3373_vm8, %v11213_v38 }
 0x92e   : > { %v3427_v45 = vpop.f32.mrf.mxu3  ;;  %5093 = vmatpush.bf16.msra.mxu0 %v8454_v28  ;;  %5106 = vmatpush.bf16.msra.mxu2 %v8458_v0  ;;  %v8506_v28 = vor.u32 %v9463_v35, %v8505_v50  ;;  %v8510_v0 = vor.u32 %v9461_v31, %v8507_v58  ;;  %v9475_v35 = vld [vmem:[#allocation16 + $0x5ec] sm:$0xf0]  ;;  %v9473_v31 = vld [vmem:[#allocation16 + $0x5e4] sm:$0xf]  ;;  %v8559_v58 = vld [vmem:[#allocation16 + $0x5f0] sm:$0xf0] }
 0x930   : > { %v3527_v14 = vpop.f32.mrf.mxu1  ;;  %v3776_v8 = vpop.f32.mrf.mxu2 }
 0x931   : > { %v11223_v34 = vadd.f32 %v3527_v14, %v11202_v57  ;;  %v11226_v53 = vadd.f32 %v3776_v8, %v11204_v32  ;;  %v8342_v57 = vor.u32 %v9424_v62, %v8341_v9  ;;  %v8325_v32 = vld [vmem:[#allocation16 + $0x428] sm:$0xf]  ;;  %v8410_v8 = vor.u32 %v9440_v49, %v8409_v47  ;;  %v9452_v49 = vld [vmem:[#allocation16 + $0x534] sm:$0xf0] }
 0x932   : > { %v3765_v48 = vpop.f32.mrf.mxu0  ;;  %5094 = vmatpush.bf16.msra.mxu0 %v8438_v10  ;;  %5107 = vmatpush.bf16.msra.mxu2 %v8442_v12  ;;  %v8326_v37 = vor.u32 %v9420_v63, %v8325_v32  ;;  %v8494_v10 = vor.u32 %v9457_v56, %v8491_v6  ;;  %v8473_v12 = vld [vmem:[#allocation16 + $0x540] sm:$0xf]  ;;  %v9432_v32 = vld [vmem:[#allocation16 + $0x494] sm:$0xf0]  ;;  %v9430_v63 = vld [vmem:[#allocation16 + $0x48c] sm:$0xf] }
 0x933   : > { %8261 = vmatmul.msk.bf16.vlgmr.msra.gmra.mxu1 %vm3373_vm8, %v11181_v60  ;;  %8262 = vmatmul.msk.bf16.vlgmr.msra.gmra.mxu3 %vm3373_vm8, %v11181_v60  ;;  %v8395_v48 = vld [vmem:[#allocation16 + $0x4b8] sm:$0xf0]  ;;  %v9469_v56 = vld [vmem:[#allocation16 + $0x5c4] sm:$0xf]  ;;  %v8543_v6 = vld [vmem:[#allocation16 + $0x5d0] sm:$0xf0] }
 0x934   : > { %4853 = vmatpush.bf16.msra.mxu1 %v8358_v20  ;;  %4866 = vmatpush.bf16.msra.mxu3 %v8362_v2  ;;  %v8414_v20 = vor.u32 %v9438_v7, %v8411_v23  ;;  %v8393_v2 = vld [vmem:[#allocation16 + $0x4a8] sm:$0xf]  ;;  %v9450_v7 = vld [vmem:[#allocation16 + $0x52c] sm:$0xf]  ;;  %v8463_v23 = vld [vmem:[#allocation16 + $0x538] sm:$0xf0] }
 0x935   : > { %v8461_v47 = vld [vmem:[#allocation16 + $0x528] sm:$0xf] }
 0x936   : > { %v3540_v51 = vpop.f32.mrf.mxu3  ;;  %5095 = vmatpush.bf16.msra.mxu0 %v8422_v46  ;;  %5108 = vmatpush.bf16.msra.mxu2 %v8426_v22  ;;  %v8474_v22 = vor.u32 %v9455_v55, %v8473_v12  ;;  %v9467_v12 = vld [vmem:[#allocation16 + $0x5ac] sm:$0xf0]  ;;  %v9465_v55 = vld [vmem:[#allocation16 + $0x5a4] sm:$0xf] }
 0x937   : > { %v11233_v40 = vadd.f32 %v3540_v51, %v11210_v18  ;;  %v9459_v18 = vld [vmem:[#allocation16 + $0x56c] sm:$0xf0]  ;;  %v8557_v51 = vld [vmem:[#allocation16 + $0x5e0] sm:$0xf] }
 0x938   : > { %v3529_v27 = vpop.f32.mrf.mxu1  ;;  %v3778_v25 = vpop.f32.mrf.mxu2  ;;  %4854 = vmatpush.bf16.msra.mxu1 %v8342_v57  ;;  %4867 = vmatpush.bf16.msra.mxu3 %v8346_v3  ;;  %v8478_v57 = vor.u32 %v9453_v54, %v8475_v44  ;;  %v8398_v3 = vor.u32 %v9434_v59, %v8395_v48  ;;  %v8527_v54 = vld [vmem:[#allocation16 + $0x5b0] sm:$0xf0]  ;;  %v9448_v59 = vld [vmem:[#allocation16 + $0x514] sm:$0xf0]  ;;  %v9446_v48 = vld [vmem:[#allocation16 + $0x50c] sm:$0xf] }
 0x93a   : > { %v3896_v39 = vpop.f32.mrf.mxu0 }
 0x93b   : > { %v11239_v42 = vadd.f32 %v3896_v39, %v11216_v4  ;;  %v8490_v4 = vor.u32 %v9459_v18, %v8489_v21  ;;  %v11259_v39 = vrot.slane %v11181_v60, 2  ;;  %v8541_v21 = vld [vmem:[#allocation16 + $0x5c0] sm:$0xf] }
 0x93c   : > { %4855 = vmatpush.bf16.msra.mxu1 %v8326_v37  ;;  %4868 = vmatpush.bf16.msra.mxu3 %v8330_v33  ;;  %v8382_v37 = vor.u32 %v9430_v63, %v8379_v26  ;;  %v8431_v63 = vld [vmem:[#allocation16 + $0x4f8] sm:$0xf0] }
 0x93d   : > { %8415 = vmatmul.msk.bf16.vlgmr.msrb.gmra.mxu0 %vm3373_vm8, %v11236_v16  ;;  %8416 = vmatmul.msk.bf16.vlgmr.msrb.gmra.mxu2 %vm3373_vm8, %v11236_v16 }
 0x93e   : > { %v3542_v45 = vpop.f32.mrf.mxu3  ;;  %5226 = vmatpush.bf16.msrb.mxu0 %v8506_v28  ;;  %5239 = vmatpush.bf16.msrb.mxu2 %v8510_v0  ;;  %v8558_v28 = vor.u32 %v9475_v35, %v8557_v51  ;;  %v8562_v0 = vor.u32 %v9473_v31, %v8559_v58  ;;  %v9487_v35 = vld [vmem:[#allocation16 + $0x64c] sm:$0xf0]  ;;  %v9485_v31 = vld [vmem:[#allocation16 + $0x644] sm:$0xf]  ;;  %v8611_v58 = vld [vmem:[#allocation16 + $0x650] sm:$0xf0] }
 0x940   : > { %v3656_v36 = vpop.f32.mrf.mxu1  ;;  %v3909_v14 = vpop.f32.mrf.mxu2 }
 0x941   : > { %v11246_v9 = vadd.f32 %v3656_v36, %v11223_v34  ;;  %v11249_v62 = vadd.f32 %v3909_v14, %v11226_v53  ;;  %v8394_v34 = vor.u32 %v9436_v41, %v8393_v2  ;;  %v8377_v53 = vld [vmem:[#allocation16 + $0x488] sm:$0xf]  ;;  %v8462_v14 = vor.u32 %v9452_v49, %v8461_v47  ;;  %v9462_v49 = vld [vmem:[#allocation16 + $0x58c] sm:$0xf] }
 0x942   : > { %v3898_v46 = vpop.f32.mrf.mxu0  ;;  %5227 = vmatpush.bf16.msrb.mxu0 %v8490_v4  ;;  %5240 = vmatpush.bf16.msrb.mxu2 %v8494_v10  ;;  %v8378_v25 = vor.u32 %v9432_v32, %v8377_v53  ;;  %v8546_v4 = vor.u32 %v9469_v56, %v8543_v6  ;;  %v8525_v10 = vld [vmem:[#allocation16 + $0x5a0] sm:$0xf]  ;;  %v9444_v53 = vld [vmem:[#allocation16 + $0x4f4] sm:$0xf0]  ;;  %v9442_v32 = vld [vmem:[#allocation16 + $0x4ec] sm:$0xf] }
 0x943   : > { %8313 = vmatmul.msk.bf16.vlgmr.msrb.gmra.mxu1 %vm3373_vm8, %v11194_v11  ;;  %8314 = vmatmul.msk.bf16.vlgmr.msrb.gmra.mxu3 %vm3373_vm8, %v11194_v11  ;;  %v8447_v46 = vld [vmem:[#allocation16 + $0x518] sm:$0xf0]  ;;  %v9481_v56 = vld [vmem:[#allocation16 + $0x624] sm:$0xf]  ;;  %v8595_v6 = vld [vmem:[#allocation16 + $0x630] sm:$0xf0] }
 0x944   : > { %4986 = vmatpush.bf16.msrb.mxu1 %v8410_v8  ;;  %4999 = vmatpush.bf16.msrb.mxu3 %v8414_v20  ;;  %v8466_v8 = vor.u32 %v9450_v7, %v8463_v23  ;;  %v8445_v20 = vld [vmem:[#allocation16 + $0x508] sm:$0xf]  ;;  %v8515_v7 = vld [vmem:[#allocation16 + $0x598] sm:$0xf0] }
 0x945   : > { %v8513_v47 = vld [vmem:[#allocation16 + $0x588] sm:$0xf] }
 0x946   : > { %v3669_v24 = vpop.f32.mrf.mxu3  ;;  %5228 = vmatpush.bf16.msrb.mxu0 %v8474_v22  ;;  %5241 = vmatpush.bf16.msrb.mxu2 %v8478_v57  ;;  %v8526_v57 = vor.u32 %v9467_v12, %v8525_v10  ;;  %v9477_v10 = vld [vmem:[#allocation16 + $0x604] sm:$0xf]  ;;  %v8579_v12 = vld [vmem:[#allocation16 + $0x610] sm:$0xf0] }
 0x947   : > { %v11256_v50 = vadd.f32 %v3669_v24, %v11233_v40  ;;  %v9471_v40 = vld [vmem:[#allocation16 + $0x5cc] sm:$0xf0]  ;;  %v8609_v24 = vld [vmem:[#allocation16 + $0x640] sm:$0xf] }
 0x948   : > { %v3658_v27 = vpop.f32.mrf.mxu1  ;;  %v3911_v11 = vpop.f32.mrf.mxu2  ;;  %4987 = vmatpush.bf16.msrb.mxu1 %v8394_v34  ;;  %5000 = vmatpush.bf16.msrb.mxu3 %v8398_v3  ;;  %v8530_v34 = vor.u32 %v9465_v55, %v8527_v54  ;;  %v8450_v3 = vor.u32 %v9446_v48, %v8447_v46  ;;  %v9458_v48 = vld [vmem:[#allocation16 + $0x56c] sm:$0xf]  ;;  %v8499_v46 = vld [vmem:[#allocation16 + $0x578] sm:$0xf0] }
 0x94a   : > { %v4029_v33 = vpop.f32.mrf.mxu0 }
 0x94b   : > { %v11262_v18 = vadd.f32 %v4029_v33, %v11239_v42  ;;  %v8542_v42 = vor.u32 %v9471_v40, %v8541_v21  ;;  %v11282_v33 = vrot.slane %v11176_v5, 3  ;;  %v8593_v21 = vld [vmem:[#allocation16 + $0x620] sm:$0xf]  ;;  %v9464_v5 = vld [vmem:[#allocation16 + $0x594] sm:$0xf0] }
 0x94c   : > { %4988 = vmatpush.bf16.msrb.mxu1 %v8378_v25  ;;  %5001 = vmatpush.bf16.msrb.mxu3 %v8382_v37  ;;  %v8434_v25 = vor.u32 %v9442_v32, %v8431_v63  ;;  %v8661_v63 = vld [vmem:[#allocation16 + $0x6a0] sm:$0xf] }
 0x94d   : > { %8467 = vmatmul.msk.bf16.vlgmr.msra.gmra.mxu0 %vm3373_vm8, %v11259_v39  ;;  %8468 = vmatmul.msk.bf16.vlgmr.msra.gmra.mxu2 %vm3373_vm8, %v11259_v39 }
 0x94e   : > { %v3671_v45 = vpop.f32.mrf.mxu3  ;;  %5359 = vmatpush.bf16.msra.mxu0 %v8558_v28  ;;  %5372 = vmatpush.bf16.msra.mxu2 %v8562_v0  ;;  %v8610_v28 = vor.u32 %v9487_v35, %v8609_v24  ;;  %v8614_v0 = vor.u32 %v9485_v31, %v8611_v58  ;;  %v9499_v24 = vld [vmem:[#allocation16 + $0x6ac] sm:$0xf0]  ;;  %v9497_v35 = vld [vmem:[#allocation16 + $0x6a4] sm:$0xf]  ;;  %v8663_v31 = vld [vmem:[#allocation16 + $0x6b0] sm:$0xf0] }
 0x94f   : > { %v8598_v45 = vor.u32 %v9481_v56, %v8595_v6  ;;  %v8647_v56 = vld [vmem:[#allocation16 + $0x690] sm:$0xf0]  ;;  %v8565_v6 = vld [vmem:[#allocation16 + $0x5e8] sm:$0xf] }
 0x950   : > { %v3789_v44 = vpop.f32.mrf.mxu1  ;;  %v4042_v36 = vpop.f32.mrf.mxu2 }
 0x951   : > { %v11269_v2 = vadd.f32 %v3789_v44, %v11246_v9  ;;  %v11272_v41 = vadd.f32 %v4042_v36, %v11249_v62  ;;  %v8446_v9 = vor.u32 %v9448_v59, %v8445_v20  ;;  %v8429_v62 = vld [vmem:[#allocation16 + $0x4e8] sm:$0xf]  ;;  %v8514_v44 = vor.u32 %v9464_v5, %v8513_v47  ;;  %v9460_v59 = vld [vmem:[#allocation16 + $0x574] sm:$0xf0]  ;;  %v9474_v47 = vld [vmem:[#allocation16 + $0x5ec] sm:$0xf] }
 0x952   : > { %v4031_v22 = vpop.f32.mrf.mxu0  ;;  %5360 = vmatpush.bf16.msra.mxu0 %v8542_v42  ;;  %5373 = vmatpush.bf16.msra.mxu2 %v8546_v4  ;;  %v8430_v11 = vor.u32 %v9444_v53, %v8429_v62  ;;  %v8577_v42 = vld [vmem:[#allocation16 + $0x600] sm:$0xf]  ;;  %v9479_v4 = vld [vmem:[#allocation16 + $0x60c] sm:$0xf0]  ;;  %v8518_v36 = vor.u32 %v9462_v49, %v8515_v7  ;;  %v9454_v62 = vld [vmem:[#allocation16 + $0x54c] sm:$0xf] }
 0x953   : > { %8365 = vmatmul.msk.bf16.vlgmr.msra.gmra.mxu1 %vm3373_vm8, %v11213_v38  ;;  %8366 = vmatmul.msk.bf16.vlgmr.msra.gmra.mxu3 %vm3373_vm8, %v11213_v38  ;;  %v8483_v53 = vld [vmem:[#allocation16 + $0x558] sm:$0xf0] }
 0x954   : > { %5119 = vmatpush.bf16.msra.mxu1 %v8462_v14  ;;  %5132 = vmatpush.bf16.msra.mxu3 %v8466_v8  ;;  %v8497_v14 = vld [vmem:[#allocation16 + $0x568] sm:$0xf]  ;;  %v8567_v5 = vld [vmem:[#allocation16 + $0x5f8] sm:$0xf0] }
 0x956   : > { %v3802_v26 = vpop.f32.mrf.mxu3  ;;  %5361 = vmatpush.bf16.msra.mxu0 %v8526_v57  ;;  %5374 = vmatpush.bf16.msra.mxu2 %v8530_v34  ;;  %v8578_v57 = vor.u32 %v9479_v4, %v8577_v42  ;;  %v8582_v34 = vor.u32 %v9477_v10, %v8579_v12  ;;  %v8631_v42 = vld [vmem:[#allocation16 + $0x670] sm:$0xf0] }
 0x957   : > { %v11279_v51 = vadd.f32 %v3802_v26, %v11256_v50  ;;  %v9483_v50 = vld [vmem:[#allocation16 + $0x62c] sm:$0xf0] }
 0x958   : > { %v3791_v27 = vpop.f32.mrf.mxu1  ;;  %v4044_v38 = vpop.f32.mrf.mxu2  ;;  %5120 = vmatpush.bf16.msra.mxu1 %v8446_v9  ;;  %5133 = vmatpush.bf16.msra.mxu3 %v8450_v3  ;;  %v8502_v9 = vor.u32 %v9458_v48, %v8499_v46  ;;  %v9456_v3 = vld [vmem:[#allocation16 + $0x554] sm:$0xf0]  ;;  %v8551_v48 = vld [vmem:[#allocation16 + $0x5d8] sm:$0xf0] }
 0x959   : > { %v8486_v38 = vor.u32 %v9454_v62, %v8483_v53  ;;  %v8713_v53 = vld [vmem:[#allocation16 + $0x700] sm:$0xf] }
 0x95a   : > { %v4162_v37 = vpop.f32.mrf.mxu0 }
 0x95b   : > { %v11285_v40 = vadd.f32 %v4162_v37, %v11262_v18  ;;  %v8594_v18 = vor.u32 %v9483_v50, %v8593_v21  ;;  %v8662_v37 = vor.u32 %v9499_v24, %v8661_v63  ;;  %v9493_v50 = vld [vmem:[#allocation16 + $0x684] sm:$0xf]  ;;  %v9511_v63 = vld [vmem:[#allocation16 + $0x70c] sm:$0xf0] }
 0x95c   : > { %5121 = vmatpush.bf16.msra.mxu1 %v8430_v11  ;;  %5134 = vmatpush.bf16.msra.mxu3 %v8434_v25  ;;  %v11305_v25 = vrot.slane %v11181_v60, 3  ;;  %v9476_v60 = vld [vmem:[#allocation16 + $0x5f4] sm:$0xf0]  ;;  %v8650_v7 = vor.u32 %v9493_v50, %v8647_v56  ;;  %v9509_v24 = vld [vmem:[#allocation16 + $0x704] sm:$0xf] }
 0x95d   : > { %8519 = vmatmul.msk.bf16.vlgmr.msrb.gmra.mxu0 %vm3373_vm8, %v11282_v33  ;;  %8520 = vmatmul.msk.bf16.vlgmr.msrb.gmra.mxu2 %vm3373_vm8, %v11282_v33  ;;  %v8566_v12 = vor.u32 %v9476_v60, %v8565_v6  ;;  %v8617_v50 = vld [vmem:[#allocation16 + $0x648] sm:$0xf]  ;;  %v9488_v56 = vld [vmem:[#allocation16 + $0x654] sm:$0xf0]  ;;  %v9486_v6 = vld [vmem:[#allocation16 + $0x64c] sm:$0xf] }
 0x95e   : > { %v3804_v23 = vpop.f32.mrf.mxu3  ;;  %5491 = vmatpush.bf16.msrb.mxu0 %v8610_v28  ;;  %5504 = vmatpush.bf16.msrb.mxu2 %v8614_v0  ;;  %v8666_v28 = vor.u32 %v9497_v35, %v8663_v31  ;;  %v8645_v0 = vld [vmem:[#allocation16 + $0x680] sm:$0xf]  ;;  %v8619_v60 = vld [vmem:[#allocation16 + $0x658] sm:$0xf0] }
 0x95f   : > { %v8629_v23 = vld [vmem:[#allocation16 + $0x660] sm:$0xf] }
 0x960   : > { %v3922_v55 = vpop.f32.mrf.mxu1  ;;  %v4175_v54 = vpop.f32.mrf.mxu2 }
 0x961   : > { %v11292_v8 = vadd.f32 %v3922_v55, %v11269_v2  ;;  %v11295_v20 = vadd.f32 %v4175_v54, %v11272_v41  ;;  %v8498_v2 = vor.u32 %v9460_v59, %v8497_v14  ;;  %v8481_v41 = vld [vmem:[#allocation16 + $0x548] sm:$0xf]  ;;  %v8570_v55 = vor.u32 %v9474_v47, %v8567_v5  ;;  %v9472_v14 = vld [vmem:[#allocation16 + $0x5d4] sm:$0xf0]  ;;  %v9470_v59 = vld [vmem:[#allocation16 + $0x5cc] sm:$0xf] }
 0x962   : > { %v4164_v22 = vpop.f32.mrf.mxu0  ;;  %5492 = vmatpush.bf16.msrb.mxu0 %v8594_v18  ;;  %5505 = vmatpush.bf16.msrb.mxu2 %v8598_v45  ;;  %v8482_v27 = vor.u32 %v9456_v3, %v8481_v41  ;;  %v9491_v18 = vld [vmem:[#allocation16 + $0x66c] sm:$0xf0]  ;;  %v9489_v45 = vld [vmem:[#allocation16 + $0x664] sm:$0xf]  ;;  %v8549_v54 = vld [vmem:[#allocation16 + $0x5c8] sm:$0xf] }
 0x963   : > { %8417 = vmatmul.msk.bf16.vlgmr.msrb.gmra.mxu1 %vm3373_vm8, %v11236_v16  ;;  %8418 = vmatmul.msk.bf16.vlgmr.msrb.gmra.mxu3 %vm3373_vm8, %v11236_v16  ;;  %v8630_v22 = vor.u32 %v9491_v18, %v8629_v23  ;;  %v8535_v41 = vld [vmem:[#allocation16 + $0x5b8] sm:$0xf0]  ;;  %v3276_v3 = vmax.f32 %v11087_v15, 0.0  ;;  %v8697_v15 = vld [vmem:[#allocation16 + $0x6e0] sm:$0xf] }
 0x964   : > { %5252 = vmatpush.bf16.msrb.mxu1 %v8514_v44  ;;  %5265 = vmatpush.bf16.msrb.mxu3 %v8518_v36  ;;  %v8683_v23 = vld [vmem:[#allocation16 + $0x6d0] sm:$0xf0] }
 0x966   : > { %v3935_v32 = vpop.f32.mrf.mxu3  ;;  %5493 = vmatpush.bf16.msrb.mxu0 %v8578_v57  ;;  %5506 = vmatpush.bf16.msrb.mxu2 %v8582_v34  ;;  %v8634_v57 = vor.u32 %v9489_v45, %v8631_v42  ;;  %v8554_v34 = vor.u32 %v9470_v59, %v8551_v48  ;;  %v8618_v42 = vor.u32 %v9488_v56, %v8617_v50  ;;  %v8603_v59 = vld [vmem:[#allocation16 + $0x638] sm:$0xf0]  ;;  %v9500_v50 = vld [vmem:[#allocation16 + $0x6b4] sm:$0xf0]  ;;  %v9498_v56 = vld [vmem:[#allocation16 + $0x6ac] sm:$0xf] }
 0x967   : > { %v11302_v26 = vadd.f32 %v3935_v32, %v11279_v51  ;;  %v9495_v51 = vld [vmem:[#allocation16 + $0x68c] sm:$0xf0] }
 0x968   : > { %v3924_v58 = vpop.f32.mrf.mxu1  ;;  %v4177_v16 = vpop.f32.mrf.mxu2  ;;  %5253 = vmatpush.bf16.msrb.mxu1 %v8498_v2  ;;  %5266 = vmatpush.bf16.msrb.mxu3 %v8502_v9  ;;  %v9468_v2 = vld [vmem:[#allocation16 + $0x5b4] sm:$0xf0]  ;;  %v9466_v9 = vld [vmem:[#allocation16 + $0x5ac] sm:$0xf] }
 0x969   : > { %v8538_v16 = vor.u32 %v9466_v9, %v8535_v41 }
 0x96a   : > { %v4295_v11 = vpop.f32.mrf.mxu0 }
 0x96b   : > { %v11308_v21 = vadd.f32 %v4295_v11, %v11285_v40  ;;  %v8646_v40 = vor.u32 %v9495_v51, %v8645_v0  ;;  %v9505_v0 = vld [vmem:[#allocation16 + $0x6e4] sm:$0xf]  ;;  %v8699_v51 = vld [vmem:[#allocation16 + $0x6f0] sm:$0xf0] }
 0x96c   : > { %5254 = vmatpush.bf16.msrb.mxu1 %v8482_v27  ;;  %5267 = vmatpush.bf16.msrb.mxu3 %v8486_v38  ;;  %v8714_v38 = vor.u32 %v9511_v63, %v8713_v53  ;;  %v8702_v5 = vor.u32 %v9505_v0, %v8699_v51  ;;  %v9523_v53 = vld [vmem:[#allocation16 + $0x76c] sm:$0xf0]  ;;  %v9521_v63 = vld [vmem:[#allocation16 + $0x764] sm:$0xf]  ;;  %v8751_v0 = vld [vmem:[#allocation16 + $0x750] sm:$0xf0] }
 0x96d   : > { %8571 = vmatmul.msk.bf16.vlgmr.msra.gmra.mxu0 %vm3373_vm8, %v11305_v25  ;;  %8572 = vmatmul.msk.bf16.vlgmr.msra.gmra.mxu2 %vm3373_vm8, %v11305_v25  ;;  %v8669_v51 = vld [vmem:[#allocation16 + $0x6a8] sm:$0xf] }
 0x96e   : > { %v3937_v49 = vpop.f32.mrf.mxu3  ;;  %5629 = vmatpush.bf16.msra.mxu0 %v8662_v37  ;;  %5642 = vmatpush.bf16.msra.mxu2 %v8666_v28  ;;  %v11328_v37 = vpack.c.bf16 %v3276_v3, %v3276_v3  ;;  %v8765_v3 = vld [vmem:[#allocation16 + $0x760] sm:$0xf] }
 0x96f   : > { %v8681_v49 = vld [vmem:[#allocation16 + $0x6c0] sm:$0xf] }
 0x970   : > { %v4055_v4 = vpop.f32.mrf.mxu1  ;;  %v4308_v10 = vpop.f32.mrf.mxu2  ;;  %v5556_v48 = vunpack.c.l.b16 %v11328_v37 }
 0x971   : > { %v11315_v44 = vadd.f32 %v4055_v4, %v11292_v8  ;;  %v11318_v36 = vadd.f32 %v4308_v10, %v11295_v20  ;;  %v8550_v8 = vor.u32 %v9472_v14, %v8549_v54  ;;  %v8533_v20 = vld [vmem:[#allocation16 + $0x5a8] sm:$0xf]  ;;  %v8622_v4 = vor.u32 %v9486_v6, %v8619_v60  ;;  %v9484_v54 = vld [vmem:[#allocation16 + $0x634] sm:$0xf0]  ;;  %v9482_v14 = vld [vmem:[#allocation16 + $0x62c] sm:$0xf] }
 0x972   : > { %v4297_v46 = vpop.f32.mrf.mxu0  ;;  %5630 = vmatpush.bf16.msra.mxu0 %v8646_v40  ;;  %5643 = vmatpush.bf16.msra.mxu2 %v8650_v7  ;;  %v8534_v58 = vor.u32 %v9468_v2, %v8533_v20  ;;  %v9503_v40 = vld [vmem:[#allocation16 + $0x6cc] sm:$0xf0]  ;;  %v9501_v7 = vld [vmem:[#allocation16 + $0x6c4] sm:$0xf]  ;;  %v8601_v10 = vld [vmem:[#allocation16 + $0x628] sm:$0xf]  ;;  %v11348_v9 = vpack.c.b16 %v5556_v48, %v5556_v48 }
 0x973   : > { %8469 = vmatmul.msk.bf16.vlgmr.msra.gmra.mxu1 %vm3373_vm8, %v11259_v39  ;;  %8470 = vmatmul.msk.bf16.vlgmr.msra.gmra.mxu3 %vm3373_vm8, %v11259_v39  ;;  %v8715_v39 = vld [vmem:[#allocation16 + $0x710] sm:$0xf0]  ;;  %v9478_v20 = vld [vmem:[#allocation16 + $0x60c] sm:$0xf]  ;;  %v8587_v2 = vld [vmem:[#allocation16 + $0x618] sm:$0xf0] }
 0x974   : > { %5385 = vmatpush.bf16.msra.mxu1 %v8566_v12  ;;  %5398 = vmatpush.bf16.msra.mxu3 %v8570_v55  ;;  %v8718_v11 = vor.u32 %v9509_v24, %v8715_v39  ;;  %v8671_v6 = vld [vmem:[#allocation16 + $0x6b8] sm:$0xf0] }
 0x976   : > { %v4068_v62 = vpop.f32.mrf.mxu3  ;;  %5631 = vmatpush.bf16.msra.mxu0 %v8630_v22  ;;  %5644 = vmatpush.bf16.msra.mxu2 %v8634_v57  ;;  %v8682_v22 = vor.u32 %v9503_v40, %v8681_v49  ;;  %v8686_v57 = vor.u32 %v9501_v7, %v8683_v23  ;;  %v9513_v49 = vld [vmem:[#allocation16 + $0x724] sm:$0xf]  ;;  %v8735_v40 = vld [vmem:[#allocation16 + $0x730] sm:$0xf0] }
 0x977   : > { %v11326_v32 = vadd.f32 %v4068_v62, %v11302_v26  ;;  %v9507_v26 = vld [vmem:[#allocation16 + $0x6ec] sm:$0xf0] }
 0x978   : > { %v4057_v35 = vpop.f32.mrf.mxu1  ;;  %v4310_v31 = vpop.f32.mrf.mxu2  ;;  %5386 = vmatpush.bf16.msra.mxu1 %v8550_v8  ;;  %5399 = vmatpush.bf16.msra.mxu3 %v8554_v34  ;;  %v8585_v8 = vld [vmem:[#allocation16 + $0x608] sm:$0xf]  ;;  %v9480_v34 = vld [vmem:[#allocation16 + $0x614] sm:$0xf0] }
 0x979   : > { %v8586_v35 = vor.u32 %v9480_v34, %v8585_v8  ;;  %v8590_v31 = vor.u32 %v9478_v20, %v8587_v2  ;;  %v8639_v8 = vld [vmem:[#allocation16 + $0x678] sm:$0xf0]  ;;  %v8817_v20 = vld [vmem:[#allocation16 + $0x7c0] sm:$0xf] }
 0x97a   : > { %v4427_v27 = vpop.f32.mrf.mxu0 }
 0x97b   : > { %v11331_v28 = vadd.f32 %v4427_v27, %v11308_v21  ;;  %v8698_v21 = vor.u32 %v9507_v26, %v8697_v15  ;;  %v8766_v27 = vor.u32 %v9523_v53, %v8765_v3  ;;  %v9517_v26 = vld [vmem:[#allocation16 + $0x744] sm:$0xf]  ;;  %v8819_v53 = vld [vmem:[#allocation16 + $0x7d0] sm:$0xf0] }
 0x97c   : > { %5387 = vmatpush.bf16.msra.mxu1 %v8534_v58  ;;  %5400 = vmatpush.bf16.msra.mxu3 %v8538_v16  ;;  %v11354_v16 = vshrl.u32 %v11348_v9, 16  ;;  %v9533_v3 = vld [vmem:[#allocation16 + $0x7c4] sm:$0xf] }
 0x97d   : > { %8623 = vmatmul.msk.bf16.vlgmr.msrb.gmra.mxu0 %vm3373_vm8, %v11328_v37  ;;  %8624 = vmatmul.msk.bf16.vlgmr.msrb.gmra.mxu2 %vm3373_vm8, %v11328_v37 }
 0x97e   : > { %v4070_v47 = vpop.f32.mrf.mxu3  ;;  %5762 = vmatpush.bf16.msrb.mxu0 %v8714_v38  ;;  %5775 = vmatpush.bf16.msrb.mxu2 %v8718_v11  ;;  %v8749_v11 = vld [vmem:[#allocation16 + $0x740] sm:$0xf] }
 0x97f   : > { %v8754_v47 = vor.u32 %v9517_v26, %v8751_v0  ;;  %v8721_v26 = vld [vmem:[#allocation16 + $0x708] sm:$0xf]  ;;  %v9512_v0 = vld [vmem:[#allocation16 + $0x714] sm:$0xf0] }
 0x980   : > { %v4188_v18 = vpop.f32.mrf.mxu1  ;;  %v4440_v45 = vpop.f32.mrf.mxu2 }
 0x981   : > { %v11338_v12 = vadd.f32 %v4188_v18, %v11315_v44  ;;  %v11341_v55 = vadd.f32 %v4440_v45, %v11318_v36  ;;  %v8602_v44 = vor.u32 %v9484_v54, %v8601_v10  ;;  %v8606_v36 = vor.u32 %v9482_v14, %v8603_v59  ;;  %v9496_v54 = vld [vmem:[#allocation16 + $0x694] sm:$0xf0]  ;;  %v9494_v14 = vld [vmem:[#allocation16 + $0x68c] sm:$0xf]  ;;  %v8655_v59 = vld [vmem:[#allocation16 + $0x698] sm:$0xf0] }
 0x982   : > { %v4429_v46 = vpop.f32.mrf.mxu0  ;;  %5763 = vmatpush.bf16.msrb.mxu0 %v8698_v21  ;;  %5776 = vmatpush.bf16.msrb.mxu2 %v8702_v5  ;;  %v8733_v21 = vld [vmem:[#allocation16 + $0x720] sm:$0xf]  ;;  %v9515_v5 = vld [vmem:[#allocation16 + $0x72c] sm:$0xf0]  ;;  %v8670_v18 = vor.u32 %v9500_v50, %v8669_v51  ;;  %v8674_v45 = vor.u32 %v9498_v56, %v8671_v6  ;;  %v9510_v51 = vld [vmem:[#allocation16 + $0x70c] sm:$0xf] }
 0x983   : > { %8521 = vmatmul.msk.bf16.vlgmr.msrb.gmra.mxu1 %vm3373_vm8, %v11282_v33  ;;  %8522 = vmatmul.msk.bf16.vlgmr.msrb.gmra.mxu3 %vm3373_vm8, %v11282_v33  ;;  %v8767_v33 = vld [vmem:[#allocation16 + $0x770] sm:$0xf0]  ;;  %v8734_v46 = vor.u32 %v9515_v5, %v8733_v21  ;;  %v8723_v50 = vld [vmem:[#allocation16 + $0x718] sm:$0xf0] }
 0x984   : > { %5517 = vmatpush.bf16.msrb.mxu1 %v8618_v42  ;;  %5530 = vmatpush.bf16.msrb.mxu3 %v8622_v4  ;;  %v8770_v38 = vor.u32 %v9521_v63, %v8767_v33  ;;  %v8653_v42 = vld [vmem:[#allocation16 + $0x688] sm:$0xf]  ;;  %v8787_v21 = vld [vmem:[#allocation16 + $0x790] sm:$0xf0] }
 0x986   : > { %v4201_v41 = vpop.f32.mrf.mxu3  ;;  %5764 = vmatpush.bf16.msrb.mxu0 %v8682_v22  ;;  %5777 = vmatpush.bf16.msrb.mxu2 %v8686_v57  ;;  %v8738_v22 = vor.u32 %v9513_v49, %v8735_v40  ;;  %v8658_v57 = vor.u32 %v9494_v14, %v8655_v59  ;;  %v8722_v40 = vor.u32 %v9512_v0, %v8721_v26  ;;  %v8707_v14 = vld [vmem:[#allocation16 + $0x6f8] sm:$0xf0]  ;;  %v9522_v26 = vld [vmem:[#allocation16 + $0x76c] sm:$0xf] }
 0x987   : > { %v11351_v62 = vadd.f32 %v4201_v41, %v11326_v32  ;;  %v9519_v32 = vld [vmem:[#allocation16 + $0x74c] sm:$0xf0]  ;;  %v8775_v0 = vld [vmem:[#allocation16 + $0x778] sm:$0xf0] }
 0x988   : > { %v4190_v24 = vpop.f32.mrf.mxu1  ;;  %v4442_v39 = vpop.f32.mrf.mxu2  ;;  %5518 = vmatpush.bf16.msrb.mxu1 %v8602_v44  ;;  %5531 = vmatpush.bf16.msrb.mxu3 %v8606_v36  ;;  %v9492_v44 = vld [vmem:[#allocation16 + $0x674] sm:$0xf0]  ;;  %v9490_v36 = vld [vmem:[#allocation16 + $0x66c] sm:$0xf]  ;;  %v9535_v41 = vld [vmem:[#allocation16 + $0x7cc] sm:$0xf0] }
 0x989   : > { %v8642_v24 = vor.u32 %v9490_v36, %v8639_v8  ;;  %v8869_v36 = vld [vmem:[#allocation16 + $0x820] sm:$0xf] }
 0x98a   : > { %v4565_v58 = vpop.f32.mrf.mxu0 }
 0x98b   : > { %v11357_v15 = vadd.f32 %v4565_v58, %v11331_v28  ;;  %v8750_v28 = vor.u32 %v9519_v32, %v8749_v11  ;;  %v8822_v58 = vor.u32 %v9533_v3, %v8819_v53  ;;  %v9529_v11 = vld [vmem:[#allocation16 + $0x7a4] sm:$0xf]  ;;  %v8803_v32 = vld [vmem:[#allocation16 + $0x7b0] sm:$0xf0] }
 0x98c   : > { %5519 = vmatpush.bf16.msrb.mxu1 %v8586_v35  ;;  %5532 = vmatpush.bf16.msrb.mxu3 %v8590_v31  ;;  %v11377_v35 = vrot.slane %v11348_v9, 1  ;;  %v8818_v31 = vor.u32 %v9535_v41, %v8817_v20  ;;  %v8806_v6 = vor.u32 %v9529_v11, %v8803_v32  ;;  %v9545_v20 = vld [vmem:[#allocation16 + $0x824] sm:$0xf]  ;;  %v8871_v41 = vld [vmem:[#allocation16 + $0x830] sm:$0xf0] }
 0x98d   : > { %8675 = vmatmul.msk.bf16.vlgmr.msra.gmra.mxu0 %vm3373_vm8, %v11354_v16  ;;  %8676 = vmatmul.msk.bf16.vlgmr.msra.gmra.mxu2 %vm3373_vm8, %v11354_v16  ;;  %v8773_v11 = vld [vmem:[#allocation16 + $0x768] sm:$0xf]  ;;  %v9524_v32 = vld [vmem:[#allocation16 + $0x774] sm:$0xf0] }
 0x98e   : > { %v4203_v60 = vpop.f32.mrf.mxu3  ;;  %5895 = vmatpush.bf16.msra.mxu0 %v8766_v27  ;;  %5908 = vmatpush.bf16.msra.mxu2 %v8770_v38  ;;  %v8801_v27 = vld [vmem:[#allocation16 + $0x7a0] sm:$0xf] }
 0x98f   : > { %v8785_v60 = vld [vmem:[#allocation16 + $0x780] sm:$0xf] }
 0x990   : > { %v4321_v7 = vpop.f32.mrf.mxu1  ;;  %v4578_v23 = vpop.f32.mrf.mxu2 }
 0x991   : > { %v11364_v4 = vadd.f32 %v4321_v7, %v11338_v12  ;;  %v11367_v10 = vadd.f32 %v4578_v23, %v11341_v55  ;;  %v8654_v12 = vor.u32 %v9496_v54, %v8653_v42  ;;  %v8637_v55 = vld [vmem:[#allocation16 + $0x668] sm:$0xf]  ;;  %v8726_v7 = vor.u32 %v9510_v51, %v8723_v50  ;;  %v9508_v42 = vld [vmem:[#allocation16 + $0x6f4] sm:$0xf0]  ;;  %v9506_v54 = vld [vmem:[#allocation16 + $0x6ec] sm:$0xf] }
 0x992   : > { %v4567_v48 = vpop.f32.mrf.mxu0  ;;  %5896 = vmatpush.bf16.msra.mxu0 %v8750_v28  ;;  %5909 = vmatpush.bf16.msra.mxu2 %v8754_v47  ;;  %v8638_v33 = vor.u32 %v9492_v44, %v8637_v55  ;;  %v9527_v28 = vld [vmem:[#allocation16 + $0x78c] sm:$0xf0]  ;;  %v9525_v47 = vld [vmem:[#allocation16 + $0x784] sm:$0xf]  ;;  %v8705_v23 = vld [vmem:[#allocation16 + $0x6e8] sm:$0xf] }
 0x993   : > { %8573 = vmatmul.msk.bf16.vlgmr.msra.gmra.mxu1 %vm3373_vm8, %v11305_v25  ;;  %8574 = vmatmul.msk.bf16.vlgmr.msra.gmra.mxu3 %vm3373_vm8, %v11305_v25  ;;  %v8786_v48 = vor.u32 %v9527_v28, %v8785_v60  ;;  %v8691_v55 = vld [vmem:[#allocation16 + $0x6d8] sm:$0xf0]  ;;  %v8839_v60 = vld [vmem:[#allocation16 + $0x7f0] sm:$0xf0] }
 0x994   : > { %5655 = vmatpush.bf16.msra.mxu1 %v8670_v18  ;;  %5668 = vmatpush.bf16.msra.mxu3 %v8674_v45 }
 0x996   : > { %v4334_v34 = vpop.f32.mrf.mxu3  ;;  %5897 = vmatpush.bf16.msra.mxu0 %v8734_v46  ;;  %5910 = vmatpush.bf16.msra.mxu2 %v8738_v22  ;;  %v8790_v46 = vor.u32 %v9525_v47, %v8787_v21  ;;  %v8710_v22 = vor.u32 %v9506_v54, %v8707_v14  ;;  %v8774_v21 = vor.u32 %v9524_v32, %v8773_v11  ;;  %v8759_v54 = vld [vmem:[#allocation16 + $0x758] sm:$0xf0]  ;;  %v9536_v11 = vld [vmem:[#allocation16 + $0x7d4] sm:$0xf0]  ;;  %v9534_v32 = vld [vmem:[#allocation16 + $0x7cc] sm:$0xf] }
 0x997   : > { %v11374_v2 = vadd.f32 %v4334_v34, %v11351_v62  ;;  %v9531_v62 = vld [vmem:[#allocation16 + $0x7ac] sm:$0xf0] }
 0x998   : > { %v4323_v63 = vpop.f32.mrf.mxu1  ;;  %v4580_v25 = vpop.f32.mrf.mxu2  ;;  %5656 = vmatpush.bf16.msra.mxu1 %v8654_v12  ;;  %5669 = vmatpush.bf16.msra.mxu3 %v8658_v57  ;;  %v9504_v12 = vld [vmem:[#allocation16 + $0x6d4] sm:$0xf0]  ;;  %v9502_v57 = vld [vmem:[#allocation16 + $0x6cc] sm:$0xf]  ;;  %v9547_v34 = vld [vmem:[#allocation16 + $0x82c] sm:$0xf0] }
 0x999   : > { %v8694_v63 = vor.u32 %v9502_v57, %v8691_v55  ;;  %v8921_v57 = vld [vmem:[#allocation16 + $0x880] sm:$0xf] }
 0x99a   : > { %v4698_v39 = vpop.f32.mrf.mxu0 }
 0x99b   : > { %v11380_v38 = vadd.f32 %v4698_v39, %v11357_v15  ;;  %v8802_v15 = vor.u32 %v9531_v62, %v8801_v27  ;;  %v8874_v39 = vor.u32 %v9545_v20, %v8871_v41  ;;  %v9541_v27 = vld [vmem:[#allocation16 + $0x804] sm:$0xf]  ;;  %v8855_v62 = vld [vmem:[#allocation16 + $0x810] sm:$0xf0] }
 0x99c   : > { %5657 = vmatpush.bf16.msra.mxu1 %v8638_v33  ;;  %5670 = vmatpush.bf16.msra.mxu3 %v8642_v24  ;;  %v11400_v33 = vrot.slane %v11354_v16, 1  ;;  %v8870_v24 = vor.u32 %v9547_v34, %v8869_v36  ;;  %v8858_v50 = vor.u32 %v9541_v27, %v8855_v62  ;;  %v9557_v36 = vld [vmem:[#allocation16 + $0x884] sm:$0xf]  ;;  %v8923_v34 = vld [vmem:[#allocation16 + $0x890] sm:$0xf0] }
 0x99d   : > { %8727 = vmatmul.msk.bf16.vlgmr.msrb.gmra.mxu0 %vm3373_vm8, %v11377_v35  ;;  %8728 = vmatmul.msk.bf16.vlgmr.msrb.gmra.mxu2 %vm3373_vm8, %v11377_v35  ;;  %v8907_v27 = vld [vmem:[#allocation16 + $0x870] sm:$0xf0]  ;;  %v8825_v62 = vld [vmem:[#allocation16 + $0x7c8] sm:$0xf] }
 0x99e   : > { %v4336_v56 = vpop.f32.mrf.mxu3  ;;  %6028 = vmatpush.bf16.msrb.mxu0 %v8818_v31  ;;  %6041 = vmatpush.bf16.msrb.mxu2 %v8822_v58  ;;  %v8853_v31 = vld [vmem:[#allocation16 + $0x800] sm:$0xf] }
 0x99f   : > { %v8837_v56 = vld [vmem:[#allocation16 + $0x7e0] sm:$0xf] }
 0x9a0   : > { %v4453_v5 = vpop.f32.mrf.mxu1  ;;  %v4711_v49 = vpop.f32.mrf.mxu2 }
 0x9a1   : > { %v11387_v18 = vadd.f32 %v4453_v5, %v11364_v4  ;;  %v11390_v45 = vadd.f32 %v4711_v49, %v11367_v10  ;;  %v8706_v4 = vor.u32 %v9508_v42, %v8705_v23  ;;  %v8689_v10 = vld [vmem:[#allocation16 + $0x6c8] sm:$0xf]  ;;  %v8778_v5 = vor.u32 %v9522_v26, %v8775_v0  ;;  %v9520_v23 = vld [vmem:[#allocation16 + $0x754] sm:$0xf0]  ;;  %v9518_v42 = vld [vmem:[#allocation16 + $0x74c] sm:$0xf] }
 0x9a2   : > { %v4700_v59 = vpop.f32.mrf.mxu0  ;;  %6029 = vmatpush.bf16.msrb.mxu0 %v8802_v15  ;;  %6042 = vmatpush.bf16.msrb.mxu2 %v8806_v6  ;;  %v8690_v53 = vor.u32 %v9504_v12, %v8689_v10  ;;  %v9539_v15 = vld [vmem:[#allocation16 + $0x7ec] sm:$0xf0]  ;;  %v9537_v6 = vld [vmem:[#allocation16 + $0x7e4] sm:$0xf]  ;;  %v8757_v49 = vld [vmem:[#allocation16 + $0x748] sm:$0xf] }
 0x9a3   : > { %8625 = vmatmul.msk.bf16.vlgmr.msrb.gmra.mxu1 %vm3373_vm8, %v11328_v37  ;;  %8626 = vmatmul.msk.bf16.vlgmr.msrb.gmra.mxu3 %vm3373_vm8, %v11328_v37  ;;  %v8838_v59 = vor.u32 %v9539_v15, %v8837_v56  ;;  %v8743_v10 = vld [vmem:[#allocation16 + $0x738] sm:$0xf0]  ;;  %v9549_v56 = vld [vmem:[#allocation16 + $0x844] sm:$0xf]  ;;  %v8891_v15 = vld [vmem:[#allocation16 + $0x850] sm:$0xf0] }
 0x9a4   : > { %5788 = vmatpush.bf16.msrb.mxu1 %v8722_v40  ;;  %5801 = vmatpush.bf16.msrb.mxu3 %v8726_v7  ;;  %v8827_v26 = vld [vmem:[#allocation16 + $0x7d8] sm:$0xf0] }
 0x9a6   : > { %v4466_v44 = vpop.f32.mrf.mxu3  ;;  %6030 = vmatpush.bf16.msrb.mxu0 %v8786_v48  ;;  %6043 = vmatpush.bf16.msrb.mxu2 %v8790_v46  ;;  %v8842_v48 = vor.u32 %v9537_v6, %v8839_v60  ;;  %v8762_v46 = vor.u32 %v9518_v42, %v8759_v54  ;;  %v9530_v42 = vld [vmem:[#allocation16 + $0x7ac] sm:$0xf]  ;;  %v8811_v54 = vld [vmem:[#allocation16 + $0x7b8] sm:$0xf0] }
 0x9a7   : > { %v11397_v8 = vadd.f32 %v4466_v44, %v11374_v2  ;;  %v9543_v2 = vld [vmem:[#allocation16 + $0x80c] sm:$0xf0] }
 0x9a8   : > { %v4455_v3 = vpop.f32.mrf.mxu1  ;;  %v4713_v37 = vpop.f32.mrf.mxu2  ;;  %5789 = vmatpush.bf16.msrb.mxu1 %v8706_v4  ;;  %5802 = vmatpush.bf16.msrb.mxu3 %v8710_v22  ;;  %v9516_v4 = vld [vmem:[#allocation16 + $0x734] sm:$0xf0]  ;;  %v9514_v22 = vld [vmem:[#allocation16 + $0x72c] sm:$0xf]  ;;  %v9559_v44 = vld [vmem:[#allocation16 + $0x88c] sm:$0xf0] }
 0x9a9   : > { %v8746_v37 = vor.u32 %v9514_v22, %v8743_v10  ;;  %v8973_v10 = vld [vmem:[#allocation16 + $0x8e0] sm:$0xf] }
 0x9aa   : > { %v4831_v25 = vpop.f32.mrf.mxu0 }
 0x9ab   : > { %v11403_v58 = vadd.f32 %v4831_v25, %v11380_v38  ;;  %v8854_v38 = vor.u32 %v9543_v2, %v8853_v31  ;;  %v8922_v25 = vor.u32 %v9559_v44, %v8921_v57  ;;  %v9553_v2 = vld [vmem:[#allocation16 + $0x864] sm:$0xf]  ;;  %v9571_v57 = vld [vmem:[#allocation16 + $0x8ec] sm:$0xf0] }
 0x9ac   : > { %5790 = vmatpush.bf16.msrb.mxu1 %v8690_v53  ;;  %5803 = vmatpush.bf16.msrb.mxu3 %v8694_v63  ;;  %v11423_v63 = vrot.slane %v11348_v9, 2  ;;  %v9569_v44 = vld [vmem:[#allocation16 + $0x8e4] sm:$0xf] }
 0x9ad   : > { %8779 = vmatmul.msk.bf16.vlgmr.msra.gmra.mxu0 %vm3373_vm8, %v11400_v33  ;;  %8780 = vmatmul.msk.bf16.vlgmr.msra.gmra.mxu2 %vm3373_vm8, %v11400_v33 }
 0x9ae   : > { %v4468_v51 = vpop.f32.mrf.mxu3  ;;  %6161 = vmatpush.bf16.msra.mxu0 %v8870_v24  ;;  %6174 = vmatpush.bf16.msra.mxu2 %v8874_v39  ;;  %v8926_v24 = vor.u32 %v9557_v36, %v8923_v34  ;;  %v8905_v39 = vld [vmem:[#allocation16 + $0x860] sm:$0xf]  ;;  %v8975_v36 = vld [vmem:[#allocation16 + $0x8f0] sm:$0xf0] }
 0x9af   : > { %v8910_v51 = vor.u32 %v9553_v2, %v8907_v27  ;;  %v8959_v2 = vld [vmem:[#allocation16 + $0x8d0] sm:$0xf0]  ;;  %v8877_v27 = vld [vmem:[#allocation16 + $0x828] sm:$0xf] }
 0x9b0   : > { %v4591_v28 = vpop.f32.mrf.mxu1  ;;  %v4844_v47 = vpop.f32.mrf.mxu2 }
 0x9b1   : > { %v11410_v40 = vadd.f32 %v4591_v28, %v11387_v18  ;;  %v11413_v7 = vadd.f32 %v4844_v47, %v11390_v45  ;;  %v8758_v18 = vor.u32 %v9520_v23, %v8757_v49  ;;  %v8741_v45 = vld [vmem:[#allocation16 + $0x728] sm:$0xf]  ;;  %v8826_v28 = vor.u32 %v9536_v11, %v8825_v62  ;;  %v9532_v23 = vld [vmem:[#allocation16 + $0x7b4] sm:$0xf0]  ;;  %v9546_v11 = vld [vmem:[#allocation16 + $0x82c] sm:$0xf] }
 0x9b2   : > { %v4833_v14 = vpop.f32.mrf.mxu0  ;;  %6162 = vmatpush.bf16.msra.mxu0 %v8854_v38  ;;  %6175 = vmatpush.bf16.msra.mxu2 %v8858_v50  ;;  %v8742_v3 = vor.u32 %v9516_v4, %v8741_v45  ;;  %v8889_v38 = vld [vmem:[#allocation16 + $0x840] sm:$0xf]  ;;  %v9551_v50 = vld [vmem:[#allocation16 + $0x84c] sm:$0xf0]  ;;  %v8830_v47 = vor.u32 %v9534_v32, %v8827_v26  ;;  %v9526_v45 = vld [vmem:[#allocation16 + $0x78c] sm:$0xf] }
 0x9b3   : > { %8677 = vmatmul.msk.bf16.vlgmr.msra.gmra.mxu1 %vm3373_vm8, %v11354_v16  ;;  %8678 = vmatmul.msk.bf16.vlgmr.msra.gmra.mxu3 %vm3373_vm8, %v11354_v16  ;;  %v8795_v4 = vld [vmem:[#allocation16 + $0x798] sm:$0xf0]  ;;  %v9548_v62 = vld [vmem:[#allocation16 + $0x834] sm:$0xf0] }
 0x9b4   : > { %5921 = vmatpush.bf16.msra.mxu1 %v8774_v21  ;;  %5934 = vmatpush.bf16.msra.mxu3 %v8778_v5  ;;  %v8809_v21 = vld [vmem:[#allocation16 + $0x7a8] sm:$0xf]  ;;  %v8879_v32 = vld [vmem:[#allocation16 + $0x838] sm:$0xf0] }
 0x9b6   : > { %v4604_v12 = vpop.f32.mrf.mxu3  ;;  %6163 = vmatpush.bf16.msra.mxu0 %v8838_v59  ;;  %6176 = vmatpush.bf16.msra.mxu2 %v8842_v48  ;;  %v8890_v59 = vor.u32 %v9551_v50, %v8889_v38  ;;  %v8894_v48 = vor.u32 %v9549_v56, %v8891_v15  ;;  %v9561_v38 = vld [vmem:[#allocation16 + $0x8a4] sm:$0xf]  ;;  %v8943_v50 = vld [vmem:[#allocation16 + $0x8b0] sm:$0xf0] }
 0x9b7   : > { %v11420_v55 = vadd.f32 %v4604_v12, %v11397_v8  ;;  %v9555_v8 = vld [vmem:[#allocation16 + $0x86c] sm:$0xf0] }
 0x9b8   : > { %v4593_v20 = vpop.f32.mrf.mxu1  ;;  %v4846_v41 = vpop.f32.mrf.mxu2  ;;  %5922 = vmatpush.bf16.msra.mxu1 %v8758_v18  ;;  %5935 = vmatpush.bf16.msra.mxu3 %v8762_v46  ;;  %v8814_v18 = vor.u32 %v9530_v42, %v8811_v54  ;;  %v9528_v46 = vld [vmem:[#allocation16 + $0x794] sm:$0xf0]  ;;  %v9542_v42 = vld [vmem:[#allocation16 + $0x80c] sm:$0xf]  ;;  %v8863_v54 = vld [vmem:[#allocation16 + $0x818] sm:$0xf0] }
 0x9b9   : > { %v8798_v41 = vor.u32 %v9526_v45, %v8795_v4  ;;  %v9025_v4 = vld [vmem:[#allocation16 + $0x940] sm:$0xf] }
 0x9ba   : > { %v4964_v53 = vpop.f32.mrf.mxu0 }
 0x9bb   : > { %v11426_v31 = vadd.f32 %v4964_v53, %v11403_v58  ;;  %v8906_v58 = vor.u32 %v9555_v8, %v8905_v39  ;;  %v8974_v53 = vor.u32 %v9571_v57, %v8973_v10  ;;  %v9565_v8 = vld [vmem:[#allocation16 + $0x8c4] sm:$0xf]  ;;  %v9583_v10 = vld [vmem:[#allocation16 + $0x94c] sm:$0xf0] }
 0x9bc   : > { %5923 = vmatpush.bf16.msra.mxu1 %v8742_v3  ;;  %5936 = vmatpush.bf16.msra.mxu3 %v8746_v37  ;;  %v11446_v37 = vrot.slane %v11354_v16, 2  ;;  %v9581_v57 = vld [vmem:[#allocation16 + $0x944] sm:$0xf] }
 0x9bd   : > { %8831 = vmatmul.msk.bf16.vlgmr.msrb.gmra.mxu0 %vm3373_vm8, %v11423_v63  ;;  %8832 = vmatmul.msk.bf16.vlgmr.msrb.gmra.mxu2 %vm3373_vm8, %v11423_v63 }
 0x9be   : > { %v4606_v0 = vpop.f32.mrf.mxu3  ;;  %6294 = vmatpush.bf16.msrb.mxu0 %v8922_v25  ;;  %6307 = vmatpush.bf16.msrb.mxu2 %v8926_v24  ;;  %v8978_v25 = vor.u32 %v9569_v44, %v8975_v36  ;;  %v8957_v24 = vld [vmem:[#allocation16 + $0x8c0] sm:$0xf]  ;;  %v9027_v44 = vld [vmem:[#allocation16 + $0x950] sm:$0xf0] }
 0x9bf   : > { %v8962_v0 = vor.u32 %v9565_v8, %v8959_v2  ;;  %v9577_v8 = vld [vmem:[#allocation16 + $0x924] sm:$0xf]  ;;  %v9011_v2 = vld [vmem:[#allocation16 + $0x930] sm:$0xf0] }
 0x9c0   : > { %v4724_v6 = vpop.f32.mrf.mxu1  ;;  %v4977_v60 = vpop.f32.mrf.mxu2 }
 0x9c1   : > { %v11433_v5 = vadd.f32 %v4724_v6, %v11410_v40  ;;  %v11436_v49 = vadd.f32 %v4977_v60, %v11413_v7  ;;  %v8810_v40 = vor.u32 %v9532_v23, %v8809_v21  ;;  %v8793_v7 = vld [vmem:[#allocation16 + $0x788] sm:$0xf]  ;;  %v8878_v6 = vor.u32 %v9548_v62, %v8877_v27  ;;  %v9544_v23 = vld [vmem:[#allocation16 + $0x814] sm:$0xf0] }
 0x9c2   : > { %v4966_v14 = vpop.f32.mrf.mxu0  ;;  %6295 = vmatpush.bf16.msrb.mxu0 %v8906_v58  ;;  %6308 = vmatpush.bf16.msrb.mxu2 %v8910_v51  ;;  %v8794_v20 = vor.u32 %v9528_v46, %v8793_v7  ;;  %v8941_v58 = vld [vmem:[#allocation16 + $0x8a0] sm:$0xf]  ;;  %v9563_v51 = vld [vmem:[#allocation16 + $0x8ac] sm:$0xf0]  ;;  %v8882_v60 = vor.u32 %v9546_v11, %v8879_v32  ;;  %v9538_v7 = vld [vmem:[#allocation16 + $0x7ec] sm:$0xf]  ;;  %v9014_v32 = vor.u32 %v9577_v8, %v9011_v2 }
 0x9c3   : > { %8729 = vmatmul.msk.bf16.vlgmr.msrb.gmra.mxu1 %vm3373_vm8, %v11377_v35  ;;  %8730 = vmatmul.msk.bf16.vlgmr.msrb.gmra.mxu3 %vm3373_vm8, %v11377_v35  ;;  %v8847_v46 = vld [vmem:[#allocation16 + $0x7f8] sm:$0xf0]  ;;  %v8929_v27 = vld [vmem:[#allocation16 + $0x888] sm:$0xf]  ;;  %v9566_v8 = vld [vmem:[#allocation16 + $0x8cc] sm:$0xf] }
 0x9c4   : > { %6054 = vmatpush.bf16.msrb.mxu1 %v8826_v28  ;;  %6067 = vmatpush.bf16.msrb.mxu3 %v8830_v47  ;;  %v8861_v28 = vld [vmem:[#allocation16 + $0x808] sm:$0xf]  ;;  %v8967_v2 = vld [vmem:[#allocation16 + $0x8d8] sm:$0xf0] }
 0x9c6   : > { %v4737_v22 = vpop.f32.mrf.mxu3  ;;  %6296 = vmatpush.bf16.msrb.mxu0 %v8890_v59  ;;  %6309 = vmatpush.bf16.msrb.mxu2 %v8894_v48  ;;  %v8942_v59 = vor.u32 %v9563_v51, %v8941_v58  ;;  %v8946_v48 = vor.u32 %v9561_v38, %v8943_v50  ;;  %v9573_v58 = vld [vmem:[#allocation16 + $0x904] sm:$0xf] }
 0x9c7   : > { %v11443_v12 = vadd.f32 %v4737_v22, %v11420_v55  ;;  %v9567_v55 = vld [vmem:[#allocation16 + $0x8cc] sm:$0xf0] }
 0x9c8   : > { %v4726_v34 = vpop.f32.mrf.mxu1  ;;  %v4979_v35 = vpop.f32.mrf.mxu2  ;;  %6055 = vmatpush.bf16.msrb.mxu1 %v8810_v40  ;;  %6068 = vmatpush.bf16.msrb.mxu3 %v8814_v18  ;;  %v8866_v40 = vor.u32 %v9542_v42, %v8863_v54  ;;  %v9540_v18 = vld [vmem:[#allocation16 + $0x7f4] sm:$0xf0]  ;;  %v8915_v42 = vld [vmem:[#allocation16 + $0x878] sm:$0xf0] }
 0x9c9   : > { %v8850_v35 = vor.u32 %v9538_v7, %v8847_v46 }
 0x9ca   : > { %v5097_v3 = vpop.f32.mrf.mxu0 }
 0x9cb   : > { %v11449_v39 = vadd.f32 %v5097_v3, %v11426_v31  ;;  %v8958_v31 = vor.u32 %v9567_v55, %v8957_v24  ;;  %v11471_v3 = vrot.slane %v11348_v9, 3  ;;  %v9579_v55 = vld [vmem:[#allocation16 + $0x92c] sm:$0xf0]  ;;  %v8931_v9 = vld [vmem:[#allocation16 + $0x898] sm:$0xf0] }
 0x9cc   : > { %6056 = vmatpush.bf16.msrb.mxu1 %v8794_v20  ;;  %6069 = vmatpush.bf16.msrb.mxu3 %v8798_v41  ;;  %v2648_v20 = vadd.f32 %v11030_v30, %v11014_v29  ;;  %v9560_v29 = vld [vmem:[#allocation16 + $0x894] sm:$0xf0]  ;;  %v9558_v30 = vld [vmem:[#allocation16 + $0x88c] sm:$0xf] }
 0x9cd   : > { %8883 = vmatmul.msk.bf16.vlgmr.msra.gmra.mxu0 %vm3373_vm8, %v11446_v37  ;;  %8884 = vmatmul.msk.bf16.vlgmr.msra.gmra.mxu2 %vm3373_vm8, %v11446_v37  ;;  %v8930_v50 = vor.u32 %v9560_v29, %v8929_v27 }
 0x9ce   : > { %v4739_v26 = vpop.f32.mrf.mxu3  ;;  %6427 = vmatpush.bf16.msra.mxu0 %v8974_v53  ;;  %6440 = vmatpush.bf16.msra.mxu2 %v8978_v25  ;;  %v9026_v53 = vor.u32 %v9583_v10, %v9025_v4  ;;  %v9030_v25 = vor.u32 %v9581_v57, %v9027_v44  ;;  %v2737_v62 = vadd.f32 %v11026_v1, %v2648_v20  ;;  %v8995_v1 = vld [vmem:[#allocation16 + $0x910] sm:$0xf0] }
 0x9cf   : > { %v8993_v26 = vld [vmem:[#allocation16 + $0x900] sm:$0xf] }
 0x9d0   : > { %v4857_v56 = vpop.f32.mrf.mxu1  ;;  %v5110_v15 = vpop.f32.mrf.mxu2 }
 0x9d1   : > { %v11456_v47 = vadd.f32 %v4857_v56, %v11433_v5  ;;  %v11459_v21 = vadd.f32 %v5110_v15, %v11436_v49  ;;  %v8862_v5 = vor.u32 %v9544_v23, %v8861_v28  ;;  %v8845_v49 = vld [vmem:[#allocation16 + $0x7e8] sm:$0xf]  ;;  %v8934_v56 = vor.u32 %v9558_v30, %v8931_v9  ;;  %v9556_v28 = vld [vmem:[#allocation16 + $0x874] sm:$0xf0]  ;;  %v9554_v23 = vld [vmem:[#allocation16 + $0x86c] sm:$0xf] }
 0x9d2   : > { %v5099_v14 = vpop.f32.mrf.mxu0  ;;  %6428 = vmatpush.bf16.msra.mxu0 %v8958_v31  ;;  %6441 = vmatpush.bf16.msra.mxu2 %v8962_v0  ;;  %v8846_v34 = vor.u32 %v9540_v18, %v8845_v49  ;;  %v2825_v31 = vadd.f32 %v11043_v19, %v2737_v62  ;;  %v9575_v0 = vld [vmem:[#allocation16 + $0x90c] sm:$0xf0]  ;;  %v8913_v15 = vld [vmem:[#allocation16 + $0x868] sm:$0xf]  ;;  %v8998_v19 = vor.u32 %v9573_v58, %v8995_v1  ;;  %v9550_v49 = vld [vmem:[#allocation16 + $0x84c] sm:$0xf] }
 0x9d3   : > { %8781 = vmatmul.msk.bf16.vlgmr.msra.gmra.mxu1 %vm3373_vm8, %v11400_v33  ;;  %8782 = vmatmul.msk.bf16.vlgmr.msra.gmra.mxu3 %vm3373_vm8, %v11400_v33  ;;  %v8994_v14 = vor.u32 %v9575_v0, %v8993_v26  ;;  %v8899_v18 = vld [vmem:[#allocation16 + $0x858] sm:$0xf0]  ;;  %v8970_v30 = vor.u32 %v9566_v8, %v8967_v2  ;;  %v8949_v9 = vld [vmem:[#allocation16 + $0x8a8] sm:$0xf] }
 0x9d4   : > { %6187 = vmatpush.bf16.msra.mxu1 %v8878_v6  ;;  %6200 = vmatpush.bf16.msra.mxu3 %v8882_v60  ;;  %v8902_v4 = vor.u32 %v9550_v49, %v8899_v18  ;;  %v9792_v62 = vld [vmem:[#allocation14] ss:$0 sm:$0xff] }
 0x9d6   : > { %v4870_v45 = vpop.f32.mrf.mxu3  ;;  %6429 = vmatpush.bf16.msra.mxu0 %v8942_v59  ;;  %6442 = vmatpush.bf16.msra.mxu2 %v8946_v48  ;;  %v2913_v59 = vadd.f32 %v11038_v52, %v2825_v31  ;;  %v8897_v48 = vld [vmem:[#allocation16 + $0x848] sm:$0xf] }
 0x9d7   : > { %v11466_v22 = vadd.f32 %v4870_v45, %v11443_v12  ;;  %v9009_v12 = vld [vmem:[#allocation16 + $0x920] sm:$0xf] }
 0x9d8   : > { %v4859_v36 = vpop.f32.mrf.mxu1  ;;  %v5112_v33 = vpop.f32.mrf.mxu2  ;;  %6188 = vmatpush.bf16.msra.mxu1 %v8862_v5  ;;  %6201 = vmatpush.bf16.msra.mxu3 %v8866_v40  ;;  %v3001_v5 = vadd.f32 %v11057_v13, %v2913_v59  ;;  %v9552_v40 = vld [vmem:[#allocation16 + $0x854] sm:$0xf0]  ;;  %v9017_v59 = vld [vmem:[#allocation16 + $0x928] sm:$0xf] }
 0x9d9   : > { %v11495_v36 = vrot.slane %v11354_v16, 3  ;;  %v8981_v33 = vld [vmem:[#allocation16 + $0x8e8] sm:$0xf] }
 0x9da   : > { %v5230_v41 = vpop.f32.mrf.mxu0  ;;  %v3089_v10 = vadd.f32 %v11053_v17, %v3001_v5  ;;  %v8983_v17 = vld [vmem:[#allocation16 + $0x8f8] sm:$0xf0]  ;;  %v9578_v5 = vld [vmem:[#allocation16 + $0x92c] sm:$0xf] }
 0x9db   : > { %v11474_v24 = vadd.f32 %v5230_v41, %v11449_v39  ;;  %v9010_v39 = vor.u32 %v9579_v55, %v9009_v12  ;;  %v9568_v55 = vld [vmem:[#allocation16 + $0x8d4] sm:$0xf0] }
 0x9dc   : > { %6189 = vmatpush.bf16.msra.mxu1 %v8846_v34  ;;  %6202 = vmatpush.bf16.msra.mxu3 %v8850_v35  ;;  %v3177_v44 = vadd.f32 %v11187_v43, %v3089_v10  ;;  %v9570_v34 = vld [vmem:[#allocation16 + $0x8ec] sm:$0xf] }
 0x9dd   : > { %8935 = vmatmul.msk.bf16.vlgmr.msrb.gmra.mxu0 %vm3373_vm8, %v11471_v3  ;;  %8936 = vmatmul.msk.bf16.vlgmr.msrb.gmra.mxu2 %vm3373_vm8, %v11471_v3  ;;  %v8986_v16 = vor.u32 %v9570_v34, %v8983_v17 }
 0x9de   : > { %v4872_v11 = vpop.f32.mrf.mxu3  ;;  %6559 = vmatpush.bf16.msrb.mxu0 %v9026_v53  ;;  %6572 = vmatpush.bf16.msrb.mxu2 %v9030_v25  ;;  %v3265_v43 = vadd.f32 %v11178_v61, %v3177_v44  ;;  %v8965_v25 = vld [vmem:[#allocation16 + $0x8c8] sm:$0xf] }
 0x9df   : > { %v8966_v61 = vor.u32 %v9568_v55, %v8965_v25  ;;  %v9564_v11 = vld [vmem:[#allocation16 + $0x8b4] sm:$0xf0] }
 0x9e0   : > { %v4990_v51 = vpop.f32.mrf.mxu1  ;;  %v5243_v38 = vpop.f32.mrf.mxu2  ;;  %v3273_v29 = vadd.f32 %v9792_v62, %v3265_v43 }
 0x9e1   : > { %v5009_v6 = vadd.f32 %v4990_v51, %v11456_v47  ;;  %v5274_v60 = vadd.f32 %v5243_v38, %v11459_v21  ;;  %v8914_v47 = vor.u32 %v9556_v28, %v8913_v15  ;;  %v8918_v21 = vor.u32 %v9554_v23, %v8915_v42  ;;  %v9033_v15 = vld [vmem:[#allocation16 + $0x948] sm:$0xf]  ;;  %v9035_v28 = vld [vmem:[#allocation16 + $0x958] sm:$0xf0] }
 0x9e2   : > { %v5232_v54 = vpop.f32.mrf.mxu0  ;;  %6560 = vmatpush.bf16.msrb.mxu0 %v9010_v39  ;;  %6573 = vmatpush.bf16.msrb.mxu2 %v9014_v32  ;;  %v9562_v39 = vld [vmem:[#allocation16 + $0x8ac] sm:$0xf]  ;;  %v8951_v32 = vld [vmem:[#allocation16 + $0x8b8] sm:$0xf0]  ;;  %v3277_v31 = vmax.f32 %v3273_v29, 0.0  ;;  %v8950_v51 = vor.u32 %v9564_v11, %v8949_v9 }
 0x9e3   : > { %8833 = vmatmul.msk.bf16.vlgmr.msrb.gmra.mxu1 %vm3373_vm8, %v11423_v63  ;;  %8834 = vmatmul.msk.bf16.vlgmr.msrb.gmra.mxu3 %vm3373_vm8, %v11423_v63  ;;  %v8898_v63 = vor.u32 %v9552_v40, %v8897_v48  ;;  %v8954_v38 = vor.u32 %v9562_v39, %v8951_v32  ;;  %v9580_v48 = vld [vmem:[#allocation16 + $0x934] sm:$0xf0]  ;;  %v9019_v40 = vld [vmem:[#allocation16 + $0x938] sm:$0xf0] }
 0x9e4   : > { %6320 = vmatpush.bf16.msrb.mxu1 %v8930_v50  ;;  %6333 = vmatpush.bf16.msrb.mxu3 %v8934_v56  ;;  %v11506_v56 = vpack.c.bf16 %v3277_v31, %v3277_v31  ;;  %v9018_v18 = vor.u32 %v9580_v48, %v9017_v59 }
 0x9e6   : > { %v5003_v7 = vpop.f32.mrf.mxu3  ;;  %6561 = vmatpush.bf16.msrb.mxu0 %v8994_v14  ;;  %6574 = vmatpush.bf16.msrb.mxu2 %v8998_v19 }
 0x9e7   : > { %v5010_v52 = vadd.f32 %v5003_v7, %v11466_v22  ;;  %v9572_v22 = vld [vmem:[#allocation16 + $0x8f4] sm:$0xf0]  ;;  %v9022_v7 = vor.u32 %v9578_v5, %v9019_v40  ;;  %v9600_v5 = vld [vmem:[#allocation19 + $0x78] sm:$0xff]  ;;  %v9590_v40 = vld [vmem:[#allocation19 + $0x28] sm:$0xff] }
 0x9e8   : > { %v4992_v46 = vpop.f32.mrf.mxu1  ;;  %v5245_v45 = vpop.f32.mrf.mxu2  ;;  %6321 = vmatpush.bf16.msrb.mxu1 %v8914_v47  ;;  %6334 = vmatpush.bf16.msrb.mxu3 %v8918_v21  ;;  %v8982_v53 = vor.u32 %v9572_v22, %v8981_v33 }
 0x9e9   : > { %v9576_v46 = vld [vmem:[#allocation16 + $0x914] sm:$0xf0]  ;;  %v9574_v45 = vld [vmem:[#allocation16 + $0x90c] sm:$0xf] }
 0x9ea   : > { %v5363_v57 = vpop.f32.mrf.mxu0 }
 0x9eb   : > { %v5406_v13 = vadd.f32 %v5363_v57, %v11474_v24 }
 0x9ec   : > { %6322 = vmatpush.bf16.msrb.mxu1 %v8898_v63  ;;  %6335 = vmatpush.bf16.msrb.mxu3 %v8902_v4  ;;  %v9003_v63 = vld [vmem:[#allocation16 + $0x918] sm:$0xf0] }
 0x9ed   : > { %8987 = vmatmul.msk.bf16.vlgmr.msra.gmra.mxu0 %vm3373_vm8, %v11495_v36  ;;  %8988 = vmatmul.msk.bf16.vlgmr.msra.gmra.mxu2 %vm3373_vm8, %v11495_v36  ;;  %v9006_v33 = vor.u32 %v9574_v45, %v9003_v63  ;;  %v9589_v45 = vld [vmem:[#allocation19 + $0x20] sm:$0xff] }
 0x9ee   : > { %v5005_v35 = vpop.f32.mrf.mxu3  ;;  %6902 = vmatpush.bf16.msra.mxu2 %v9600_v5 }
 0x9f0   : > { %v5123_v20 = vpop.f32.mrf.mxu1  ;;  %v5376_v41 = vpop.f32.mrf.mxu2 }
 0x9f1   : > { %v5142_v12 = vadd.f32 %v5123_v20, %v5009_v6  ;;  %v5407_v24 = vadd.f32 %v5376_v41, %v5274_v60  ;;  %v9584_v6 = vld [vmem:[#allocation16 + $0x954] sm:$0xf0]  ;;  %v9582_v60 = vld [vmem:[#allocation16 + $0x94c] sm:$0xf] }
 0x9f2   : > { %v5365_v27 = vpop.f32.mrf.mxu0  ;;  %v9034_v14 = vor.u32 %v9584_v6, %v9033_v15  ;;  %v9038_v19 = vor.u32 %v9582_v60, %v9035_v28 }
 0x9f3   : > { %8885 = vmatmul.msk.bf16.vlgmr.msra.gmra.mxu1 %vm3373_vm8, %v11446_v37  ;;  %8886 = vmatmul.msk.bf16.vlgmr.msra.gmra.mxu3 %vm3373_vm8, %v11446_v37 }
 0x9f4   : > { %6453 = vmatpush.bf16.msra.mxu1 %v8982_v53  ;;  %6466 = vmatpush.bf16.msra.mxu3 %v8986_v16 }
 0x9f6   : > { %v5136_v26 = vpop.f32.mrf.mxu3 }
 0x9f7   : > { %v5143_v0 = vadd.f32 %v5136_v26, %v5010_v52  ;;  %v9001_v52 = vld [vmem:[#allocation16 + $0x908] sm:$0xf] }
 0x9f8   : > { %v5125_v58 = vpop.f32.mrf.mxu1  ;;  %v5378_v1 = vpop.f32.mrf.mxu2  ;;  %6454 = vmatpush.bf16.msra.mxu1 %v8966_v61  ;;  %6467 = vmatpush.bf16.msra.mxu3 %v8970_v30 }
 0x9fa   : > { %v5495_v50 = vpop.f32.mrf.mxu0 }
 0x9fb   : > { %v5538_v37 = vadd.f32 %v5495_v50, %v5406_v13  ;;  %v9002_v13 = vor.u32 %v9576_v46, %v9001_v52 }
 0x9fc   : > { %6455 = vmatpush.bf16.msra.mxu1 %v8950_v51  ;;  %6468 = vmatpush.bf16.msra.mxu3 %v8954_v38 }
 0x9fd   : > { %9039 = vmatmul.msk.bf16.vlgmr.msrb.gmra.mxu0 %vm3373_vm8, %v11506_v56  ;;  %9040 = vmatmul.msk.bf16.vlgmr.msrb.gmra.mxu2 %vm3373_vm8, %v11506_v56 }
 0x9fe   : > { %v5138_v23 = vpop.f32.mrf.mxu3 }
 0xa00   : > { %v5256_v42 = vpop.f32.mrf.mxu1  ;;  %v5508_v54 = vpop.f32.mrf.mxu2 }
 0xa01   : > { %v5275_v47 = vadd.f32 %v5256_v42, %v5142_v12  ;;  %v5539_v21 = vadd.f32 %v5508_v54, %v5407_v24  ;;  %v9592_v54 = vld [vmem:[#allocation19 + $0x38] sm:$0xff] }
 0xa02   : > { %v5497_v49 = vpop.f32.mrf.mxu0  ;;  %6889 = vmatpush.bf16.msra.mxu0 %v9592_v54 }
 0xa03   : > { %8937 = vmatmul.msk.bf16.vlgmr.msrb.gmra.mxu1 %vm3373_vm8, %v11471_v3  ;;  %8938 = vmatmul.msk.bf16.vlgmr.msrb.gmra.mxu3 %vm3373_vm8, %v11471_v3 }
 0xa04   : > { %6585 = vmatpush.bf16.msrb.mxu1 %v9034_v14  ;;  %6598 = vmatpush.bf16.msrb.mxu3 %v9038_v19 }
 0xa06   : > { %v5269_v4 = vpop.f32.mrf.mxu3 }
 0xa07   : > { %v5276_v10 = vadd.f32 %v5269_v4, %v5143_v0  ;;  %v9598_v4 = vld [vmem:[#allocation19 + $0x68] sm:$0xff] }
 0xa08   : > { %v5258_v57 = vpop.f32.mrf.mxu1  ;;  %v5510_v44 = vpop.f32.mrf.mxu2  ;;  %6586 = vmatpush.bf16.msrb.mxu1 %v9018_v18  ;;  %6599 = vmatpush.bf16.msrb.mxu3 %v9022_v7  ;;  %v9599_v18 = vld [vmem:[#allocation19 + $0x70] sm:$0xff] }
 0xa09   : > { %6903 = vmatpush.bf16.msra.mxu2 %v9599_v18 }
 0xa0a   : > { %v5633_v22 = vpop.f32.mrf.mxu0 }
 0xa0b   : > { %v5676_v34 = vadd.f32 %v5633_v22, %v5538_v37 }
 0xa0c   : > { %6587 = vmatpush.bf16.msrb.mxu1 %v9002_v13  ;;  %6600 = vmatpush.bf16.msrb.mxu3 %v9006_v33  ;;  %v9597_v13 = vld [vmem:[#allocation19 + $0x60] sm:$0xff] }
 0xa0d   : > { %6904 = vmatpush.bf16.msra.mxu2 %v9598_v4 }
 0xa0e   : > { %v5271_v3 = vpop.f32.mrf.mxu3 }
 0xa10   : > { %v5389_v17 = vpop.f32.mrf.mxu1  ;;  %v5646_v35 = vpop.f32.mrf.mxu2 }
 0xa11   : > { %v5408_v43 = vadd.f32 %v5389_v17, %v5275_v47  ;;  %v5677_v20 = vadd.f32 %v5646_v35, %v5539_v21  ;;  %v9591_v21 = vld [vmem:[#allocation19 + $0x30] sm:$0xff]  ;;  %6905 = vmatpush.bf16.msra.mxu2 %v9597_v13  ;;  %v9596_v17 = vld [vmem:[#allocation19 + $0x58] sm:$0xff] }
 0xa12   : > { %v5635_v41 = vpop.f32.mrf.mxu0  ;;  %6890 = vmatpush.bf16.msra.mxu0 %v9591_v21 }
 0xa13   : > { %8989 = vmatmul.msk.bf16.vlgmr.msra.gmra.mxu1 %vm3373_vm8, %v11495_v36  ;;  %8990 = vmatmul.msk.bf16.vlgmr.msra.gmra.mxu3 %vm3373_vm8, %v11495_v36 }
 0xa15   : > { %6906 = vmatpush.bf16.msra.mxu2 %v9596_v17  ;;  %v9610_v17 = vld [vmem:[#allocation19 + $0xc8] sm:$0xff] }
 0xa16   : > { %v5402_v53 = vpop.f32.mrf.mxu3  ;;  %6891 = vmatpush.bf16.msra.mxu0 %v9590_v40 }
 0xa17   : > { %v5409_v16 = vadd.f32 %v5402_v53, %v5276_v10  ;;  %v9588_v10 = vld [vmem:[#allocation19 + $0x18] sm:$0xff]  ;;  %v9595_v53 = vld [vmem:[#allocation19 + $0x50] sm:$0xff] }
 0xa18   : > { %v5391_v25 = vpop.f32.mrf.mxu1  ;;  %v5648_v12 = vpop.f32.mrf.mxu2 }
 0xa19   : > { %6907 = vmatpush.bf16.msra.mxu2 %v9595_v53  ;;  %v9585_v25 = vld [vmem:[#allocation19] sm:$0xff]  ;;  %v9594_v12 = vld [vmem:[#allocation19 + $0x48] sm:$0xff] }
 0xa1a   : > { %v5766_v24 = vpop.f32.mrf.mxu0  ;;  %6892 = vmatpush.bf16.msra.mxu0 %v9589_v45 }
 0xa1b   : > { %v5809_v55 = vadd.f32 %v5766_v24, %v5676_v34  ;;  %v9587_v34 = vld [vmem:[#allocation19 + $0x10] sm:$0xff] }
 0xa1d   : > { %6908 = vmatpush.bf16.msra.mxu2 %v9594_v12 }
 0xa1e   : > { %v5404_v8 = vpop.f32.mrf.mxu3  ;;  %6893 = vmatpush.bf16.msra.mxu0 %v9588_v10  ;;  %v9602_v10 = vld [vmem:[#allocation19 + $0x88] sm:$0xff] }
 0xa20   : > { %v5521_v2 = vpop.f32.mrf.mxu1  ;;  %v5779_v27 = vpop.f32.mrf.mxu2 }
 0xa21   : > { %v5540_v62 = vadd.f32 %v5521_v2, %v5408_v43  ;;  %v5810_v29 = vadd.f32 %v5779_v27, %v5677_v20  ;;  %v9586_v43 = vld [vmem:[#allocation19 + $0x8] sm:$0xff]  ;;  %v9608_v27 = vld [vmem:[#allocation19 + $0xb8] sm:$0xff] }
 0xa22   : > { %v5768_v61 = vpop.f32.mrf.mxu0  ;;  %6894 = vmatpush.bf16.msra.mxu0 %v9587_v34  ;;  %6915 = vmatpush.bf16.msra.mxu1 %v9608_v27 }
 0xa23   : > { %9041 = vmatmul.msk.bf16.vlgmr.msrb.gmra.mxu1 %vm3373_vm8, %v11506_v56  ;;  %9042 = vmatmul.msk.bf16.vlgmr.msrb.gmra.mxu3 %vm3373_vm8, %v11506_v56  ;;  %v9607_v61 = vld [vmem:[#allocation19 + $0xb0] sm:$0xff] }
 0xa26   : > { %v5534_v30 = vpop.f32.mrf.mxu3  ;;  %6895 = vmatpush.bf16.msra.mxu0 %v9586_v43  ;;  %6916 = vmatpush.bf16.msra.mxu1 %v9607_v61 }
 0xa27   : > { %v5541_v36 = vadd.f32 %v5534_v30, %v5409_v16 }
 0xa28   : > { %v5523_v9 = vpop.f32.mrf.mxu1  ;;  %v5781_v11 = vpop.f32.mrf.mxu2 }
 0xa29   : > { %v9616_v9 = vld [vmem:[#allocation19 + $0xf8] sm:$0xff]  ;;  %v9606_v11 = vld [vmem:[#allocation19 + $0xa8] sm:$0xff] }
 0xa2a   : > { %v5899_v39 = vpop.f32.mrf.mxu0  ;;  %6896 = vmatpush.bf16.msra.mxu0 %v9585_v25  ;;  %6928 = vmatpush.bf16.msra.mxu3 %v9616_v9 }
 0xa2b   : > { %v11524_v32 = vadd.f32 %v5899_v39, %v5809_v55  ;;  %v9593_v55 = vld [vmem:[#allocation19 + $0x40] sm:$0xff]  ;;  %6917 = vmatpush.bf16.msra.mxu1 %v9606_v11 }
 0xa2c   : > { %6909 = vmatpush.bf16.msra.mxu2 %v9593_v55 }
 0xa2e   : > { %v5536_v26 = vpop.f32.mrf.mxu3 }
 0xa30   : > { %v5659_v31 = vpop.f32.mrf.mxu1  ;;  %v5912_v0 = vpop.f32.mrf.mxu2 }
 0xa31   : > { %v5678_v58 = vadd.f32 %v5659_v31, %v5540_v62  ;;  %v11526_v1 = vadd.f32 %v5912_v0, %v5810_v29  ;;  %v9615_v31 = vld [vmem:[#allocation19 + $0xf0] sm:$0xff] }
 0xa32   : > { %v5901_v51 = vpop.f32.mrf.mxu0  ;;  %6929 = vmatpush.bf16.msra.mxu3 %v9615_v31 }
 0xa33   : > { %v11548_v51 = vld [vmem:[#allocation17] sm:$0xf] }
 0xa36   : > { %v5672_v38 = vpop.f32.mrf.mxu3 }
 0xa37   : > { %v5679_v50 = vadd.f32 %v5672_v38, %v5541_v36 }
 0xa38   : > { %v5661_v37 = vpop.f32.mrf.mxu1  ;;  %v5914_v15 = vpop.f32.mrf.mxu2 }
 0xa3a   : > { %v11528_v6 = vpop.f32.mrf.mxu0 }
 0xa3b   : > { %v6075_v26 = vadd.f32 %v11528_v6, %v11524_v32  ;;  %v6612_v32 = vperm.slane %v11548_v51, 0  ;;  %v9604_v6 = vld [vmem:[#allocation19 + $0x98] sm:$0xff] }
 0xa3e   : > { %v5674_v56 = vpop.f32.mrf.mxu3 }
 0xa3f   : > { %v9614_v56 = vld [vmem:[#allocation19 + $0xe8] sm:$0xff] }
 0xa40   : > { %v5792_v60 = vpop.f32.mrf.mxu1  ;;  %v11530_v28 = vpop.f32.mrf.mxu2  ;;  %6930 = vmatpush.bf16.msra.mxu3 %v9614_v56 }
 0xa41   : > { %v5811_v23 = vadd.f32 %v5792_v60, %v5678_v58  ;;  %v6076_v60 = vadd.f32 %v11530_v28, %v11526_v1  ;;  %v6613_v1 = vperm.slane %v11548_v51, 1 }
 0xa42   : > { %v6034_v42 = vpop.f32.mrf.mxu0 }
 0xa46   : > { %v5805_v14 = vpop.f32.mrf.mxu3 }
 0xa47   : > { %v5812_v19 = vadd.f32 %v5805_v14, %v5679_v50  ;;  %v9605_v50 = vld [vmem:[#allocation19 + $0xa0] sm:$0xff] }
 0xa48   : > { %v5794_v59 = vpop.f32.mrf.mxu1  ;;  %v6047_v47 = vpop.f32.mrf.mxu2  ;;  %6918 = vmatpush.bf16.msra.mxu1 %v9605_v50 }
 0xa4a   : > { %v6165_v48 = vpop.f32.mrf.mxu0 }
 0xa4b   : > { %v6208_v0 = vadd.f32 %v6165_v48, %v6075_v26  ;;  %v9603_v48 = vld [vmem:[#allocation19 + $0x90] sm:$0xff] }
 0xa4c   : > { %6919 = vmatpush.bf16.msra.mxu1 %v9604_v6 }
 0xa4e   : > { %v5807_v49 = vpop.f32.mrf.mxu3 }
 0xa50   : > { %v5925_v7 = vpop.f32.mrf.mxu1  ;;  %v11532_v52 = vpop.f32.mrf.mxu2  ;;  %6920 = vmatpush.bf16.msra.mxu1 %v9603_v48 }
 0xa51   : > { %v11534_v46 = vadd.f32 %v5925_v7, %v5811_v23  ;;  %v6209_v54 = vadd.f32 %v11532_v52, %v6076_v60 }
 0xa52   : > { %v6167_v63 = vpop.f32.mrf.mxu0 }
 0xa53   : > { %v9612_v63 = vld [vmem:[#allocation19 + $0xd8] sm:$0xff] }
 0xa54   : > { %6921 = vmatpush.bf16.msra.mxu1 %v9602_v10 }
 0xa56   : > { %v5938_v57 = vpop.f32.mrf.mxu3 }
 0xa57   : > { %v11536_v44 = vadd.f32 %v5938_v57, %v5812_v19  ;;  %v9613_v19 = vld [vmem:[#allocation19 + $0xe0] sm:$0xff] }
 0xa58   : > { %v5927_v33 = vpop.f32.mrf.mxu1  ;;  %v6180_v22 = vpop.f32.mrf.mxu2  ;;  %6931 = vmatpush.bf16.msra.mxu3 %v9613_v19 }
 0xa59   : > { %v9611_v33 = vld [vmem:[#allocation19 + $0xd0] sm:$0xff] }
 0xa5a   : > { %v6298_v3 = vpop.f32.mrf.mxu0 }
 0xa5b   : > { %v6341_v38 = vadd.f32 %v6298_v3, %v6208_v0  ;;  %v9601_v3 = vld [vmem:[#allocation19 + $0x80] sm:$0xff] }
 0xa5c   : > { %6932 = vmatpush.bf16.msra.mxu3 %v9612_v63  ;;  %6922 = vmatpush.bf16.msra.mxu1 %v9601_v3 }
 0xa5e   : > { %v5940_v35 = vpop.f32.mrf.mxu3 }
 0xa5f   : > { %v9609_v35 = vld [vmem:[#allocation19 + $0xc0] sm:$0xff] }
 0xa60   : > { %v11538_v20 = vpop.f32.mrf.mxu1  ;;  %v6311_v41 = vpop.f32.mrf.mxu2  ;;  %6933 = vmatpush.bf16.msra.mxu3 %v9611_v33 }
 0xa61   : > { %v6342_v59 = vadd.f32 %v6311_v41, %v6209_v54  ;;  %v6077_v25 = vadd.f32 %v11538_v20, %v11534_v46  ;;  %v6615_v46 = vperm.slane %v11548_v51, 3 }
 0xa62   : > { %v6300_v16 = vpop.f32.mrf.mxu0 }
 0xa64   : > { %6934 = vmatpush.bf16.msra.mxu3 %v9610_v17 }
 0xa66   : > { %v11540_v24 = vpop.f32.mrf.mxu3 }
 0xa68   : > { %v6060_v8 = vpop.f32.mrf.mxu1  ;;  %v6313_v2 = vpop.f32.mrf.mxu2  ;;  %6935 = vmatpush.bf16.msra.mxu3 %v9609_v35 }
 0xa69   : > { %v6078_v2 = vadd.f32 %v11540_v24, %v11536_v44 }
 0xa6a   : > { %v6431_v62 = vpop.f32.mrf.mxu0 }
 0xa6b   : > { %v6474_v23 = vadd.f32 %v6431_v62, %v6341_v38  ;;  %v6614_v62 = vperm.slane %v11548_v51, 2 }
 0xa6e   : > { %v6073_v29 = vpop.f32.mrf.mxu3 }
 0xa70   : > { %v11542_v30 = vpop.f32.mrf.mxu1  ;;  %v6444_v36 = vpop.f32.mrf.mxu2 }
 0xa71   : > { %v6475_v5 = vadd.f32 %v6444_v36, %v6342_v59  ;;  %v6210_v12 = vadd.f32 %v11542_v30, %v6077_v25 }
 0xa72   : > { %v6433_v39 = vpop.f32.mrf.mxu0 }
 0xa76   : > { %v11546_v58 = vpop.f32.mrf.mxu3 }
 0xa77   : > { %v6211_v61 = vadd.f32 %v11546_v58, %v6078_v2 }
 0xa78   : > { %v6193_v37 = vpop.f32.mrf.mxu1  ;;  %v6446_v15 = vpop.f32.mrf.mxu2 }
 0xa7a   : > { %v6563_v42 = vpop.f32.mrf.mxu0 }
 0xa7b   : > { %v6606_v14 = vadd.f32 %v6563_v42, %v6474_v23  ;;  %v6696_v23 = vld [vmem:[#allocation20] sm:$0x1] }
 0xa7d   : > { %v6620_v47 = vadd.f32 %v6612_v32, %v6606_v14  ;;  %v6941_v32 = vlaneseq }
 0xa7e   : > { %v6206_v21 = vpop.f32.mrf.mxu3 }
 0xa7f   : > { %v6624_v40 = vmax.f32 %v6620_v47, 0.0  ;;  %v6942_v51 = vand.u32 127, %v6941_v32 }
 0xa80   : > { %v6324_v28 = vpop.f32.mrf.mxu1  ;;  %v6576_v49 = vpop.f32.mrf.mxu2 }
 0xa81   : > { %v6628_v18 = vpack.c.bf16 %v6624_v40, %v6624_v40  ;;  %v6607_v7 = vadd.f32 %v6576_v49, %v6475_v5  ;;  %v6343_v55 = vadd.f32 %v6324_v28, %v6210_v12  ;;  %vm6943_vm9 = vcmp.lt.s32.totalorder %v6942_v51, 10 }
 0xa82   : > { %v6565_v45 = vpop.f32.mrf.mxu0 }
 0xa83   : > { %v6621_v52 = vadd.f32 %v6613_v1, %v6607_v7  ;;  %6897 = vmatmul.bf16.vlgmr.msra.gmra.mxu0 %v6628_v18 }
 0xa85   : > { %v6625_v4 = vmax.f32 %v6621_v52, 0.0 }
 0xa86   : > { %v6337_v57 = vpop.f32.mrf.mxu3 }
 0xa87   : > { %v6629_v13 = vpack.c.bf16 %v6625_v4, %v6625_v4  ;;  %v6344_v9 = vadd.f32 %v6337_v57, %v6211_v61 }
 0xa88   : > { %v6326_v22 = vpop.f32.mrf.mxu1  ;;  %v6578_v34 = vpop.f32.mrf.mxu2 }
 0xa89   : > { %6910 = vmatmul.bf16.vlgmr.msra.gmra.mxu2 %v6629_v13 }
 0xa8e   : > { %v6339_v43 = vpop.f32.mrf.mxu3 }
 0xa90   : > { %v6457_v41 = vpop.f32.mrf.mxu1 }
 0xa91   : > { %v6476_v27 = vadd.f32 %v6457_v41, %v6343_v55 }
 0xa96   : > { %v6470_v53 = vpop.f32.mrf.mxu3 }
 0xa97   : > { %v6477_v39 = vadd.f32 %v6470_v53, %v6344_v9 }
 0xa98   : > { %v6459_v16 = vpop.f32.mrf.mxu1 }
 0xa9e   : > { %v6472_v8 = vpop.f32.mrf.mxu3 }
 0xaa0   : > { %v6589_v29 = vpop.f32.mrf.mxu1 }
 0xaa1   : > { %v6608_v36 = vadd.f32 %v6589_v29, %v6476_v27 }
 0xaa3   : > { %v6622_v11 = vadd.f32 %v6614_v62, %v6608_v36 }
 0xaa5   : > { %v6626_v26 = vmax.f32 %v6622_v11, 0.0 }
 0xaa6   : > { %v6602_v20 = vpop.f32.mrf.mxu3 }
 0xaa7   : > { %v6630_v30 = vpack.c.bf16 %v6626_v26, %v6626_v26  ;;  %v6609_v31 = vadd.f32 %v6602_v20, %v6477_v39 }
 0xaa8   : > { %v6591_v0 = vpop.f32.mrf.mxu1 }
 0xaa9   : > { %v6623_v38 = vadd.f32 %v6615_v46, %v6609_v31  ;;  %6923 = vmatmul.bf16.vlgmr.msra.gmra.mxu1 %v6630_v30 }
 0xaab   : > { %v6627_v44 = vmax.f32 %v6623_v38, 0.0 }
 0xaad   : > { %v6631_v24 = vpack.c.bf16 %v6627_v44, %v6627_v44 }
 0xaae   : > { %v6604_v50 = vpop.f32.mrf.mxu3 }
 0xaaf   : > { %6936 = vmatmul.bf16.vlgmr.msra.gmra.mxu3 %v6631_v24 }
 0xb00   : > { %v6898_v37 = vpop.f32.mrf.mxu0 }
 0xb01   : > { %v6899_v6 = vadd.f32 %v6898_v37, %v6696_v23 }
 0xb08   : > { %v6900_v15 = vpop.f32.mrf.mxu0 }
 0xb0c   : > { %v6911_v58 = vpop.f32.mrf.mxu2 }
 0xb0d   : > { %v6912_v54 = vadd.f32 %v6911_v58, %v6899_v6 }
 0xb14   : > { %v6913_v56 = vpop.f32.mrf.mxu2 }
 0xb26   : > { %v6924_v60 = vpop.f32.mrf.mxu1 }
 0xb27   : > { %v6925_v14 = vadd.f32 %v6924_v60, %v6912_v54 }
 0xb2e   : > { %v6926_v42 = vpop.f32.mrf.mxu1 }
 0xb32   : > { %v6937_v19 = vpop.f32.mrf.mxu3 }
 0xb33   : > { %v6938_v59 = vadd.f32 %v6937_v19, %v6925_v14 }
 0xb35   : > { %v6944_v47 = vsel %vm6943_vm9, %v6938_v59, -1e+30 }
 0xb36   : > { %v6945_v21 = vsel %vm2497_vm5, %v6944_v47, -inf }
 0xb37   : > { %6946 = vmax.xlane.f32.xlu0 %v6945_v21 }
 0xb3a   : > { %v6939_v48 = vpop.f32.mrf.mxu3 }
 0xbaa   : > { %v6947_v5 = vpop.xlane.xlu0 %6946 }
 0xbab   : > { %v6948_v40 = vsub.f32 %v6944_v47, %v6947_v5 }
 0xbad   : > { %v6949_v1 = vmul.f32 1.442695, %v6948_v40 }
 0xbaf   : > { %9788 = vpow2.f32 %v6949_v1 }
 0xbb5   : > { %v9789_v28 = vpop.eup %9788 }
 0xbb6   : > { %v6951_v49 = vsel %vm2497_vm5, %v9789_v28, 0.0 }
 0xbb7   : > { %6952 = vadd.xlane.f32.xlu0 %v6951_v49 }
 0xc2a   : > { %v6953_v18 = vpop.xlane.xlu0 %6952 }
 0xc2b   : > { %9790 = vrcp.f32 %v6953_v18 }
 0xc31   : > { %v9791_v7 = vpop.eup %9790 }
 0xc32   : > { %v6955_v45 = vmul.f32 %v9791_v7, %v6953_v18 }
 0xc34   : > { %v6956_v52 = vsub.f32 2.0, %v6955_v45 }
 0xc36   : > { %v6957_v63 = vmul.f32 %v9791_v7, %v6956_v52 }
 0xc38   : > { %v6958_v4 = vmul.f32 %v9789_v28, %v6957_v63 }
 0xc3a   : > { %6959 = vst [vmem:[%s621_s14] sm:$0x1] %v6958_v4 }
 0xc3b   : > { %10180 = shalt.err (!%p10177_p8)
}
 0xc3c   : > { %9666 = dma.vmem_to_hbm [thread:$0]  (%p10372_p5), %s6972_s4, 16, %s6974_s6, %s6961_s21  }
 0xc3d PF: > { %s11638_s20 = sld [smem:[#allocation31_spill]]  ;;  %p9733_p9 = scmp.ge.s32.totalorder %s10243_s28, 2 }
 0xc3f   : > { %p9706_p10 = pnand %p9733_p9, %p10376_p6 }
 0xc41   : > { %p9707_p11 = pneg %p9706_p10 }
 0xc43   : > { %s6985_s2 = sand.u32 1, %s11638_s20  }
 0xc44   : > { %s6986_s1 = scalar_lea.sflag [#allocation4], %s6985_s2 }
 0xc45   : > { %10226 = dma.done.wait (%p9707_p11), %s6986_s1, 16  }
 0xc46   : > { %10228 = vsyncadd (%p9707_p11), %s6986_s1, 4294967280  ;;  %s11640_s28 = sld [smem:[#allocation33_spill]]  ;;  %s11643_s25 = smov %s10235_s26 }
 0xc47   : > { %s11641_s24 = sld [smem:[#allocation32_spill]] }
 0xc48   : > { %s11642_s27 = sld [smem:[#allocation34_spill]] }
 0xc4c   : > { %p30_p12 = scmp.ge.s32.totalorder %s11640_s28, 4  }
 0xc4d   : > { %s11644_s26 = smov %s11641_s24 }
 0xc4e   :  { %32 = sbr.rel (!%p30_p12) target bundleno = 16 (0x10), region = 212 }
 0xc53   :  { %6991 = vsyncpa [#allocation3], 1 }
 0xc54   :  { %6993 = vsyncpa [#allocation3 + $0x1], 1 }
 0xc55   :  { %6994 = vsyncpa [#allocation6], 1 }
 0xc56   :  { %6995 = vsyncpa [#allocation9], 1 }
 0xc57   :  { %6996 = vsyncpa [#allocation12], 1 }
 0xc58   :  { %6997 = vsyncpa [#allocation15], 1 }
 0xc59   :  { %6998 = vsyncpa [#allocation18], 1 }
 0xc5a   :  { %6999 = vsyncpa [#allocation21], 1 }
 0xc5b   :  { %7000 = vsyncpa [#allocation4], 1 }
 0xc5c   :  { %7002 = vsyncpa [#allocation4 + $0x1], 1 }

</bundles_post_ra>
